<compile_context>
chip_gen: v7x
topology: tpu7x:2x2x1
jax: 0.10.0
libtpu: 0.0.40
codegen_flags: <defaults>
</compile_context>

<pallas_src>
import math

import jax
import jax.numpy as jnp
import numpy as np
from jax.experimental import pallas as pl
from jax.experimental.pallas import tpu as pltpu

# ---- hyperparameters (baked into the kernel, mirroring module __init__) ----
STATE_DIM = 32
ACTION_DIM = 8
HIDDEN = 256
MAX_ACTION = 2.0
LOG_STD_MULTIPLIER = 1.0   # Scalar(log_std_multiplier)
LOG_STD_OFFSET = -1.0      # Scalar(log_std_offset)
LOG_STD_MIN = -20.0
LOG_STD_MAX = 2.0
DETERMINISTIC = False      # forward(..., deterministic=False) default
LOG_2PI = math.log(2.0 * math.pi)
LOG_2 = math.log(2.0)

LANE_W = 128               # lane-dense width for head slices / packed output
TILE_B = 256               # batch tile: multiple of 128 (MXU-native everywhere)


def _softplus(z):
    # numerically-stable softplus, safe for large |z|
    return jnp.maximum(z, 0.0) + jnp.log1p(jnp.exp(-jnp.abs(z)))


def policy_kernel(obs_ref, w1_ref, b1_ref, w2_ref, b2_ref, w3_ref, b3_ref,
                  w4_ref, b4_ref, eps_ref, out_ref):
    # --- base_network: 3x (Linear + ReLU); bf16 matmuls, f32 accumulate ---
    h = jnp.dot(obs_ref[...].astype(jnp.bfloat16), w1_ref[...],
                preferred_element_type=jnp.float32) + b1_ref[...]
    h = jnp.maximum(h, 0.0)
    h = jnp.dot(h.astype(jnp.bfloat16), w2_ref[...],
                preferred_element_type=jnp.float32) + b2_ref[...]
    h = jnp.maximum(h, 0.0)
    h = jnp.dot(h.astype(jnp.bfloat16), w3_ref[...],
                preferred_element_type=jnp.float32) + b3_ref[...]
    h = jnp.maximum(h, 0.0)

    # --- fused, lane-padded head: cols [0:8) = mean, cols [128:136) = log_std,
    #     all other columns are zero. Slices below are 128-lane aligned (free).
    head = jnp.dot(h.astype(jnp.bfloat16), w4_ref[...],
                   preferred_element_type=jnp.float32) + b4_ref[...]
    mean = head[:, :LANE_W]        # lanes 0..ACTION_DIM-1 meaningful
    log_std = head[:, LANE_W:]     # lanes 0..ACTION_DIM-1 meaningful

    # log_std = multiplier * log_std + offset; clamp; std = exp(log_std)
    log_std = jnp.clip(LOG_STD_MULTIPLIER * log_std + LOG_STD_OFFSET,
                       LOG_STD_MIN, LOG_STD_MAX)
    std = jnp.exp(log_std)

    eps = eps_ref[...]             # [TILE_B, 128]; zeros beyond ACTION_DIM
    if DETERMINISTIC:
        pre_tanh = mean
        quad = jnp.zeros_like(mean)
    else:
        pre_tanh = mean + std * eps
        quad = eps * eps           # == ((pre_tanh - mean) / std) ** 2 exactly

    action = jnp.tanh(pre_tanh)

    # Normal(mean, std).log_prob(pre_tanh) - TanhTransform.log_abs_det_jacobian
    normal_lp = -0.5 * quad - log_std - 0.5 * LOG_2PI
    tanh_jac = 2.0 * (LOG_2 - pre_tanh - _softplus(-2.0 * pre_tanh))
    log_prob = normal_lp - tanh_jac

    lane = jax.lax.broadcasted_iota(jnp.int32, log_prob.shape, 1)
    act_mask = lane < ACTION_DIM
    logp_sum = jnp.sum(jnp.where(act_mask, log_prob, 0.0),
                       axis=-1, keepdims=True)
    logp_b = jnp.broadcast_to(logp_sum, log_prob.shape)

    # Pack into one lane-dense slab: lanes [0:8) = scaled action,
    # lane 8 = summed log_prob, remaining lanes 0. Unmasked 128-wide store.
    out_ref[...] = jnp.where(act_mask, MAX_ACTION * action,
                             jnp.where(lane == ACTION_DIM, logp_b, 0.0))


def prepare_kernel_params(params):
    """Fuse + lane-pad the head, cast matmul weights to bf16 (done once)."""
    w4 = jnp.zeros((HIDDEN, 2 * LANE_W), jnp.float32)
    w4 = w4.at[:, :ACTION_DIM].set(params["w4m"])
    w4 = w4.at[:, LANE_W:LANE_W + ACTION_DIM].set(params["w4s"])
    b4 = jnp.zeros((1, 2 * LANE_W), jnp.float32)
    b4 = b4.at[:, :ACTION_DIM].set(params["b4m"])
    b4 = b4.at[:, LANE_W:LANE_W + ACTION_DIM].set(params["b4s"])
    return {
        "w1": params["w1"].astype(jnp.bfloat16), "b1": params["b1"],
        "w2": params["w2"].astype(jnp.bfloat16), "b2": params["b2"],
        "w3": params["w3"].astype(jnp.bfloat16), "b3": params["b3"],
        "w4": w4.astype(jnp.bfloat16), "b4": b4,
    }


def tanh_gaussian_policy_forward(obs, kparams, eps, tile_b=TILE_B):
    B = obs.shape[0]
    n_tiles = pl.cdiv(B, tile_b)
    Bp = n_tiles * tile_b
    if Bp != B:
        obs = jnp.pad(obs, ((0, Bp - B), (0, 0)))
        eps = jnp.pad(eps, ((0, Bp - B), (0, 0)))
    # lane-pad eps so the whole tail runs at the packed 128-lane layout
    eps128 = jnp.pad(eps, ((0, 0), (0, LANE_W - ACTION_DIM)))

    def batch_spec(shape):
        return pl.BlockSpec(shape, lambda i: (i, 0))

    def const_spec(shape):
        # constant block index -> weight stays resident in VMEM across steps
        return pl.BlockSpec(shape, lambda i: (0, 0))

    packed = pl.pallas_call(
        policy_kernel,
        out_shape=jax.ShapeDtypeStruct((Bp, LANE_W), jnp.float32),
        grid=(n_tiles,),
        in_specs=[
            batch_spec((tile_b, STATE_DIM)),
            const_spec((STATE_DIM, HIDDEN)), const_spec((1, HIDDEN)),
            const_spec((HIDDEN, HIDDEN)), const_spec((1, HIDDEN)),
            const_spec((HIDDEN, HIDDEN)), const_spec((1, HIDDEN)),
            const_spec((HIDDEN, 2 * LANE_W)), const_spec((1, 2 * LANE_W)),
            batch_spec((tile_b, LANE_W)),
        ],
        out_specs=batch_spec((tile_b, LANE_W)),
        compiler_params=pltpu.CompilerParams(
            dimension_semantics=("parallel",)),
    )(obs, kparams["w1"], kparams["b1"], kparams["w2"], kparams["b2"],
      kparams["w3"], kparams["b3"], kparams["w4"], kparams["b4"], eps128)

    actions = packed[:B, :ACTION_DIM]
    log_probs = packed[:B, ACTION_DIM]
    return actions, log_probs


def reference_forward(obs, params, eps):
    # plain-JAX reference with the same bf16-matmul / f32-tail dtype path
    def mm(a, w):
        return jnp.dot(a.astype(jnp.bfloat16), w.astype(jnp.bfloat16),
                       preferred_element_type=jnp.float32)
    h = jnp.maximum(mm(obs, params["w1"]) + params["b1"], 0.0)
    h = jnp.maximum(mm(h, params["w2"]) + params["b2"], 0.0)
    h = jnp.maximum(mm(h, params["w3"]) + params["b3"], 0.0)
    mean = mm(h, params["w4m"]) + params["b4m"]
    log_std = mm(h, params["w4s"]) + params["b4s"]
    log_std = jnp.clip(LOG_STD_MULTIPLIER * log_std + LOG_STD_OFFSET,
                       LOG_STD_MIN, LOG_STD_MAX)
    std = jnp.exp(log_std)
    pre = mean if DETERMINISTIC else mean + std * eps
    action = jnp.tanh(pre)
    normal_lp = -0.5 * ((pre - mean) / std) ** 2 - log_std - 0.5 * LOG_2PI
    tanh_jac = 2.0 * (LOG_2 - pre - jax.nn.softplus(-2.0 * pre))
    return MAX_ACTION * action, jnp.sum(normal_lp - tanh_jac, axis=-1)


def init_params(key):
    # deterministic synthetic init; last layer mimics xavier_uniform(gain=0.01)
    ks = jax.random.split(key, 8)

    def uniform_fan(k, fan_in, fan_out, scale):
        bound = scale / np.sqrt(fan_in)
        return jax.random.uniform(k, (fan_in, fan_out), jnp.float32, -bound, bound)

    xavier_bound = 0.01 * np.sqrt(6.0 / (HIDDEN + 2 * ACTION_DIM))
    params = {
        "w1": uniform_fan(ks[0], STATE_DIM, HIDDEN, 1.0),
        "b1": jnp.zeros((1, HIDDEN), jnp.float32),
        "w2": uniform_fan(ks[1], HIDDEN, HIDDEN, 1.0),
        "b2": jnp.zeros((1, HIDDEN), jnp.float32),
        "w3": uniform_fan(ks[2], HIDDEN, HIDDEN, 1.0),
        "b3": jnp.zeros((1, HIDDEN), jnp.float32),
        "w4m": jax.random.uniform(ks[3], (HIDDEN, ACTION_DIM), jnp.float32,
                                  -xavier_bound, xavier_bound),
        "b4m": jax.random.uniform(ks[4], (1, ACTION_DIM), jnp.float32, -0.01, 0.01),
        "w4s": jax.random.uniform(ks[5], (HIDDEN, ACTION_DIM), jnp.float32,
                                  -xavier_bound, xavier_bound),
        "b4s": jax.random.uniform(ks[6], (1, ACTION_DIM), jnp.float32, -0.01, 0.01),
    }
    return params


if __name__ == "__main__":
    key = jax.random.PRNGKey(0)
    pkey, okey, ekey = jax.random.split(key, 3)

    params = init_params(pkey)
    kparams = prepare_kernel_params(params)

    # batch several policy evaluations per call (amortizes launch/DMA overhead);
    # 512 rows -> a 2-step parallel grid with TILE_B=256.
    B = 512
    obs = jax.random.normal(okey, (B, STATE_DIM), jnp.float32)
    eps = jax.random.normal(ekey, (B, ACTION_DIM), jnp.float32)  # rsample noise

    actions, log_probs = tanh_gaussian_policy_forward(obs, kparams, eps)
    jax.block_until_ready((actions, log_probs))

    ref_actions, ref_log_probs = reference_forward(obs, params, eps)
    assert actions.shape == (B, ACTION_DIM)
    assert log_probs.shape == (B,)
    np.testing.assert_allclose(np.asarray(actions), np.asarray(ref_actions),
                               rtol=1e-3, atol=1e-3)
    np.testing.assert_allclose(np.asarray(log_probs), np.asarray(ref_log_probs),
                               rtol=1e-3, atol=2e-3)
    print("KERNEL_OK")
</pallas_src>

<mosaic_0001>
module attributes {stable_mosaic.version = 11 : i64} {
  func.func @policy_kernel(%arg0: i32, %arg1: memref<256x32xf32, #tpu.memory_space<vmem>>, %arg2: memref<32x256xbf16, #tpu.memory_space<vmem>>, %arg3: memref<1x256xf32, #tpu.memory_space<vmem>>, %arg4: memref<256x256xbf16, #tpu.memory_space<vmem>>, %arg5: memref<1x256xf32, #tpu.memory_space<vmem>>, %arg6: memref<256x256xbf16, #tpu.memory_space<vmem>>, %arg7: memref<1x256xf32, #tpu.memory_space<vmem>>, %arg8: memref<256x256xbf16, #tpu.memory_space<vmem>>, %arg9: memref<1x256xf32, #tpu.memory_space<vmem>>, %arg10: memref<256x128xf32, #tpu.memory_space<vmem>>, %arg11: memref<256x128xf32, #tpu.memory_space<vmem>>) attributes {dimension_semantics = [#tpu.dimension_semantics<parallel>], iteration_bounds = array<i64: 2>, scalar_prefetch = 0 : i64, scratch_operands = 0 : i64, tpu.core_type = #tpu.core_type<tc>, window_params = [{transform_indices = @transform_0, window_bounds = array<i64: 256, 32>}, {pipeline_mode = #tpu.pipeline_mode<synchronous>, transform_indices = @transform_1, window_bounds = array<i64: 32, 256>}, {pipeline_mode = #tpu.pipeline_mode<synchronous>, transform_indices = @transform_2, window_bounds = array<i64: 1, 256>}, {pipeline_mode = #tpu.pipeline_mode<synchronous>, transform_indices = @transform_3, window_bounds = array<i64: 256, 256>}, {pipeline_mode = #tpu.pipeline_mode<synchronous>, transform_indices = @transform_4, window_bounds = array<i64: 1, 256>}, {pipeline_mode = #tpu.pipeline_mode<synchronous>, transform_indices = @transform_5, window_bounds = array<i64: 256, 256>}, {pipeline_mode = #tpu.pipeline_mode<synchronous>, transform_indices = @transform_6, window_bounds = array<i64: 1, 256>}, {pipeline_mode = #tpu.pipeline_mode<synchronous>, transform_indices = @transform_7, window_bounds = array<i64: 256, 256>}, {pipeline_mode = #tpu.pipeline_mode<synchronous>, transform_indices = @transform_8, window_bounds = array<i64: 1, 256>}, {transform_indices = @transform_9, window_bounds = array<i64: 256, 128>}, {transform_indices = @transform_10, window_bounds = array<i64: 256, 128>}]} {
    %c0 = arith.constant 0 : index
    %c0_0 = arith.constant 0 : index
    %0 = vector.load %arg1[%c0, %c0_0] : memref<256x32xf32, #tpu.memory_space<vmem>>, vector<256x32xf32>
    %1 = arith.truncf %0 : vector<256x32xf32> to vector<256x32xbf16>
    %c0_1 = arith.constant 0 : index
    %c0_2 = arith.constant 0 : index
    %2 = vector.load %arg2[%c0_1, %c0_2] : memref<32x256xbf16, #tpu.memory_space<vmem>>, vector<32x256xbf16>
    %cst = arith.constant dense<0.000000e+00> : vector<256x256xf32>
    %3 = tpu.matmul %1, %2, %cst {dimension_numbers = #tpu.dot_dimension_numbers<[1], [0], [0], [1], [0, 0, 1, 1], [], []>} : vector<256x32xbf16>, vector<32x256xbf16>, vector<256x256xf32> -> vector<256x256xf32>
    %c0_3 = arith.constant 0 : index
    %c0_4 = arith.constant 0 : index
    %4 = vector.load %arg3[%c0_3, %c0_4] : memref<1x256xf32, #tpu.memory_space<vmem>>, vector<1x256xf32>
    %5 = vector.broadcast %4 : vector<1x256xf32> to vector<256x256xf32>
    %6 = arith.addf %3, %5 : vector<256x256xf32>
    %cst_5 = arith.constant 0.000000e+00 : f32
    %7 = vector.broadcast %cst_5 : f32 to vector<256x256xf32>
    %8 = arith.maximumf %6, %7 : vector<256x256xf32>
    %9 = arith.truncf %8 : vector<256x256xf32> to vector<256x256xbf16>
    %c0_6 = arith.constant 0 : index
    %c0_7 = arith.constant 0 : index
    %10 = vector.load %arg4[%c0_6, %c0_7] : memref<256x256xbf16, #tpu.memory_space<vmem>>, vector<256x256xbf16>
    %cst_8 = arith.constant dense<0.000000e+00> : vector<256x256xf32>
    %11 = tpu.matmul %9, %10, %cst_8 {dimension_numbers = #tpu.dot_dimension_numbers<[1], [0], [0], [1], [0, 0, 1, 1], [], []>} : vector<256x256xbf16>, vector<256x256xbf16>, vector<256x256xf32> -> vector<256x256xf32>
    %c0_9 = arith.constant 0 : index
    %c0_10 = arith.constant 0 : index
    %12 = vector.load %arg5[%c0_9, %c0_10] : memref<1x256xf32, #tpu.memory_space<vmem>>, vector<1x256xf32>
    %13 = vector.broadcast %12 : vector<1x256xf32> to vector<256x256xf32>
    %14 = arith.addf %11, %13 : vector<256x256xf32>
    %cst_11 = arith.constant 0.000000e+00 : f32
    %15 = vector.broadcast %cst_11 : f32 to vector<256x256xf32>
    %16 = arith.maximumf %14, %15 : vector<256x256xf32>
    %17 = arith.truncf %16 : vector<256x256xf32> to vector<256x256xbf16>
    %c0_12 = arith.constant 0 : index
    %c0_13 = arith.constant 0 : index
    %18 = vector.load %arg6[%c0_12, %c0_13] : memref<256x256xbf16, #tpu.memory_space<vmem>>, vector<256x256xbf16>
    %cst_14 = arith.constant dense<0.000000e+00> : vector<256x256xf32>
    %19 = tpu.matmul %17, %18, %cst_14 {dimension_numbers = #tpu.dot_dimension_numbers<[1], [0], [0], [1], [0, 0, 1, 1], [], []>} : vector<256x256xbf16>, vector<256x256xbf16>, vector<256x256xf32> -> vector<256x256xf32>
    %c0_15 = arith.constant 0 : index
    %c0_16 = arith.constant 0 : index
    %20 = vector.load %arg7[%c0_15, %c0_16] : memref<1x256xf32, #tpu.memory_space<vmem>>, vector<1x256xf32>
    %21 = vector.broadcast %20 : vector<1x256xf32> to vector<256x256xf32>
    %22 = arith.addf %19, %21 : vector<256x256xf32>
    %cst_17 = arith.constant 0.000000e+00 : f32
    %23 = vector.broadcast %cst_17 : f32 to vector<256x256xf32>
    %24 = arith.maximumf %22, %23 : vector<256x256xf32>
    %25 = arith.truncf %24 : vector<256x256xf32> to vector<256x256xbf16>
    %c0_18 = arith.constant 0 : index
    %c0_19 = arith.constant 0 : index
    %26 = vector.load %arg8[%c0_18, %c0_19] : memref<256x256xbf16, #tpu.memory_space<vmem>>, vector<256x256xbf16>
    %cst_20 = arith.constant dense<0.000000e+00> : vector<256x256xf32>
    %27 = tpu.matmul %25, %26, %cst_20 {dimension_numbers = #tpu.dot_dimension_numbers<[1], [0], [0], [1], [0, 0, 1, 1], [], []>} : vector<256x256xbf16>, vector<256x256xbf16>, vector<256x256xf32> -> vector<256x256xf32>
    %c0_21 = arith.constant 0 : index
    %c0_22 = arith.constant 0 : index
    %28 = vector.load %arg9[%c0_21, %c0_22] : memref<1x256xf32, #tpu.memory_space<vmem>>, vector<1x256xf32>
    %29 = vector.broadcast %28 : vector<1x256xf32> to vector<256x256xf32>
    %30 = arith.addf %27, %29 : vector<256x256xf32>
    %31 = vector.extract_strided_slice %30 {offsets = [0, 0], sizes = [256, 128], strides = [1, 1]} : vector<256x256xf32> to vector<256x128xf32>
    %32 = vector.extract_strided_slice %30 {offsets = [0, 128], sizes = [256, 128], strides = [1, 1]} : vector<256x256xf32> to vector<256x128xf32>
    %cst_23 = arith.constant 1.000000e+00 : f32
    %33 = vector.broadcast %cst_23 : f32 to vector<256x128xf32>
    %34 = arith.mulf %33, %32 : vector<256x128xf32>
    %cst_24 = arith.constant -1.000000e+00 : f32
    %35 = vector.broadcast %cst_24 : f32 to vector<256x128xf32>
    %36 = arith.addf %34, %35 : vector<256x128xf32>
    %cst_25 = arith.constant -2.000000e+01 : f32
    %cst_26 = arith.constant 2.000000e+00 : f32
    %37 = vector.broadcast %cst_25 : f32 to vector<256x128xf32>
    %38 = arith.maximumf %37, %36 : vector<256x128xf32>
    %39 = vector.broadcast %cst_26 : f32 to vector<256x128xf32>
    %40 = arith.minimumf %39, %38 : vector<256x128xf32>
    %41 = math.exp %40 : vector<256x128xf32>
    %c0_27 = arith.constant 0 : index
    %c0_28 = arith.constant 0 : index
    %42 = vector.load %arg10[%c0_27, %c0_28] : memref<256x128xf32, #tpu.memory_space<vmem>>, vector<256x128xf32>
    %43 = arith.mulf %41, %42 : vector<256x128xf32>
    %44 = arith.addf %31, %43 : vector<256x128xf32>
    %45 = arith.mulf %42, %42 : vector<256x128xf32>
    %46 = math.tanh %44 : vector<256x128xf32>
    %cst_29 = arith.constant -5.000000e-01 : f32
    %47 = vector.broadcast %cst_29 : f32 to vector<256x128xf32>
    %48 = arith.mulf %47, %45 : vector<256x128xf32>
    %49 = arith.subf %48, %40 : vector<256x128xf32>
    %cst_30 = arith.constant 0.918938517 : f32
    %50 = vector.broadcast %cst_30 : f32 to vector<256x128xf32>
    %51 = arith.subf %49, %50 : vector<256x128xf32>
    %cst_31 = arith.constant 0.693147182 : f32
    %52 = vector.broadcast %cst_31 : f32 to vector<256x128xf32>
    %53 = arith.subf %52, %44 : vector<256x128xf32>
    %cst_32 = arith.constant -2.000000e+00 : f32
    %54 = vector.broadcast %cst_32 : f32 to vector<256x128xf32>
    %55 = arith.mulf %54, %44 : vector<256x128xf32>
    %cst_33 = arith.constant 0.000000e+00 : f32
    %56 = vector.broadcast %cst_33 : f32 to vector<256x128xf32>
    %57 = arith.maximumf %55, %56 : vector<256x128xf32>
    %58 = math.absf %55 : vector<256x128xf32>
    %cst_34 = arith.constant 0.000000e+00 : f32
    %59 = vector.broadcast %cst_34 : f32 to vector<256x128xf32>
    %60 = arith.subf %59, %58 : vector<256x128xf32>
    %61 = math.exp %60 : vector<256x128xf32>
    %62 = math.log1p %61 : vector<256x128xf32>
    %63 = arith.addf %57, %62 : vector<256x128xf32>
    %64 = arith.subf %53, %63 : vector<256x128xf32>
    %cst_35 = arith.constant 2.000000e+00 : f32
    %65 = vector.broadcast %cst_35 : f32 to vector<256x128xf32>
    %66 = arith.mulf %65, %64 : vector<256x128xf32>
    %67 = arith.subf %51, %66 : vector<256x128xf32>
    %68 = tpu.iota {dimensions = array<i32: 1>} : vector<256x128xi32>
    %c8_i32 = arith.constant 8 : i32
    %69 = vector.broadcast %c8_i32 : i32 to vector<256x128xi32>
    %70 = arith.cmpi slt, %68, %69 : vector<256x128xi32>
    %cst_36 = arith.constant 0.000000e+00 : f32
    %71 = vector.broadcast %cst_36 : f32 to vector<256x128xf32>
    %72 = arith.select %70, %67, %71 : vector<256x128xi1>, vector<256x128xf32>
    %cst_37 = arith.constant dense<0.000000e+00> : vector<256xf32>
    %73 = vector.multi_reduction <add>, %72, %cst_37 [1] : vector<256x128xf32> to vector<256xf32>
    %74 = vector.shape_cast %73 : vector<256xf32> to vector<256x1xf32>
    %75 = vector.shape_cast %74 : vector<256x1xf32> to vector<256x1xf32>
    %76 = vector.broadcast %75 : vector<256x1xf32> to vector<256x128xf32>
    %cst_38 = arith.constant 2.000000e+00 : f32
    %77 = vector.broadcast %cst_38 : f32 to vector<256x128xf32>
    %78 = arith.mulf %77, %46 : vector<256x128xf32>
    %c8_i32_39 = arith.constant 8 : i32
    %79 = vector.broadcast %c8_i32_39 : i32 to vector<256x128xi32>
    %80 = arith.cmpi eq, %68, %79 : vector<256x128xi32>
    %cst_40 = arith.constant 0.000000e+00 : f32
    %81 = vector.broadcast %cst_40 : f32 to vector<256x128xf32>
    %82 = arith.select %80, %76, %81 : vector<256x128xi1>, vector<256x128xf32>
    %83 = arith.select %70, %78, %82 : vector<256x128xi1>, vector<256x128xf32>
    %c0_41 = arith.constant 0 : index
    %c0_42 = arith.constant 0 : index
    %84 = vector.load %arg11[%c0_41, %c0_42] : memref<256x128xf32, #tpu.memory_space<vmem>>, vector<256x128xf32>
    tpu.vector_store %arg11[%c0_41, %c0_42], %83 {strides = array<i32>} : memref<256x128xf32, #tpu.memory_space<vmem>>, vector<256x128xf32>,
    return
  }
  func.func @transform_0(%arg0: i32) -> (i32, i32) {
    %c0_i32 = arith.constant 0 : i32
    %c0_i32_0 = arith.constant 0 : i32
    return %arg0, %c0_i32 : i32, i32
  }
  func.func @transform_1(%arg0: i32) -> (i32, i32) {
    %c0_i32 = arith.constant 0 : i32
    %c0_i32_0 = arith.constant 0 : i32
    %c0_i32_1 = arith.constant 0 : i32
    return %c0_i32, %c0_i32_0 : i32, i32
  }
  func.func @transform_2(%arg0: i32) -> (i32, i32) {
    %c0_i32 = arith.constant 0 : i32
    %c0_i32_0 = arith.constant 0 : i32
    %c0_i32_1 = arith.constant 0 : i32
    return %c0_i32, %c0_i32_0 : i32, i32
  }
  func.func @transform_3(%arg0: i32) -> (i32, i32) {
    %c0_i32 = arith.constant 0 : i32
    %c0_i32_0 = arith.constant 0 : i32
    %c0_i32_1 = arith.constant 0 : i32
    return %c0_i32, %c0_i32_0 : i32, i32
  }
  func.func @transform_4(%arg0: i32) -> (i32, i32) {
    %c0_i32 = arith.constant 0 : i32
    %c0_i32_0 = arith.constant 0 : i32
    %c0_i32_1 = arith.constant 0 : i32
    return %c0_i32, %c0_i32_0 : i32, i32
  }
  func.func @transform_5(%arg0: i32) -> (i32, i32) {
    %c0_i32 = arith.constant 0 : i32
    %c0_i32_0 = arith.constant 0 : i32
    %c0_i32_1 = arith.constant 0 : i32
    return %c0_i32, %c0_i32_0 : i32, i32
  }
  func.func @transform_6(%arg0: i32) -> (i32, i32) {
    %c0_i32 = arith.constant 0 : i32
    %c0_i32_0 = arith.constant 0 : i32
    %c0_i32_1 = arith.constant 0 : i32
    return %c0_i32, %c0_i32_0 : i32, i32
  }
  func.func @transform_7(%arg0: i32) -> (i32, i32) {
    %c0_i32 = arith.constant 0 : i32
    %c0_i32_0 = arith.constant 0 : i32
    %c0_i32_1 = arith.constant 0 : i32
    return %c0_i32, %c0_i32_0 : i32, i32
  }
  func.func @transform_8(%arg0: i32) -> (i32, i32) {
    %c0_i32 = arith.constant 0 : i32
    %c0_i32_0 = arith.constant 0 : i32
    %c0_i32_1 = arith.constant 0 : i32
    return %c0_i32, %c0_i32_0 : i32, i32
  }
  func.func @transform_9(%arg0: i32) -> (i32, i32) {
    %c0_i32 = arith.constant 0 : i32
    %c0_i32_0 = arith.constant 0 : i32
    return %arg0, %c0_i32 : i32, i32
  }
  func.func @transform_10(%arg0: i32) -> (i32, i32) {
    %c0_i32 = arith.constant 0 : i32
    %c0_i32_0 = arith.constant 0 : i32
    return %arg0, %c0_i32 : i32, i32
  }
}

</mosaic_0001>

<bundles_post_ra>
// kernel: tpu_custom_call.1
= control target key start
LH: loop header
LB: loop body
LE: loop exit
PB: predicated region body
PF: predicated region fallthrough
CT: control target
= control target key end

     0   :  { %15 = vsyncpa [#allocation3], 0  ;;  %s6638_s0 = inlined_call_operand.vmem [shape: f32[512,32], index: 0, kind: input, shape index: {}]   ;;  %s6639_s1 = inlined_call_operand.vmem [shape: bf16[32,256], index: 1, kind: input, shape index: {}]   ;;  %s6640_s2 = inlined_call_operand.vmem [shape: f32[1,256], index: 2, kind: input, shape index: {}]   ;;  %s6641_s3 = inlined_call_operand.hbm [shape: bf16[256,256], index: 3, kind: input, shape index: {}]   ;;  %s6642_s4 = inlined_call_operand.vmem [shape: f32[1,256], index: 4, kind: input, shape index: {}]   ;;  %s6643_s5 = inlined_call_operand.hbm [shape: bf16[256,256], index: 5, kind: input, shape index: {}]   ;;  %s6644_s6 = inlined_call_operand.vmem [shape: f32[1,256], index: 6, kind: input, shape index: {}]   ;;  %s6645_s7 = inlined_call_operand.hbm [shape: bf16[256,256], index: 7, kind: input, shape index: {}]   ;;  %s6646_s8 = inlined_call_operand.vmem [shape: f32[1,256], index: 8, kind: input, shape index: {}]   ;;  %s6647_s9 = inlined_call_operand.vmem [shape: f32[512,128], index: 9, kind: input, shape index: {}]   ;;  %s6648_s10 = inlined_call_operand.hbm [shape: f32[512,128], index: 10, kind: output, shape index: {}]  }
   0x1   :  { %16 = vsyncpa [#allocation6], 0 }
   0x2   :  { %17 = vsyncpa [#allocation4], 0 }
   0x3   :  { %19 = vsyncpa [#allocation4 + $0x1], 0  ;;  %s4538_s13 = smov 0   ;;  %s4540_s14 = smov 0  }
   0x4   :  { %s4542_s15 = smov 0   ;;  %s4544_s16 = smov 0  }
   0x5 LB: > { %6736 = sst [smem:[#allocation12_spill]] %s4460_s13  ;;  %s4559_s17 = sadd.s32 4294967295, %s4472_s16   ;;  %s4472_s16 = sphi %s4544_s16, %s6991_s16   ;;  %s4468_s15 = sphi %s4542_s15, %s6993_s15   ;;  %s4464_s14 = sphi %s4540_s14, %s6995_s14   ;;  %s4460_s13 = sphi %s4538_s13, %s6994_s13  }
   0x6   : > { %6737 = sst [smem:[#allocation13_spill]] %s4468_s15  ;;  %s3636_s18 = sadd.s32 4294967294, %s4472_s16  }
   0x7   : > { %6738 = sst [smem:[#allocation14_spill]] %s4472_s16  ;;  %s4563_s19 = sadd.s32 1, %s4472_s16  }
   0x8   : > { %6739 = sst [smem:[#allocation15_spill]] %s4563_s19  ;;  %s252_s20 = sadd.s32 1, %s4468_s15 }
   0x9   : > { %s249_s21 = ssub.s32 %s4472_s16, %s4563_s19  ;;  %p262_p0 = scmp.ne.s32.totalorder %s4468_s15, %s4464_s14 }
   0xa   : > { %p250_p1 = scmp.eq.s32.totalorder %s249_s21, 0  ;;  %p263_p2 = scmp.eq.s32.totalorder %s4559_s17, 1 }
   0xb   : > { %p268_p3 = scmp.ne.s32.totalorder %s4464_s14, %s4460_s13  ;;  %p269_p4 = scmp.eq.s32.totalorder %s3636_s18, 1 }
   0xc   : > { %s4574_s22 = scalar_select %p250_p1, %s4468_s15, %s252_s20  }
   0xd   : > { %p4576_p5 = por %p263_p2, %p262_p0  ;;  %p4580_p6 = por %p269_p4, %p268_p3 }
   0xe   : > { %6740 = sst [smem:[#allocation16_spill]] %s4574_s22  ;;  %p3637_p7 = scmp.ge.s32.totalorder %s4472_s16, 1 }
   0xf   : > { %s6741_s23 = scalar_select %p4576_p5, 1, 0 }
  0x10   : > { %s6742_s24 = scalar_select %p4580_p6, 1, 0 }
  0x11   : > { %p276_p8 = scmp.lt.s32.totalorder %s4472_s16, 3  ;;  %p6650_p9 = scmp.eq.s32.totalorder %s4559_s17, 0 }
  0x12   : > { %6743 = sst [smem:[#allocation17_spill]] %s6742_s24  ;;  %s4474_s26 = smov [#allocation5]  }
  0x13   : > { %p4587_p10 = pnand %p3637_p7, %p276_p8  ;;  %s310_s27 = sshll.u32 %s4474_s26, 4  ;;  %s4593_s27 = int_to_ptr.vmem [resolvable:$true] %s310_s27 }
  0x14   : > { %s4475_s29 = smov [#allocation2]   ;;  %s4476_s11 = smov [#allocation7]  }
  0x15   : > { %s6744_s25 = scalar_select %p4587_p10, 1, 0 }
  0x16   : > { %p3851_p11 = pneg %p4587_p10  ;;  %s294_s30 = sshll.u32 %s4475_s29, 4  ;;  %s4601_s30 = int_to_ptr.vmem [resolvable:$true] %s294_s30 }
  0x17   : > { %s4603_s12 = sshll.u32 %s4476_s11, 4  ;;  %s4318_s21 = scalar_lea.hbm %s6643_s5, 4096  ;;  %s327_s12 = int_to_ptr.vmem [resolvable:$true] %s4603_s12 }
  0x18   : > { %p4597_p12 = pnand %p6650_p9, %p3851_p11  ;;  %p4319_p13 = scmp.ne.s32.totalorder %s6643_s5, %s4318_s21 }
  0x19   : > { %p4325_p3 = scmp.lt.u32.totalorder %s4318_s21, %s6643_s5 }
  0x1a   : > { %p4613_p0 = pneg %p4597_p12 }
  0x1c   : > { %p4321_p1 = pnand %p4613_p0, %p4319_p13 }
  0x1e   : > { %p4322_p2 = pneg %p4321_p1 }
  0x20   : > { %p4327_p4 = pnand %p4325_p3, %p4322_p2 }
  0x22   : > { %4330 = shalt.err (!%p4327_p4)
}
  0x23   : > { %s4331_s22 = scalar_lea.vmem %s4593_s27, 4096  ;;  %p4339_p9 = scmp.lt.s32.totalorder %s4593_s27, %s4593_s27 }
  0x24   : > { %p4332_p7 = scmp.ne.s32.totalorder %s4593_s27, %s4331_s22  ;;  %p4340_p6 = scmp.lt.s32.totalorder %s4331_s22, %s4331_s22 }
  0x26   : > { %p4334_p8 = pnand %p4332_p7, %p4613_p0  ;;  %p4341_p13 = por %p4340_p6, %p4339_p9 }
  0x28   : > { %p4335_p11 = pneg %p4334_p8 }
  0x2a   : > { %p4342_p1 = pnand %p4341_p13, %p4335_p11 }
  0x2c   : > { %4345 = shalt.err (!%p4342_p1)
}
  0x2d   : > { %s4477_s18 = smov 128   ;;  %s4478_s20 = smov 8  }
  0x2e   : > { %3857 = dma.hbm_to_vmem [thread:$0]  (!%p4597_p12), %s6643_s5, 4096, %s4593_s27, [#allocation6], %s4477_s18, %s4477_s18, %s4478_s20  }
  0x2f   : > { %s4346_s22 = scalar_lea.hbm %s6641_s3, 4096 }
  0x30   : > { %p4347_p6 = scmp.ne.s32.totalorder %s6641_s3, %s4346_s22  ;;  %p4353_p3 = scmp.lt.u32.totalorder %s4346_s22, %s6641_s3 }
  0x32   : > { %p4349_p9 = pnand %p4347_p6, %p4613_p0 }
  0x34   : > { %p4350_p2 = pneg %p4349_p9 }
  0x36   : > { %p4355_p4 = pnand %p4353_p3, %p4350_p2 }
  0x38   : > { %4358 = shalt.err (!%p4355_p4)
}
  0x39   : > { %s4359_s27 = scalar_lea.vmem %s4601_s30, 4096  ;;  %p4367_p13 = scmp.lt.s32.totalorder %s4601_s30, %s4601_s30 }
  0x3a   : > { %p4360_p7 = scmp.ne.s32.totalorder %s4601_s30, %s4359_s27  ;;  %p4368_p1 = scmp.lt.s32.totalorder %s4359_s27, %s4359_s27 }
  0x3c   : > { %p4362_p8 = pnand %p4360_p7, %p4613_p0  ;;  %p4369_p6 = por %p4368_p1, %p4367_p13 }
  0x3e   : > { %p4363_p11 = pneg %p4362_p8 }
  0x40   : > { %p4370_p9 = pnand %p4369_p6, %p4363_p11 }
  0x42   : > { %4373 = shalt.err (!%p4370_p9)
}
  0x43   : > { %3854 = dma.hbm_to_vmem [thread:$0]  (!%p4597_p12), %s6641_s3, 4096, %s4601_s30, [#allocation3], %s4477_s18, %s4477_s18, %s4478_s20  }
  0x44   : > { %s4374_s21 = scalar_lea.hbm %s6645_s7, 4096 }
  0x45   : > { %p4375_p2 = scmp.ne.s32.totalorder %s6645_s7, %s4374_s21  ;;  %p4381_p7 = scmp.lt.u32.totalorder %s4374_s21, %s6645_s7 }
  0x47   : > { %p4377_p3 = pnand %p4375_p2, %p4613_p0 }
  0x49   : > { %p4378_p4 = pneg %p4377_p3 }
  0x4b   : > { %p4383_p8 = pnand %p4381_p7, %p4378_p4 }
  0x4d   : > { %4386 = shalt.err (!%p4383_p8)
}
  0x4e   : > { %s4387_s27 = scalar_lea.vmem %s327_s12, 4096  ;;  %p4395_p6 = scmp.lt.s32.totalorder %s327_s12, %s327_s12 }
  0x4f   : > { %p4388_p11 = scmp.ne.s32.totalorder %s327_s12, %s4387_s27  ;;  %p4396_p9 = scmp.lt.s32.totalorder %s4387_s27, %s4387_s27 }
  0x51   : > { %p4390_p13 = pnand %p4388_p11, %p4613_p0  ;;  %p4397_p5 = por %p4396_p9, %p4395_p6 }
  0x53   : > { %p4391_p1 = pneg %p4390_p13 }
  0x55   : > { %p4398_p10 = pnand %p4397_p5, %p4391_p1 }
  0x57   : > { %4401 = shalt.err (!%p4398_p10)
}
  0x58   : > { %3860 = dma.hbm_to_vmem [thread:$0]  (!%p4597_p12), %s6645_s7, 4096, %s327_s12, [#allocation6], %s4477_s18, %s4477_s18, %s4478_s20  }
  0x59   : > { %p6747_p2 = scmp.ne.s32.totalorder %s6744_s25, 0 }
  0x5b   : > { %363 = sbr.rel (%p6747_p2) target bundleno = 1447 (0x5a7), region = 60 }
  0x62   : > { %p6748_p0 = scmp.eq.s32.totalorder %s4559_s17, 0 }
  0x64   : > { %4447 = dma.done.wait (%p6748_p0), [#allocation3], 4096   ;;  %p6749_p3 = pmov %p6748_p0 }
  0x65   : > { %p6750_p5 = pmov %p6748_p0 }
  0x66   : > { %4449 = vsyncadd (%p6749_p3), [#allocation3], 4294963200 }
  0x67   : > { %4451 = dma.done.wait (%p6750_p5), [#allocation6], 8192   ;;  %p6751_p10 = pmov %p6748_p0 }
  0x68   : > { %s3647_s15 = sshll.u32 %s4559_s17, 5  ;;  %v4479_v0 = vmov 0   ;;  %v3912_v1 = vld [vmem:[%s6639_s1 + $0x4] ss:$8 sps:$4 sm:$0xff]   ;;  %v3914_v2 = vld [vmem:[%s6639_s1] ss:$8 sps:$4 sm:$0xff]  }
  0x69   : > { %4453 = vsyncadd (%p6751_p10), [#allocation6], 4294959104  ;;  %593 = vmatprep.mubr.bf16.mxu0 %v4479_v0  ;;  %p415_p12 = scmp.lt.s32.totalorder %s3647_s15, 63  ;;  %561 = vmatprep.subr.bf16.mxu0 %v3912_v1  ;;  %v3915_v3 = vld [vmem:[%s6639_s1 + $0x14] ss:$8 sps:$4 sm:$0xff]   ;;  %vm512_vm0 = vcmask 261120  }
  0x6a   : > { %562 = vmatpush1.bf16.msra.mxu0 %v3914_v2  ;;  %v3917_v4 = vld [vmem:[%s6639_s1 + $0x10] ss:$8 sps:$4 sm:$0xff]   ;;  %v3918_v11 = vld [vmem:[#allocation2 + $0x4] ss:$8 sps:$4 sm:$0xff]   ;;  %v3920_v12 = vld [vmem:[#allocation2] ss:$8 sps:$4 sm:$0xff]  }
  0x6b   : > { %s6997_s15 = smov (!%p415_p12, %s3647_s15), 63  ;;  %563 = vmatprep.subr.bf16.mxu0 %v3915_v3  ;;  %v3921_v13 = vld [vmem:[#allocation2 + $0x14] ss:$8 sps:$4 sm:$0xff]   ;;  %1054 = vmatprep.subr.bf16.mxu1 %v3918_v11  ;;  %v3923_v14 = vld [vmem:[#allocation2 + $0x10] ss:$8 sps:$4 sm:$0xff]   ;;  %s3804_s26 = sshll.u32 %s4559_s17, 12 }
  0x6c   : > { %s3648_s25 = sshll.u32 %s6997_s15, 3  ;;  %1055 = vmatpush1.bf16.msra.mxu1 %v3920_v12  ;;  %v3924_v15 = vld [vmem:[#allocation2 + $0x24] ss:$8 sps:$4 sm:$0xff]   ;;  %v3926_v18 = vld [vmem:[#allocation2 + $0x20] ss:$8 sps:$4 sm:$0xff]   ;;  %s411_s15 = sand.u32 1, %s4464_s14  }
  0x6d   : > { %s4708_s16 = scalar_lea.vmem %s6638_s0, %s3648_s25  ;;  %1056 = vmatprep.subr.bf16.mxu1 %v3921_v13  ;;  %v3927_v20 = vld [vmem:[#allocation2 + $0x34] ss:$8 sps:$4 sm:$0xff]   ;;  %v3929_v21 = vld [vmem:[#allocation2 + $0x30] ss:$8 sps:$4 sm:$0xff]   ;;  %v3930_v22 = vld [vmem:[#allocation2 + $0x44] ss:$8 sps:$4 sm:$0xff]   ;;  %s5017_s24 = scalar_lea.vmem %s6647_s9, %s3648_s25 }
  0x6e   : > { %v428_v5 = vld [vmem:[%s4708_s16] sm:$0xff]  ;;  %v429_v6 = vld [vmem:[%s4708_s16 + $0x8] sm:$0xff]  ;;  %564 = vmatpush1.bf16.msra.mxu0 %v3917_v4  ;;  %v430_v8 = vld [vmem:[%s4708_s16 + $0x10] sm:$0xff]  ;;  %s6273_s25 = sshll.u32 %s411_s15, 8  ;;  %s6586_s27 = scalar_lea.hbm %s6648_s10, %s3804_s26 }
  0x6f   : > { %v460_v7 = vpack.c.bf16 %v429_v6, %v428_v5  ;;  %v431_v9 = vld [vmem:[%s4708_s16 + $0x18] sm:$0xff]  ;;  %v432_v16 = vld [vmem:[%s4708_s16 + $0x20] sm:$0xff]  ;;  %v433_v17 = vld [vmem:[%s4708_s16 + $0x28] sm:$0xff]  ;;  %s6305_s21 = scalar_lea.vmem [#allocation8], %s6273_s25  ;;  %s6597_s17 = scalar_lea.sflag [#allocation4], %s411_s15 }
  0x70   : > { %v461_v10 = vpack.c.bf16 %v431_v9, %v430_v8  ;;  %1057 = vmatpush1.bf16.msra.mxu1 %v3923_v14  ;;  %v462_v19 = vpack.c.bf16 %v433_v17, %v432_v16  ;;  %v434_v23 = vld [vmem:[%s4708_s16 + $0x30] sm:$0xff]  ;;  %v435_v24 = vld [vmem:[%s4708_s16 + $0x38] sm:$0xff]  ;;  %v3932_v25 = vld [vmem:[#allocation2 + $0x40] ss:$8 sps:$4 sm:$0xff]   ;;  %s3531_s29 = sshll.u32 %s6305_s21, 4  ;;  %p6986_p7 = scmp.ne.s32.totalorder %s6741_s23, 0  ;;  %s6588_s29 = int_to_ptr.vmem [resolvable:$true] %s3531_s29 }
  0x71   : > { %3655 = vmatmul.mubr.msk.bf16.vlgmr.msra.gmra.mrb[0].mxu0 %vm512_vm0, %v460_v7  ;;  %1058 = vmatprep.subr.bf16.mxu1 %v3924_v15  ;;  %v463_v26 = vpack.c.bf16 %v435_v24, %v434_v23  ;;  %v3933_v27 = vld [vmem:[#allocation2 + $0x54] ss:$8 sps:$4 sm:$0xff]   ;;  %v3935_v28 = vld [vmem:[#allocation2 + $0x50] ss:$8 sps:$4 sm:$0xff]   ;;  %v3936_v29 = vld [vmem:[#allocation2 + $0x64] ss:$8 sps:$4 sm:$0xff]   ;;  %v482_v24 = vlaneseq }
  0x72   : > { %603 = vmatprep.mubr.bf16.mxu0 %v4479_v0  ;;  %v436_v30 = vld [vmem:[%s4708_s16 + $0x40] sm:$0xff]  ;;  %v437_v31 = vld [vmem:[%s4708_s16 + $0x48] sm:$0xff]  ;;  %v3939_v33 = vld [vmem:[#allocation2 + $0x74] ss:$8 sps:$4 sm:$0xff]   ;;  %s4402_s30 = scalar_lea.vmem %s6588_s29, 4096  ;;  %s4480_s13 = smov [#allocation8]  }
  0x73   : > { %v3938_v32 = vld [vmem:[#allocation2 + $0x60] ss:$8 sps:$4 sm:$0xff]   ;;  %v464_v34 = vpack.c.bf16 %v437_v31, %v436_v30  ;;  %v3941_v35 = vld [vmem:[#allocation2 + $0x70] ss:$8 sps:$4 sm:$0xff]   ;;  %v3942_v36 = vld [vmem:[#allocation2 + $0x84] ss:$8 sps:$4 sm:$0xff]   ;;  %p4403_p4 = scmp.ne.s32.totalorder %s6588_s29, %s4402_s30 }
  0x74   : > { %1059 = vmatpush1.bf16.msra.mxu1 %v3926_v18  ;;  %v438_v37 = vld [vmem:[%s4708_s16 + $0x50] sm:$0xff]  ;;  %v439_v38 = vld [vmem:[%s4708_s16 + $0x58] sm:$0xff]  ;;  %v3944_v39 = vld [vmem:[#allocation2 + $0x80] ss:$8 sps:$4 sm:$0xff]   ;;  %s4406_s28 = sshll.u32 %s4480_s13, 4  ;;  %s4407_s28 = int_to_ptr.vmem [resolvable:$false] %s4406_s28 }
  0x75   : > { %1060 = vmatprep.subr.bf16.mxu1 %v3927_v20  ;;  %v3945_v40 = vld [vmem:[#allocation2 + $0x94] ss:$8 sps:$4 sm:$0xff]   ;;  %v465_v41 = vpack.c.bf16 %v439_v38, %v438_v37  ;;  %v3947_v42 = vld [vmem:[#allocation2 + $0x90] ss:$8 sps:$4 sm:$0xff]   ;;  %v3948_v43 = vld [vmem:[#allocation2 + $0xa4] ss:$8 sps:$4 sm:$0xff]   ;;  %p4404_p8 = pnand %p4403_p4, %p6986_p7  ;;  %p4409_p13 = scmp.lt.s32.totalorder %s6588_s29, %s4407_s28 }
  0x76   : > { %v440_v44 = vld [vmem:[%s4708_s16 + $0x60] sm:$0xff]  ;;  %v441_v45 = vld [vmem:[%s4708_s16 + $0x68] sm:$0xff]  ;;  %v3951_v48 = vld [vmem:[#allocation2 + $0xb4] ss:$8 sps:$4 sm:$0xff]   ;;  %s4408_s12 = scalar_lea.vmem %s4407_s28, 8192 }
  0x77   : > { %v3950_v46 = vld [vmem:[#allocation2 + $0xa0] ss:$8 sps:$4 sm:$0xff]   ;;  %v466_v47 = vpack.c.bf16 %v441_v45, %v440_v44  ;;  %v3953_v49 = vld [vmem:[#allocation2 + $0xb0] ss:$8 sps:$4 sm:$0xff]   ;;  %v3954_v50 = vld [vmem:[#allocation2 + $0xc4] ss:$8 sps:$4 sm:$0xff]   ;;  %p4405_p11 = pneg %p4404_p8  ;;  %p4410_p1 = scmp.lt.s32.totalorder %s4408_s12, %s4402_s30 }
  0x78   : > { %1061 = vmatpush1.bf16.msra.mxu1 %v3929_v21  ;;  %v442_v51 = vld [vmem:[%s4708_s16 + $0x70] sm:$0xff]  ;;  %v443_v52 = vld [vmem:[%s4708_s16 + $0x78] sm:$0xff]  ;;  %v3956_v53 = vld [vmem:[#allocation2 + $0xc0] ss:$8 sps:$4 sm:$0xff]  }
  0x79   : > { %3656 = vmatmul.mubr.msk.bf16.gmra.mrb[4].mxu0 %vm512_vm0, %v461_v10  ;;  %1062 = vmatprep.subr.bf16.mxu1 %v3930_v22  ;;  %v467_v54 = vpack.c.bf16 %v443_v52, %v442_v51  ;;  %v3957_v55 = vld [vmem:[#allocation2 + $0xd4] ss:$8 sps:$4 sm:$0xff]   ;;  %v444_v56 = vld [vmem:[%s4708_s16 + $0x80] sm:$0xff]  ;;  %v445_v57 = vld [vmem:[%s4708_s16 + $0x88] sm:$0xff]  ;;  %p4411_p6 = por %p4410_p1, %p4409_p13 }
  0x7a   : > { %613 = vmatprep.mubr.bf16.mxu0 %v4479_v0  ;;  %v468_v58 = vpack.c.bf16 %v445_v57, %v444_v56  ;;  %v446_v59 = vld [vmem:[%s4708_s16 + $0x90] sm:$0xff]  ;;  %v447_v60 = vld [vmem:[%s4708_s16 + $0x98] sm:$0xff]  ;;  %v448_v62 = vld [vmem:[%s4708_s16 + $0xa0] sm:$0xff] }
  0x7b   : > { %v469_v61 = vpack.c.bf16 %v447_v60, %v446_v59  ;;  %v449_v63 = vld [vmem:[%s4708_s16 + $0xa8] sm:$0xff]  ;;  %v450_v2 = vld [vmem:[%s4708_s16 + $0xb0] sm:$0xff]  ;;  %v451_v3 = vld [vmem:[%s4708_s16 + $0xb8] sm:$0xff]  ;;  %p4412_p9 = pnand %p4411_p6, %p4405_p11 }
  0x7c   : > { %1063 = vmatpush1.bf16.msra.mxu1 %v3932_v25  ;;  %v470_v1 = vpack.c.bf16 %v449_v63, %v448_v62  ;;  %v3959_v4 = vld [vmem:[#allocation2 + $0xd0] ss:$8 sps:$4 sm:$0xff]   ;;  %v471_v5 = vpack.c.bf16 %v451_v3, %v450_v2  ;;  %v3960_v6 = vld [vmem:[#allocation2 + $0xe4] ss:$8 sps:$4 sm:$0xff]   ;;  %v3962_v7 = vld [vmem:[#allocation2 + $0xe0] ss:$8 sps:$4 sm:$0xff]  }
  0x7d   : > { %1064 = vmatprep.subr.bf16.mxu1 %v3933_v27  ;;  %v3963_v8 = vld [vmem:[#allocation2 + $0xf4] ss:$8 sps:$4 sm:$0xff]   ;;  %v452_v9 = vld [vmem:[%s4708_s16 + $0xc0] sm:$0xff]  ;;  %v453_v10 = vld [vmem:[%s4708_s16 + $0xc8] sm:$0xff]  ;;  %v483_v27 = vshrl.u32 %v482_v24, 7 }
  0x7e   : > { %v3965_v11 = vld [vmem:[#allocation2 + $0xf0] ss:$8 sps:$4 sm:$0xff]   ;;  %v472_v12 = vpack.c.bf16 %v453_v10, %v452_v9  ;;  %v456_v16 = vld [vmem:[%s4708_s16 + $0xe0] sm:$0xff]  ;;  %v457_v17 = vld [vmem:[%s4708_s16 + $0xe8] sm:$0xff] }
  0x7f   : > { %v454_v13 = vld [vmem:[%s4708_s16 + $0xd0] sm:$0xff]  ;;  %v455_v14 = vld [vmem:[%s4708_s16 + $0xd8] sm:$0xff]  ;;  %v474_v18 = vpack.c.bf16 %v457_v17, %v456_v16  ;;  %v3966_v22 = vld [vmem:[#allocation5] ss:$8 sps:$4 sm:$0xff]  }
  0x80   : > { %1065 = vmatpush1.bf16.msra.mxu1 %v3935_v28  ;;  %v473_v15 = vpack.c.bf16 %v455_v14, %v454_v13  ;;  %v459_v20 = vld [vmem:[%s4708_s16 + $0xf8] sm:$0xff]  ;;  %v3968_v23 = vld [vmem:[#allocation5 + $0x4] ss:$8 sps:$4 sm:$0xff]   ;;  %v4783_v28 = vsub.s32 0, %v483_v27  ;;  %v3972_v30 = vld [vmem:[#allocation5 + $0x20] ss:$8 sps:$4 sm:$0xff]  }
  0x81   : > { %3657 = vmatmul.mubr.msk.bf16.gmra.mrb[8].mxu0 %vm512_vm0, %v462_v19  ;;  %1066 = vmatprep.subr.bf16.mxu1 %v3936_v29  ;;  %v458_v19 = vld [vmem:[%s4708_s16 + $0xf0] sm:$0xff]  ;;  %v4788_v29 = vsub.s32 1, %v483_v27  ;;  %v3974_v31 = vld [vmem:[#allocation5 + $0x24] ss:$8 sps:$4 sm:$0xff]   ;;  %v3984_v62 = vld [vmem:[#allocation5 + $0x60] ss:$8 sps:$4 sm:$0xff]  }
  0x82   : > { %623 = vmatprep.mubr.bf16.mxu0 %v4479_v0  ;;  %v475_v21 = vpack.c.bf16 %v459_v20, %v458_v19  ;;  %1547 = vmatprep.subr.bf16.mxu0 %v3968_v23  ;;  %v3969_v25 = vld [vmem:[#allocation5 + $0x10] ss:$8 sps:$4 sm:$0xff]   ;;  %v3980_v44 = vld [vmem:[#allocation5 + $0x44] ss:$8 sps:$4 sm:$0xff]   ;;  %v3990_v17 = vld [vmem:[#allocation5 + $0x80] ss:$8 sps:$4 sm:$0xff]  }
  0x83   : > { %1548 = vmatpush1.bf16.msra.mxu0 %v3966_v22  ;;  %v3981_v52 = vld [vmem:[#allocation5 + $0x50] ss:$8 sps:$4 sm:$0xff]   ;;  %v3992_v10 = vld [vmem:[#allocation5 + $0x84] ss:$8 sps:$4 sm:$0xff]   ;;  %v3995_v19 = vld [vmem:[#allocation5 + $0x94] ss:$8 sps:$4 sm:$0xff]  }
  0x84   : > { %1067 = vmatpush1.bf16.msra.mxu1 %v3938_v32 }
  0x85   : > { %1068 = vmatprep.subr.bf16.mxu1 %v3939_v33 }
  0x88   : > { %1069 = vmatpush1.bf16.msra.mxu1 %v3941_v35  ;;  %v3975_v35 = vld [vmem:[#allocation5 + $0x30] ss:$8 sps:$4 sm:$0xff]  }
  0x89   : > { %3658 = vmatmul.mubr.msk.bf16.gmra.mrb[12].mxu0 %vm512_vm0, %v463_v26  ;;  %1070 = vmatprep.subr.bf16.mxu1 %v3942_v36  ;;  %v3971_v26 = vld [vmem:[#allocation5 + $0x14] ss:$8 sps:$4 sm:$0xff]  }
  0x8a   : > { %633 = vmatprep.mubr.bf16.mxu0 %v4479_v0  ;;  %1549 = vmatprep.subr.bf16.mxu0 %v3971_v26  ;;  %v3977_v36 = vld [vmem:[#allocation5 + $0x34] ss:$8 sps:$4 sm:$0xff]   ;;  %v3993_v26 = vld [vmem:[#allocation5 + $0x90] ss:$8 sps:$4 sm:$0xff]  }
  0x8b   : > { %1550 = vmatpush1.bf16.msra.mxu0 %v3969_v25 }
  0x8c   : > { %1071 = vmatpush1.bf16.msra.mxu1 %v3944_v39  ;;  %1551 = vmatprep.subr.bf16.mxu0 %v3974_v31 }
  0x8d   : > { %1072 = vmatprep.subr.bf16.mxu1 %v3945_v40 }
  0x8f   : > { %1552 = vmatpush1.bf16.msra.mxu0 %v3972_v30  ;;  %v3998_v30 = vld [vmem:[#allocation5 + $0xa4] ss:$8 sps:$4 sm:$0xff]  }
  0x90   : > { %1073 = vmatpush1.bf16.msra.mxu1 %v3947_v42  ;;  %1553 = vmatprep.subr.bf16.mxu0 %v3977_v36 }
  0x91   : > { %3659 = vmatmul.mubr.msk.bf16.gmra.mrb[16].mxu0 %vm512_vm0, %v464_v34  ;;  %1074 = vmatprep.subr.bf16.mxu1 %v3948_v43  ;;  %v3978_v43 = vld [vmem:[#allocation5 + $0x40] ss:$8 sps:$4 sm:$0xff]  }
  0x92   : > { %643 = vmatprep.mubr.bf16.mxu0 %v4479_v0 }
  0x93   : > { %1554 = vmatpush1.bf16.msra.mxu0 %v3975_v35 }
  0x94   : > { %1075 = vmatpush1.bf16.msra.mxu1 %v3950_v46  ;;  %v3983_v46 = vld [vmem:[#allocation5 + $0x54] ss:$8 sps:$4 sm:$0xff]   ;;  %1555 = vmatprep.subr.bf16.mxu0 %v3980_v44 }
  0x95   : > { %1076 = vmatprep.subr.bf16.mxu1 %v3951_v48 }
  0x97   : > { %1556 = vmatpush1.bf16.msra.mxu0 %v3978_v43 }
  0x98   : > { %1077 = vmatpush1.bf16.msra.mxu1 %v3953_v49  ;;  %1557 = vmatprep.subr.bf16.mxu0 %v3983_v46 }
  0x99   : > { %3660 = vmatmul.mubr.msk.bf16.gmra.mrb[20].mxu0 %vm512_vm0, %v465_v41  ;;  %1078 = vmatprep.subr.bf16.mxu1 %v3954_v50 }
  0x9a   : > { %653 = vmatprep.mubr.bf16.mxu0 %v4479_v0 }
  0x9b   : > { %1558 = vmatpush1.bf16.msra.mxu0 %v3981_v52 }
  0x9c   : > { %1079 = vmatpush1.bf16.msra.mxu1 %v3956_v53 }
  0x9d   : > { %1080 = vmatprep.subr.bf16.mxu1 %v3957_v55  ;;  %v3986_v55 = vld [vmem:[#allocation5 + $0x64] ss:$8 sps:$4 sm:$0xff]  }
  0x9e   : > { %1559 = vmatprep.subr.bf16.mxu0 %v3986_v55 }
  0x9f   : > { %1560 = vmatpush1.bf16.msra.mxu0 %v3984_v62 }
  0xa0   : > { %1081 = vmatpush1.bf16.msra.mxu1 %v3959_v4 }
  0xa1   : > { %3661 = vmatmul.mubr.msk.bf16.gmra.mrb[24].mxu0 %vm512_vm0, %v466_v47  ;;  %1082 = vmatprep.subr.bf16.mxu1 %v3960_v6 }
  0xa2   : > { %663 = vmatprep.mubr.bf16.mxu0 %v4479_v0 }
  0xa4   : > { %1083 = vmatpush1.bf16.msra.mxu1 %v3962_v7  ;;  %v3987_v7 = vld [vmem:[#allocation5 + $0x70] ss:$8 sps:$4 sm:$0xff]  }
  0xa5   : > { %1084 = vmatprep.subr.bf16.mxu1 %v3963_v8 }
  0xa8   : > { %1085 = vmatpush1.bf16.msra.mxu1 %v3965_v11 }
  0xa9   : > { %3662 = vmatmul.mubr.msk.bf16.gmra.mrb[28].mxu0 %vm512_vm0, %v467_v54 }
  0xaa   : > { %673 = vmatprep.mubr.bf16.mxu0 %v4479_v0 }
  0xb1   : > { %3663 = vmatmul.mubr.msk.bf16.gmra.mrb[32].mxu0 %vm512_vm0, %v468_v58 }
  0xb2   : > { %683 = vmatprep.mubr.bf16.mxu0 %v4479_v0 }
  0xb9   : > { %3664 = vmatmul.mubr.msk.bf16.gmra.mrb[36].mxu0 %vm512_vm0, %v469_v61 }
  0xba   : > { %693 = vmatprep.mubr.bf16.mxu0 %v4479_v0 }
  0xc1   : > { %3665 = vmatmul.mubr.msk.bf16.gmra.mrb[40].mxu0 %vm512_vm0, %v470_v1  ;;  %v3989_v1 = vld [vmem:[#allocation5 + $0x74] ss:$8 sps:$4 sm:$0xff]  }
  0xc2   : > { %703 = vmatprep.mubr.bf16.mxu0 %v4479_v0  ;;  %1561 = vmatprep.subr.bf16.mxu0 %v3989_v1 }
  0xc3   : > { %1562 = vmatpush1.bf16.msra.mxu0 %v3987_v7 }
  0xc4   : > { %1563 = vmatprep.subr.bf16.mxu0 %v3992_v10 }
  0xc7   : > { %1564 = vmatpush1.bf16.msra.mxu0 %v3990_v17 }
  0xc8   : > { %1565 = vmatprep.subr.bf16.mxu0 %v3995_v19 }
  0xc9   : > { %3666 = vmatmul.mubr.msk.bf16.gmra.mrb[44].mxu0 %vm512_vm0, %v471_v5 }
  0xca   : > { %713 = vmatprep.mubr.bf16.mxu0 %v4479_v0 }
  0xcb   : > { %1566 = vmatpush1.bf16.msra.mxu0 %v3993_v26 }
  0xcc   : > { %1567 = vmatprep.subr.bf16.mxu0 %v3998_v30 }
  0xd1   : > { %3667 = vmatmul.mubr.msk.bf16.gmra.mrb[48].mxu0 %vm512_vm0, %v472_v12 }
  0xd2   : > { %723 = vmatprep.mubr.bf16.mxu0 %v4479_v0 }
  0xd9   : > { %3668 = vmatmul.mubr.msk.bf16.gmra.mrb[52].mxu0 %vm512_vm0, %v473_v15 }
  0xda   : > { %733 = vmatprep.mubr.bf16.mxu0 %v4479_v0 }
  0xe1   : > { %3669 = vmatmul.mubr.msk.bf16.gmra.mrb[56].mxu0 %vm512_vm0, %v474_v18 }
  0xe2   : > { %743 = vmatprep.mubr.bf16.mxu0 %v4479_v0  ;;  %v480_v0 = vld [vmem:[%s6640_s2] sm:$0x3] }
  0xe3   : > { %v4791_v32 = vrot.slane %v480_v0, %v4783_v28  ;;  %v4794_v33 = vrot.slane %v480_v0, %v4788_v29 }
  0xe9   : > { %3670 = vmatmul.mubr.msk.bf16.gmra.mrb[60].mxu0 %vm512_vm0, %v475_v21 }
 0x144   : > { %v595_v34 = vpop.f32.mrb[0].mxu0 }
 0x145   : > { %v596_v37 = vadd.f32 %v595_v34, %v4791_v32  ;;  %v597_v38 = vpop.f32.mrb[1].mxu0 }
 0x146   : > { %v598_v39 = vadd.f32 %v597_v38, %v4794_v33  ;;  %v599_v40 = vpop.f32.mrb[2].mxu0 }
 0x147   : > { %v600_v41 = vadd.f32 %v599_v40, %v4791_v32  ;;  %v601_v42 = vpop.f32.mrb[3].mxu0  ;;  %v754_v47 = vmax.f32 %v596_v37, 0.0 }
 0x148   : > { %v602_v45 = vadd.f32 %v601_v42, %v4794_v33  ;;  %v755_v49 = vmax.f32 %v598_v39, 0.0  ;;  %v3996_v39 = vld [vmem:[#allocation5 + $0xa0] ss:$8 sps:$4 sm:$0xff]  }
 0x149   : > { %v756_v48 = vmax.f32 %v600_v41, 0.0  ;;  %v4001_v41 = vld [vmem:[#allocation5 + $0xb4] ss:$8 sps:$4 sm:$0xff]   ;;  %1568 = vmatpush1.bf16.msra.mxu0 %v3996_v39 }
 0x14a   : > { %v757_v50 = vmax.f32 %v602_v45, 0.0  ;;  %1569 = vmatprep.subr.bf16.mxu0 %v4001_v41 }
 0x14b   : > { %v818_v51 = vpack.c.bf16 %v756_v48, %v754_v47  ;;  %v3999_v47 = vld [vmem:[#allocation5 + $0xb0] ss:$8 sps:$4 sm:$0xff]  }
 0x14c   : > { %v605_v53 = vpop.f32.mrb[4].mxu0  ;;  %v819_v54 = vpack.c.bf16 %v757_v50, %v755_v49  ;;  %v4004_v50 = vld [vmem:[#allocation5 + $0xc4] ss:$8 sps:$4 sm:$0xff]  }
 0x14d   : > { %v606_v56 = vadd.f32 %v605_v53, %v4791_v32  ;;  %v607_v57 = vpop.f32.mrb[5].mxu0  ;;  %1570 = vmatpush1.bf16.msra.mxu0 %v3999_v47 }
 0x14e   : > { %v608_v58 = vadd.f32 %v607_v57, %v4794_v33  ;;  %v609_v59 = vpop.f32.mrb[6].mxu0  ;;  %1086 = vmatprep.mubr.bf16.mxu1 %v819_v54  ;;  %v4002_v57 = vld [vmem:[#allocation5 + $0xc0] ss:$8 sps:$4 sm:$0xff]   ;;  %1571 = vmatprep.subr.bf16.mxu0 %v4004_v50 }
 0x14f   : > { %v610_v60 = vadd.f32 %v609_v59, %v4791_v32  ;;  %v611_v61 = vpop.f32.mrb[7].mxu0  ;;  %1087 = vmatmul.mubr.bf16.vlgmr.msra.gmra.mrb[0].mxu1 %v818_v51  ;;  %v758_v2 = vmax.f32 %v606_v56, 0.0  ;;  %v4007_v59 = vld [vmem:[#allocation5 + $0xd4] ss:$8 sps:$4 sm:$0xff]  }
 0x150   : > { %v612_v63 = vadd.f32 %v611_v61, %v4794_v33  ;;  %v759_v4 = vmax.f32 %v608_v58, 0.0 }
 0x151   : > { %v760_v3 = vmax.f32 %v610_v60, 0.0  ;;  %1572 = vmatpush1.bf16.msra.mxu0 %v4002_v57 }
 0x152   : > { %v761_v5 = vmax.f32 %v612_v63, 0.0  ;;  %1573 = vmatprep.subr.bf16.mxu0 %v4007_v59 }
 0x153   : > { %v820_v6 = vpack.c.bf16 %v760_v3, %v758_v2  ;;  %v4005_v2 = vld [vmem:[#allocation5 + $0xd0] ss:$8 sps:$4 sm:$0xff]  }
 0x154   : > { %v821_v8 = vpack.c.bf16 %v761_v5, %v759_v4  ;;  %v615_v9 = vpop.f32.mrb[8].mxu0  ;;  %v4010_v5 = vld [vmem:[#allocation5 + $0xe4] ss:$8 sps:$4 sm:$0xff]  }
 0x155   : > { %v616_v11 = vadd.f32 %v615_v9, %v4791_v32  ;;  %v617_v12 = vpop.f32.mrb[9].mxu0  ;;  %1574 = vmatpush1.bf16.msra.mxu0 %v4005_v2 }
 0x156   : > { %v618_v13 = vadd.f32 %v617_v12, %v4794_v33  ;;  %v619_v14 = vpop.f32.mrb[10].mxu0  ;;  %1096 = vmatprep.mubr.bf16.mxu1 %v821_v8  ;;  %v4008_v12 = vld [vmem:[#allocation5 + $0xe0] ss:$8 sps:$4 sm:$0xff]   ;;  %1575 = vmatprep.subr.bf16.mxu0 %v4010_v5 }
 0x157   : > { %v620_v15 = vadd.f32 %v619_v14, %v4791_v32  ;;  %v621_v16 = vpop.f32.mrb[11].mxu0  ;;  %1097 = vmatmul.mubr.bf16.gmra.mrb[4].mxu1 %v820_v6  ;;  %v762_v20 = vmax.f32 %v616_v11, 0.0 }
 0x158   : > { %v622_v18 = vadd.f32 %v621_v16, %v4794_v33  ;;  %v763_v22 = vmax.f32 %v618_v13, 0.0 }
 0x159   : > { %v764_v21 = vmax.f32 %v620_v15, 0.0  ;;  %1576 = vmatpush1.bf16.msra.mxu0 %v4008_v12 }
 0x15a   : > { %v765_v23 = vmax.f32 %v622_v18, 0.0 }
 0x15b   : > { %v822_v25 = vpack.c.bf16 %v764_v21, %v762_v20 }
 0x15c   : > { %v823_v27 = vpack.c.bf16 %v765_v23, %v763_v22  ;;  %v625_v0 = vpop.f32.mrb[12].mxu0 }
 0x15d   : > { %v626_v31 = vadd.f32 %v625_v0, %v4791_v32  ;;  %v627_v34 = vpop.f32.mrb[13].mxu0 }
 0x15e   : > { %v628_v35 = vadd.f32 %v627_v34, %v4794_v33  ;;  %v629_v36 = vpop.f32.mrb[14].mxu0  ;;  %1106 = vmatprep.mubr.bf16.mxu1 %v823_v27 }
 0x15f   : > { %v630_v37 = vadd.f32 %v629_v36, %v4791_v32  ;;  %v631_v38 = vpop.f32.mrb[15].mxu0  ;;  %1107 = vmatmul.mubr.bf16.gmra.mrb[8].mxu1 %v822_v25  ;;  %v766_v42 = vmax.f32 %v626_v31, 0.0 }
 0x160   : > { %v632_v40 = vadd.f32 %v631_v38, %v4794_v33  ;;  %v767_v44 = vmax.f32 %v628_v35, 0.0 }
 0x161   : > { %v768_v43 = vmax.f32 %v630_v37, 0.0 }
 0x162   : > { %v769_v45 = vmax.f32 %v632_v40, 0.0 }
 0x163   : > { %v824_v46 = vpack.c.bf16 %v768_v43, %v766_v42 }
 0x164   : > { %v825_v48 = vpack.c.bf16 %v769_v45, %v767_v44  ;;  %v635_v49 = vpop.f32.mrb[16].mxu0 }
 0x165   : > { %v636_v51 = vadd.f32 %v635_v49, %v4791_v32  ;;  %v637_v52 = vpop.f32.mrb[17].mxu0 }
 0x166   : > { %v638_v53 = vadd.f32 %v637_v52, %v4794_v33  ;;  %v639_v54 = vpop.f32.mrb[18].mxu0  ;;  %1116 = vmatprep.mubr.bf16.mxu1 %v825_v48 }
 0x167   : > { %v640_v55 = vadd.f32 %v639_v54, %v4791_v32  ;;  %v641_v56 = vpop.f32.mrb[19].mxu0  ;;  %1117 = vmatmul.mubr.bf16.gmra.mrb[12].mxu1 %v824_v46  ;;  %v770_v60 = vmax.f32 %v636_v51, 0.0 }
 0x168   : > { %v642_v58 = vadd.f32 %v641_v56, %v4794_v33  ;;  %v771_v62 = vmax.f32 %v638_v53, 0.0 }
 0x169   : > { %v772_v61 = vmax.f32 %v640_v55, 0.0 }
 0x16a   : > { %v773_v63 = vmax.f32 %v642_v58, 0.0 }
 0x16b   : > { %v826_v1 = vpack.c.bf16 %v772_v61, %v770_v60 }
 0x16c   : > { %v827_v3 = vpack.c.bf16 %v773_v63, %v771_v62  ;;  %v645_v4 = vpop.f32.mrb[20].mxu0 }
 0x16d   : > { %v646_v6 = vadd.f32 %v645_v4, %v4791_v32  ;;  %v647_v7 = vpop.f32.mrb[21].mxu0 }
 0x16e   : > { %v648_v8 = vadd.f32 %v647_v7, %v4794_v33  ;;  %v649_v9 = vpop.f32.mrb[22].mxu0  ;;  %1126 = vmatprep.mubr.bf16.mxu1 %v827_v3 }
 0x16f   : > { %v650_v10 = vadd.f32 %v649_v9, %v4791_v32  ;;  %v651_v11 = vpop.f32.mrb[23].mxu0  ;;  %1127 = vmatmul.mubr.bf16.gmra.mrb[16].mxu1 %v826_v1  ;;  %v774_v14 = vmax.f32 %v646_v6, 0.0 }
 0x170   : > { %v652_v13 = vadd.f32 %v651_v11, %v4794_v33  ;;  %v775_v16 = vmax.f32 %v648_v8, 0.0 }
 0x171   : > { %v776_v15 = vmax.f32 %v650_v10, 0.0 }
 0x172   : > { %v777_v17 = vmax.f32 %v652_v13, 0.0 }
 0x173   : > { %v828_v18 = vpack.c.bf16 %v776_v15, %v774_v14 }
 0x174   : > { %v829_v19 = vpack.c.bf16 %v777_v17, %v775_v16  ;;  %v655_v20 = vpop.f32.mrb[24].mxu0 }
 0x175   : > { %v656_v21 = vadd.f32 %v655_v20, %v4791_v32  ;;  %v657_v22 = vpop.f32.mrb[25].mxu0 }
 0x176   : > { %v658_v23 = vadd.f32 %v657_v22, %v4794_v33  ;;  %v659_v25 = vpop.f32.mrb[26].mxu0  ;;  %1136 = vmatprep.mubr.bf16.mxu1 %v829_v19 }
 0x177   : > { %v660_v26 = vadd.f32 %v659_v25, %v4791_v32  ;;  %v661_v27 = vpop.f32.mrb[27].mxu0  ;;  %1137 = vmatmul.mubr.bf16.gmra.mrb[20].mxu1 %v828_v18  ;;  %v778_v30 = vmax.f32 %v656_v21, 0.0 }
 0x178   : > { %v662_v0 = vadd.f32 %v661_v27, %v4794_v33  ;;  %v779_v34 = vmax.f32 %v658_v23, 0.0 }
 0x179   : > { %v780_v31 = vmax.f32 %v660_v26, 0.0 }
 0x17a   : > { %v781_v35 = vmax.f32 %v662_v0, 0.0 }
 0x17b   : > { %v830_v36 = vpack.c.bf16 %v780_v31, %v778_v30 }
 0x17c   : > { %v831_v37 = vpack.c.bf16 %v781_v35, %v779_v34  ;;  %v665_v38 = vpop.f32.mrb[28].mxu0 }
 0x17d   : > { %v666_v39 = vadd.f32 %v665_v38, %v4791_v32  ;;  %v667_v40 = vpop.f32.mrb[29].mxu0 }
 0x17e   : > { %v668_v41 = vadd.f32 %v667_v40, %v4794_v33  ;;  %v669_v42 = vpop.f32.mrb[30].mxu0  ;;  %1146 = vmatprep.mubr.bf16.mxu1 %v831_v37 }
 0x17f   : > { %v670_v43 = vadd.f32 %v669_v42, %v4791_v32  ;;  %v671_v44 = vpop.f32.mrb[31].mxu0  ;;  %1147 = vmatmul.mubr.bf16.gmra.mrb[24].mxu1 %v830_v36  ;;  %v782_v46 = vmax.f32 %v666_v39, 0.0 }
 0x180   : > { %v672_v45 = vadd.f32 %v671_v44, %v4794_v33  ;;  %v783_v48 = vmax.f32 %v668_v41, 0.0 }
 0x181   : > { %v784_v47 = vmax.f32 %v670_v43, 0.0 }
 0x182   : > { %v785_v49 = vmax.f32 %v672_v45, 0.0 }
 0x183   : > { %v832_v50 = vpack.c.bf16 %v784_v47, %v782_v46 }
 0x184   : > { %v833_v51 = vpack.c.bf16 %v785_v49, %v783_v48  ;;  %v675_v52 = vpop.f32.mrb[32].mxu0 }
 0x185   : > { %v676_v53 = vadd.f32 %v675_v52, %v4791_v32  ;;  %v677_v54 = vpop.f32.mrb[33].mxu0 }
 0x186   : > { %v678_v55 = vadd.f32 %v677_v54, %v4794_v33  ;;  %v679_v56 = vpop.f32.mrb[34].mxu0  ;;  %1156 = vmatprep.mubr.bf16.mxu1 %v833_v51 }
 0x187   : > { %v680_v57 = vadd.f32 %v679_v56, %v4791_v32  ;;  %v681_v58 = vpop.f32.mrb[35].mxu0  ;;  %1157 = vmatmul.mubr.bf16.gmra.mrb[28].mxu1 %v832_v50  ;;  %v786_v60 = vmax.f32 %v676_v53, 0.0  ;;  %v4013_v56 = vld [vmem:[#allocation5 + $0xf4] ss:$8 sps:$4 sm:$0xff]  }
 0x188   : > { %v682_v59 = vadd.f32 %v681_v58, %v4794_v33  ;;  %v787_v62 = vmax.f32 %v678_v55, 0.0  ;;  %v4011_v58 = vld [vmem:[#allocation5 + $0xf0] ss:$8 sps:$4 sm:$0xff]   ;;  %1577 = vmatprep.subr.bf16.mxu0 %v4013_v56 }
 0x189   : > { %v788_v61 = vmax.f32 %v680_v57, 0.0  ;;  %1578 = vmatpush1.bf16.msra.mxu0 %v4011_v58  ;;  %v4019_v58 = vld [vmem:[#allocation7 + $0x14] ss:$8 sps:$4 sm:$0xff]  }
 0x18a   : > { %v789_v63 = vmax.f32 %v682_v59, 0.0 }
 0x18b   : > { %v834_v1 = vpack.c.bf16 %v788_v61, %v786_v60 }
 0x18c   : > { %v835_v2 = vpack.c.bf16 %v789_v63, %v787_v62  ;;  %v685_v3 = vpop.f32.mrb[36].mxu0 }
 0x18d   : > { %v686_v4 = vadd.f32 %v685_v3, %v4791_v32  ;;  %v687_v5 = vpop.f32.mrb[37].mxu0 }
 0x18e   : > { %v688_v6 = vadd.f32 %v687_v5, %v4794_v33  ;;  %v689_v7 = vpop.f32.mrb[38].mxu0  ;;  %1166 = vmatprep.mubr.bf16.mxu1 %v835_v2 }
 0x18f   : > { %v690_v8 = vadd.f32 %v689_v7, %v4791_v32  ;;  %v691_v9 = vpop.f32.mrb[39].mxu0  ;;  %1167 = vmatmul.mubr.bf16.gmra.mrb[32].mxu1 %v834_v1  ;;  %v790_v11 = vmax.f32 %v686_v4, 0.0 }
 0x190   : > { %v692_v10 = vadd.f32 %v691_v9, %v4794_v33  ;;  %v791_v13 = vmax.f32 %v688_v6, 0.0 }
 0x191   : > { %v792_v12 = vmax.f32 %v690_v8, 0.0 }
 0x192   : > { %v793_v14 = vmax.f32 %v692_v10, 0.0 }
 0x193   : > { %v836_v15 = vpack.c.bf16 %v792_v12, %v790_v11 }
 0x194   : > { %v837_v16 = vpack.c.bf16 %v793_v14, %v791_v13  ;;  %v695_v17 = vpop.f32.mrb[40].mxu0 }
 0x195   : > { %v696_v18 = vadd.f32 %v695_v17, %v4791_v32  ;;  %v697_v19 = vpop.f32.mrb[41].mxu0 }
 0x196   : > { %v698_v20 = vadd.f32 %v697_v19, %v4794_v33  ;;  %v699_v21 = vpop.f32.mrb[42].mxu0  ;;  %1176 = vmatprep.mubr.bf16.mxu1 %v837_v16 }
 0x197   : > { %v700_v22 = vadd.f32 %v699_v21, %v4791_v32  ;;  %v701_v23 = vpop.f32.mrb[43].mxu0  ;;  %1177 = vmatmul.mubr.bf16.gmra.mrb[36].mxu1 %v836_v15  ;;  %v794_v26 = vmax.f32 %v696_v18, 0.0 }
 0x198   : > { %v702_v25 = vadd.f32 %v701_v23, %v4794_v33  ;;  %v795_v0 = vmax.f32 %v698_v20, 0.0 }
 0x199   : > { %v796_v27 = vmax.f32 %v700_v22, 0.0 }
 0x19a   : > { %v797_v30 = vmax.f32 %v702_v25, 0.0 }
 0x19b   : > { %v838_v31 = vpack.c.bf16 %v796_v27, %v794_v26 }
 0x19c   : > { %v839_v34 = vpack.c.bf16 %v797_v30, %v795_v0  ;;  %v705_v35 = vpop.f32.mrb[44].mxu0 }
 0x19d   : > { %v706_v36 = vadd.f32 %v705_v35, %v4791_v32  ;;  %v707_v37 = vpop.f32.mrb[45].mxu0 }
 0x19e   : > { %v708_v38 = vadd.f32 %v707_v37, %v4794_v33  ;;  %v709_v39 = vpop.f32.mrb[46].mxu0  ;;  %1186 = vmatprep.mubr.bf16.mxu1 %v839_v34 }
 0x19f   : > { %v710_v40 = vadd.f32 %v709_v39, %v4791_v32  ;;  %v711_v41 = vpop.f32.mrb[47].mxu0  ;;  %1187 = vmatmul.mubr.bf16.gmra.mrb[40].mxu1 %v838_v31  ;;  %v798_v43 = vmax.f32 %v706_v36, 0.0 }
 0x1a0   : > { %v712_v42 = vadd.f32 %v711_v41, %v4794_v33  ;;  %v799_v45 = vmax.f32 %v708_v38, 0.0 }
 0x1a1   : > { %v800_v44 = vmax.f32 %v710_v40, 0.0 }
 0x1a2   : > { %v801_v46 = vmax.f32 %v712_v42, 0.0 }
 0x1a3   : > { %v840_v47 = vpack.c.bf16 %v800_v44, %v798_v43 }
 0x1a4   : > { %v841_v48 = vpack.c.bf16 %v801_v46, %v799_v45  ;;  %v715_v49 = vpop.f32.mrb[48].mxu0 }
 0x1a5   : > { %v716_v50 = vadd.f32 %v715_v49, %v4791_v32  ;;  %v717_v51 = vpop.f32.mrb[49].mxu0 }
 0x1a6   : > { %v718_v52 = vadd.f32 %v717_v51, %v4794_v33  ;;  %v719_v53 = vpop.f32.mrb[50].mxu0  ;;  %1196 = vmatprep.mubr.bf16.mxu1 %v841_v48  ;;  %v882_v48 = vld [vmem:[%s6642_s4] sm:$0x3] }
 0x1a7   : > { %v720_v54 = vadd.f32 %v719_v53, %v4791_v32  ;;  %v721_v55 = vpop.f32.mrb[51].mxu0  ;;  %1197 = vmatmul.mubr.bf16.gmra.mrb[44].mxu1 %v840_v47  ;;  %v802_v59 = vmax.f32 %v716_v50, 0.0  ;;  %v4864_v49 = vrot.slane %v882_v48, %v4783_v28  ;;  %v4014_v53 = vld [vmem:[#allocation7] ss:$8 sps:$4 sm:$0xff]  }
 0x1a8   : > { %v722_v57 = vadd.f32 %v721_v55, %v4794_v33  ;;  %v803_v61 = vmax.f32 %v718_v52, 0.0 }
 0x1a9   : > { %v804_v60 = vmax.f32 %v720_v54, 0.0 }
 0x1aa   : > { %v805_v62 = vmax.f32 %v722_v57, 0.0 }
 0x1ab   : > { %v842_v63 = vpack.c.bf16 %v804_v60, %v802_v59 }
 0x1ac   : > { %v843_v1 = vpack.c.bf16 %v805_v62, %v803_v61  ;;  %v725_v2 = vpop.f32.mrb[52].mxu0  ;;  %v4017_v62 = vld [vmem:[#allocation7 + $0x10] ss:$8 sps:$4 sm:$0xff]  }
 0x1ad   : > { %v726_v3 = vadd.f32 %v725_v2, %v4791_v32  ;;  %v727_v4 = vpop.f32.mrb[53].mxu0  ;;  %v4022_v2 = vld [vmem:[#allocation7 + $0x24] ss:$8 sps:$4 sm:$0xff]  }
 0x1ae   : > { %v728_v5 = vadd.f32 %v727_v4, %v4794_v33  ;;  %v729_v6 = vpop.f32.mrb[54].mxu0  ;;  %1206 = vmatprep.mubr.bf16.mxu1 %v843_v1 }
 0x1af   : > { %v730_v7 = vadd.f32 %v729_v6, %v4791_v32  ;;  %v731_v8 = vpop.f32.mrb[55].mxu0  ;;  %1207 = vmatmul.mubr.bf16.gmra.mrb[48].mxu1 %v842_v63  ;;  %v806_v10 = vmax.f32 %v726_v3, 0.0 }
 0x1b0   : > { %v732_v9 = vadd.f32 %v731_v8, %v4794_v33  ;;  %v807_v12 = vmax.f32 %v728_v5, 0.0  ;;  %v4020_v8 = vld [vmem:[#allocation7 + $0x20] ss:$8 sps:$4 sm:$0xff]  }
 0x1b1   : > { %v808_v11 = vmax.f32 %v730_v7, 0.0 }
 0x1b2   : > { %v809_v13 = vmax.f32 %v732_v9, 0.0 }
 0x1b3   : > { %v844_v14 = vpack.c.bf16 %v808_v11, %v806_v10  ;;  %v4025_v11 = vld [vmem:[#allocation7 + $0x34] ss:$8 sps:$4 sm:$0xff]  }
 0x1b4   : > { %v845_v15 = vpack.c.bf16 %v809_v13, %v807_v12  ;;  %v735_v16 = vpop.f32.mrb[56].mxu0 }
 0x1b5   : > { %v736_v17 = vadd.f32 %v735_v16, %v4791_v32  ;;  %v737_v18 = vpop.f32.mrb[57].mxu0 }
 0x1b6   : > { %v738_v19 = vadd.f32 %v737_v18, %v4794_v33  ;;  %v739_v20 = vpop.f32.mrb[58].mxu0  ;;  %1216 = vmatprep.mubr.bf16.mxu1 %v845_v15 }
 0x1b7   : > { %v740_v21 = vadd.f32 %v739_v20, %v4791_v32  ;;  %v741_v22 = vpop.f32.mrb[59].mxu0  ;;  %1217 = vmatmul.mubr.bf16.gmra.mrb[52].mxu1 %v844_v14  ;;  %v810_v25 = vmax.f32 %v736_v17, 0.0  ;;  %v4023_v17 = vld [vmem:[#allocation7 + $0x30] ss:$8 sps:$4 sm:$0xff]   ;;  %v4028_v20 = vld [vmem:[#allocation7 + $0x44] ss:$8 sps:$4 sm:$0xff]  }
 0x1b8   : > { %v742_v23 = vadd.f32 %v741_v22, %v4794_v33  ;;  %v811_v27 = vmax.f32 %v738_v19, 0.0 }
 0x1b9   : > { %v812_v26 = vmax.f32 %v740_v21, 0.0 }
 0x1ba   : > { %v813_v0 = vmax.f32 %v742_v23, 0.0 }
 0x1bb   : > { %v846_v30 = vpack.c.bf16 %v812_v26, %v810_v25 }
 0x1bc   : > { %v847_v31 = vpack.c.bf16 %v813_v0, %v811_v27  ;;  %v745_v34 = vpop.f32.mrb[60].mxu0  ;;  %v4026_v27 = vld [vmem:[#allocation7 + $0x40] ss:$8 sps:$4 sm:$0xff]  }
 0x1bd   : > { %v746_v35 = vadd.f32 %v745_v34, %v4791_v32  ;;  %v747_v36 = vpop.f32.mrb[61].mxu0 }
 0x1be   : > { %v748_v37 = vadd.f32 %v747_v36, %v4794_v33  ;;  %v749_v38 = vpop.f32.mrb[62].mxu0  ;;  %1226 = vmatprep.mubr.bf16.mxu1 %v847_v31  ;;  %v4031_v31 = vld [vmem:[#allocation7 + $0x54] ss:$8 sps:$4 sm:$0xff]  }
 0x1bf   : > { %v750_v39 = vadd.f32 %v749_v38, %v4791_v32  ;;  %v751_v40 = vpop.f32.mrb[63].mxu0  ;;  %1227 = vmatmul.mubr.bf16.gmra.mrb[56].mxu1 %v846_v30  ;;  %v814_v42 = vmax.f32 %v746_v35, 0.0  ;;  %v4867_v32 = vrot.slane %v882_v48, %v4788_v29  ;;  %v4032_v48 = vld [vmem:[#allocation7 + $0x60] ss:$8 sps:$4 sm:$0xff]  }
 0x1c0   : > { %v752_v41 = vadd.f32 %v751_v40, %v4794_v33  ;;  %v815_v44 = vmax.f32 %v748_v37, 0.0  ;;  %v4016_v33 = vld [vmem:[#allocation7 + $0x4] ss:$8 sps:$4 sm:$0xff]  }
 0x1c1   : > { %v816_v43 = vmax.f32 %v750_v39, 0.0  ;;  %3805 = vmatprep.subr.bf16.mxu1 %v4016_v33  ;;  %2040 = vmatprep.subr.bf16.mxu0 %v4016_v33  ;;  %v4029_v39 = vld [vmem:[#allocation7 + $0x50] ss:$8 sps:$4 sm:$0xff]  }
 0x1c2   : > { %v817_v45 = vmax.f32 %v752_v41, 0.0  ;;  %3821 = vmatpush1.bf16.msra.mxu1 %v4014_v53 }
 0x1c3   : > { %v848_v46 = vpack.c.bf16 %v816_v43, %v814_v42  ;;  %3806 = vmatprep.subr.bf16.mxu1 %v4019_v58  ;;  %v4034_v42 = vld [vmem:[#allocation7 + $0x64] ss:$8 sps:$4 sm:$0xff]  }
 0x1c4   : > { %v849_v47 = vpack.c.bf16 %v817_v45, %v815_v44 }
 0x1c6   : > { %1236 = vmatprep.mubr.bf16.mxu1 %v849_v47  ;;  %3822 = vmatpush1.bf16.msra.mxu1 %v4017_v62 }
 0x1c7   : > { %1237 = vmatmul.mubr.bf16.gmra.mrb[60].mxu1 %v848_v46  ;;  %3807 = vmatprep.subr.bf16.mxu1 %v4022_v2 }
 0x1ca   : > { %3823 = vmatpush1.bf16.msra.mxu1 %v4020_v8 }
 0x1cb   : > { %3808 = vmatprep.subr.bf16.mxu1 %v4025_v11 }
 0x1ce   : > { %3824 = vmatpush1.bf16.msra.mxu1 %v4023_v17 }
 0x1cf   : > { %3809 = vmatprep.subr.bf16.mxu1 %v4028_v20 }
 0x1d2   : > { %3825 = vmatpush1.bf16.msra.mxu1 %v4026_v27 }
 0x1d3   : > { %3810 = vmatprep.subr.bf16.mxu1 %v4031_v31 }
 0x1d6   : > { %3826 = vmatpush1.bf16.msra.mxu1 %v4029_v39 }
 0x1d7   : > { %3811 = vmatprep.subr.bf16.mxu1 %v4034_v42 }
 0x1da   : > { %3827 = vmatpush1.bf16.msra.mxu1 %v4032_v48 }
 0x222   : > { %v1088_v50 = vpop.f32.mrb[0].mxu1 }
 0x223   : > { %v1089_v51 = vadd.f32 %v1088_v50, %v4864_v49  ;;  %v1090_v52 = vpop.f32.mrb[1].mxu1 }
 0x224   : > { %v1091_v54 = vadd.f32 %v1090_v52, %v4867_v32  ;;  %v1092_v55 = vpop.f32.mrb[2].mxu1 }
 0x225   : > { %v1093_v56 = vadd.f32 %v1092_v55, %v4864_v49  ;;  %v1094_v57 = vpop.f32.mrb[3].mxu1  ;;  %v1247_v60 = vmax.f32 %v1089_v51, 0.0  ;;  %v4037_v51 = vld [vmem:[#allocation7 + $0x74] ss:$8 sps:$4 sm:$0xff]  }
 0x226   : > { %v1095_v59 = vadd.f32 %v1094_v57, %v4867_v32  ;;  %v1248_v63 = vmax.f32 %v1091_v54, 0.0  ;;  %3812 = vmatprep.subr.bf16.mxu1 %v4037_v51  ;;  %v4035_v57 = vld [vmem:[#allocation7 + $0x70] ss:$8 sps:$4 sm:$0xff]  }
 0x227   : > { %v1249_v61 = vmax.f32 %v1093_v56, 0.0  ;;  %3828 = vmatpush1.bf16.msra.mxu1 %v4035_v57 }
 0x228   : > { %v1250_v1 = vmax.f32 %v1095_v59, 0.0 }
 0x229   : > { %v1311_v3 = vpack.c.bf16 %v1249_v61, %v1247_v60  ;;  %v4040_v60 = vld [vmem:[#allocation7 + $0x84] ss:$8 sps:$4 sm:$0xff]  }
 0x22a   : > { %v1312_v4 = vpack.c.bf16 %v1250_v1, %v1248_v63  ;;  %v1098_v5 = vpop.f32.mrb[4].mxu1  ;;  %3813 = vmatprep.subr.bf16.mxu1 %v4040_v60 }
 0x22b   : > { %v1099_v6 = vadd.f32 %v1098_v5, %v4864_v49  ;;  %v1100_v7 = vpop.f32.mrb[5].mxu1 }
 0x22c   : > { %v1101_v9 = vadd.f32 %v1100_v7, %v4867_v32  ;;  %v1102_v10 = vpop.f32.mrb[6].mxu1  ;;  %1579 = vmatprep.mubr.bf16.mxu0 %v1312_v4 }
 0x22d   : > { %v1103_v12 = vadd.f32 %v1102_v10, %v4864_v49  ;;  %v1104_v13 = vpop.f32.mrb[7].mxu1  ;;  %1580 = vmatmul.mubr.bf16.vlgmr.msra.gmra.mrb[64].mxu0 %v1311_v3  ;;  %v1251_v15 = vmax.f32 %v1099_v6, 0.0  ;;  %v4038_v3 = vld [vmem:[#allocation7 + $0x80] ss:$8 sps:$4 sm:$0xff]   ;;  %v4043_v6 = vld [vmem:[#allocation7 + $0x94] ss:$8 sps:$4 sm:$0xff]  }
 0x22e   : > { %v1105_v14 = vadd.f32 %v1104_v13, %v4867_v32  ;;  %2041 = vmatpush1.bf16.msra.mxu0 %v4014_v53  ;;  %v1252_v18 = vmax.f32 %v1101_v9, 0.0  ;;  %3829 = vmatpush1.bf16.msra.mxu1 %v4038_v3 }
 0x22f   : > { %v1253_v16 = vmax.f32 %v1103_v12, 0.0  ;;  %2042 = vmatprep.subr.bf16.mxu0 %v4019_v58  ;;  %3814 = vmatprep.subr.bf16.mxu1 %v4043_v6  ;;  %v4041_v12 = vld [vmem:[#allocation7 + $0x90] ss:$8 sps:$4 sm:$0xff]  }
 0x230   : > { %v1254_v19 = vmax.f32 %v1105_v14, 0.0 }
 0x231   : > { %v1313_v21 = vpack.c.bf16 %v1253_v16, %v1251_v15  ;;  %v4046_v15 = vld [vmem:[#allocation7 + $0xa4] ss:$8 sps:$4 sm:$0xff]  }
 0x232   : > { %v1314_v22 = vpack.c.bf16 %v1254_v19, %v1252_v18  ;;  %v1108_v23 = vpop.f32.mrb[8].mxu1  ;;  %2043 = vmatpush1.bf16.msra.mxu0 %v4017_v62  ;;  %3830 = vmatpush1.bf16.msra.mxu1 %v4041_v12 }
 0x233   : > { %v1109_v25 = vadd.f32 %v1108_v23, %v4864_v49  ;;  %v1110_v26 = vpop.f32.mrb[9].mxu1  ;;  %2044 = vmatprep.subr.bf16.mxu0 %v4022_v2  ;;  %3815 = vmatprep.subr.bf16.mxu1 %v4046_v15 }
 0x234   : > { %v1111_v0 = vadd.f32 %v1110_v26, %v4867_v32  ;;  %v1112_v30 = vpop.f32.mrb[10].mxu1  ;;  %1589 = vmatprep.mubr.bf16.mxu0 %v1314_v22 }
 0x235   : > { %v1113_v34 = vadd.f32 %v1112_v30, %v4864_v49  ;;  %v1114_v35 = vpop.f32.mrb[11].mxu1  ;;  %1590 = vmatmul.mubr.bf16.gmra.mrb[68].mxu0 %v1313_v21  ;;  %v1255_v37 = vmax.f32 %v1109_v25, 0.0  ;;  %v4044_v21 = vld [vmem:[#allocation7 + $0xa0] ss:$8 sps:$4 sm:$0xff]   ;;  %v4049_v25 = vld [vmem:[#allocation7 + $0xb4] ss:$8 sps:$4 sm:$0xff]  }
 0x236   : > { %v1115_v36 = vadd.f32 %v1114_v35, %v4867_v32  ;;  %2045 = vmatpush1.bf16.msra.mxu0 %v4020_v8  ;;  %v1256_v40 = vmax.f32 %v1111_v0, 0.0  ;;  %3831 = vmatpush1.bf16.msra.mxu1 %v4044_v21 }
 0x237   : > { %v1257_v38 = vmax.f32 %v1113_v34, 0.0  ;;  %2046 = vmatprep.subr.bf16.mxu0 %v4025_v11  ;;  %3816 = vmatprep.subr.bf16.mxu1 %v4049_v25  ;;  %v4047_v34 = vld [vmem:[#allocation7 + $0xb0] ss:$8 sps:$4 sm:$0xff]  }
 0x238   : > { %v1258_v41 = vmax.f32 %v1115_v36, 0.0 }
 0x239   : > { %v1315_v43 = vpack.c.bf16 %v1257_v38, %v1255_v37  ;;  %v4052_v37 = vld [vmem:[#allocation7 + $0xc4] ss:$8 sps:$4 sm:$0xff]  }
 0x23a   : > { %v1316_v44 = vpack.c.bf16 %v1258_v41, %v1256_v40  ;;  %v1118_v45 = vpop.f32.mrb[12].mxu1  ;;  %2047 = vmatpush1.bf16.msra.mxu0 %v4023_v17  ;;  %3832 = vmatpush1.bf16.msra.mxu1 %v4047_v34 }
 0x23b   : > { %v1119_v46 = vadd.f32 %v1118_v45, %v4864_v49  ;;  %v1120_v47 = vpop.f32.mrb[13].mxu1  ;;  %2048 = vmatprep.subr.bf16.mxu0 %v4028_v20  ;;  %3817 = vmatprep.subr.bf16.mxu1 %v4052_v37 }
 0x23c   : > { %v1121_v50 = vadd.f32 %v1120_v47, %v4867_v32  ;;  %v1122_v33 = vpop.f32.mrb[14].mxu1  ;;  %1599 = vmatprep.mubr.bf16.mxu0 %v1316_v44 }
 0x23d   : > { %v1123_v52 = vadd.f32 %v1122_v33, %v4864_v49  ;;  %v1124_v53 = vpop.f32.mrb[15].mxu1  ;;  %1600 = vmatmul.mubr.bf16.gmra.mrb[72].mxu0 %v1315_v43  ;;  %v1259_v55 = vmax.f32 %v1119_v46, 0.0  ;;  %v4050_v43 = vld [vmem:[#allocation7 + $0xc0] ss:$8 sps:$4 sm:$0xff]   ;;  %v4055_v46 = vld [vmem:[#allocation7 + $0xd4] ss:$8 sps:$4 sm:$0xff]  }
 0x23e   : > { %v1125_v54 = vadd.f32 %v1124_v53, %v4867_v32  ;;  %2049 = vmatpush1.bf16.msra.mxu0 %v4026_v27  ;;  %v1260_v58 = vmax.f32 %v1121_v50, 0.0  ;;  %3833 = vmatpush1.bf16.msra.mxu1 %v4050_v43 }
 0x23f   : > { %v1261_v56 = vmax.f32 %v1123_v52, 0.0  ;;  %2050 = vmatprep.subr.bf16.mxu0 %v4031_v31  ;;  %3818 = vmatprep.subr.bf16.mxu1 %v4055_v46  ;;  %v4053_v52 = vld [vmem:[#allocation7 + $0xd0] ss:$8 sps:$4 sm:$0xff]  }
 0x240   : > { %v1262_v59 = vmax.f32 %v1125_v54, 0.0 }
 0x241   : > { %v1317_v61 = vpack.c.bf16 %v1261_v56, %v1259_v55 }
 0x242   : > { %v1318_v62 = vpack.c.bf16 %v1262_v59, %v1260_v58  ;;  %v1128_v63 = vpop.f32.mrb[16].mxu1  ;;  %2051 = vmatpush1.bf16.msra.mxu0 %v4029_v39  ;;  %3834 = vmatpush1.bf16.msra.mxu1 %v4053_v52 }
 0x243   : > { %v1129_v1 = vadd.f32 %v1128_v63, %v4864_v49  ;;  %v1130_v2 = vpop.f32.mrb[17].mxu1  ;;  %2052 = vmatprep.subr.bf16.mxu0 %v4034_v42 }
 0x244   : > { %v1131_v4 = vadd.f32 %v1130_v2, %v4867_v32  ;;  %v1132_v5 = vpop.f32.mrb[18].mxu1  ;;  %1609 = vmatprep.mubr.bf16.mxu0 %v1318_v62 }
 0x245   : > { %v1133_v7 = vadd.f32 %v1132_v5, %v4864_v49  ;;  %v1134_v8 = vpop.f32.mrb[19].mxu1  ;;  %1610 = vmatmul.mubr.bf16.gmra.mrb[76].mxu0 %v1317_v61  ;;  %v1263_v10 = vmax.f32 %v1129_v1, 0.0 }
 0x246   : > { %v1135_v9 = vadd.f32 %v1134_v8, %v4867_v32  ;;  %2053 = vmatpush1.bf16.msra.mxu0 %v4032_v48  ;;  %v1264_v13 = vmax.f32 %v1131_v4, 0.0 }
 0x247   : > { %v1265_v11 = vmax.f32 %v1133_v7, 0.0  ;;  %2054 = vmatprep.subr.bf16.mxu0 %v4037_v51 }
 0x248   : > { %v1266_v14 = vmax.f32 %v1135_v9, 0.0 }
 0x249   : > { %v1319_v16 = vpack.c.bf16 %v1265_v11, %v1263_v10 }
 0x24a   : > { %v1320_v17 = vpack.c.bf16 %v1266_v14, %v1264_v13  ;;  %v1138_v18 = vpop.f32.mrb[20].mxu1  ;;  %2055 = vmatpush1.bf16.msra.mxu0 %v4035_v57 }
 0x24b   : > { %v1139_v19 = vadd.f32 %v1138_v18, %v4864_v49  ;;  %v1140_v20 = vpop.f32.mrb[21].mxu1  ;;  %2056 = vmatprep.subr.bf16.mxu0 %v4040_v60 }
 0x24c   : > { %v1141_v22 = vadd.f32 %v1140_v20, %v4867_v32  ;;  %v1142_v23 = vpop.f32.mrb[22].mxu1  ;;  %1619 = vmatprep.mubr.bf16.mxu0 %v1320_v17 }
 0x24d   : > { %v1143_v26 = vadd.f32 %v1142_v23, %v4864_v49  ;;  %v1144_v27 = vpop.f32.mrb[23].mxu1  ;;  %1620 = vmatmul.mubr.bf16.gmra.mrb[80].mxu0 %v1319_v16  ;;  %v1267_v30 = vmax.f32 %v1139_v19, 0.0 }
 0x24e   : > { %v1145_v0 = vadd.f32 %v1144_v27, %v4867_v32  ;;  %2057 = vmatpush1.bf16.msra.mxu0 %v4038_v3  ;;  %v1268_v35 = vmax.f32 %v1141_v22, 0.0 }
 0x24f   : > { %v1269_v31 = vmax.f32 %v1143_v26, 0.0  ;;  %2058 = vmatprep.subr.bf16.mxu0 %v4043_v6 }
 0x250   : > { %v1270_v36 = vmax.f32 %v1145_v0, 0.0 }
 0x251   : > { %v1321_v38 = vpack.c.bf16 %v1269_v31, %v1267_v30 }
 0x252   : > { %v1322_v39 = vpack.c.bf16 %v1270_v36, %v1268_v35  ;;  %v1148_v40 = vpop.f32.mrb[24].mxu1  ;;  %2059 = vmatpush1.bf16.msra.mxu0 %v4041_v12 }
 0x253   : > { %v1149_v41 = vadd.f32 %v1148_v40, %v4864_v49  ;;  %v1150_v42 = vpop.f32.mrb[25].mxu1  ;;  %2060 = vmatprep.subr.bf16.mxu0 %v4046_v15 }
 0x254   : > { %v1151_v44 = vadd.f32 %v1150_v42, %v4867_v32  ;;  %v1152_v45 = vpop.f32.mrb[26].mxu1  ;;  %1629 = vmatprep.mubr.bf16.mxu0 %v1322_v39 }
 0x255   : > { %v1153_v47 = vadd.f32 %v1152_v45, %v4864_v49  ;;  %v1154_v48 = vpop.f32.mrb[27].mxu1  ;;  %1630 = vmatmul.mubr.bf16.gmra.mrb[84].mxu0 %v1321_v38  ;;  %v1271_v33 = vmax.f32 %v1149_v41, 0.0 }
 0x256   : > { %v1155_v50 = vadd.f32 %v1154_v48, %v4867_v32  ;;  %2061 = vmatpush1.bf16.msra.mxu0 %v4044_v21  ;;  %v1272_v53 = vmax.f32 %v1151_v44, 0.0 }
 0x257   : > { %v1273_v51 = vmax.f32 %v1153_v47, 0.0  ;;  %2062 = vmatprep.subr.bf16.mxu0 %v4049_v25 }
 0x258   : > { %v1274_v54 = vmax.f32 %v1155_v50, 0.0 }
 0x259   : > { %v1323_v55 = vpack.c.bf16 %v1273_v51, %v1271_v33 }
 0x25a   : > { %v1324_v56 = vpack.c.bf16 %v1274_v54, %v1272_v53  ;;  %v1158_v57 = vpop.f32.mrb[28].mxu1  ;;  %2063 = vmatpush1.bf16.msra.mxu0 %v4047_v34 }
 0x25b   : > { %v1159_v58 = vadd.f32 %v1158_v57, %v4864_v49  ;;  %v1160_v59 = vpop.f32.mrb[29].mxu1  ;;  %2064 = vmatprep.subr.bf16.mxu0 %v4052_v37 }
 0x25c   : > { %v1161_v60 = vadd.f32 %v1160_v59, %v4867_v32  ;;  %v1162_v61 = vpop.f32.mrb[30].mxu1  ;;  %1639 = vmatprep.mubr.bf16.mxu0 %v1324_v56 }
 0x25d   : > { %v1163_v62 = vadd.f32 %v1162_v61, %v4864_v49  ;;  %v1164_v63 = vpop.f32.mrb[31].mxu1  ;;  %1640 = vmatmul.mubr.bf16.gmra.mrb[88].mxu0 %v1323_v55  ;;  %v1275_v2 = vmax.f32 %v1159_v58, 0.0 }
 0x25e   : > { %v1165_v1 = vadd.f32 %v1164_v63, %v4867_v32  ;;  %2065 = vmatpush1.bf16.msra.mxu0 %v4050_v43  ;;  %v1276_v4 = vmax.f32 %v1161_v60, 0.0 }
 0x25f   : > { %v1277_v3 = vmax.f32 %v1163_v62, 0.0  ;;  %2066 = vmatprep.subr.bf16.mxu0 %v4055_v46 }
 0x260   : > { %v1278_v5 = vmax.f32 %v1165_v1, 0.0 }
 0x261   : > { %v1325_v6 = vpack.c.bf16 %v1277_v3, %v1275_v2 }
 0x262   : > { %v1326_v7 = vpack.c.bf16 %v1278_v5, %v1276_v4  ;;  %v1168_v8 = vpop.f32.mrb[32].mxu1  ;;  %2067 = vmatpush1.bf16.msra.mxu0 %v4053_v52  ;;  %v4058_v4 = vld [vmem:[#allocation7 + $0xe4] ss:$8 sps:$4 sm:$0xff]  }
 0x263   : > { %v1169_v9 = vadd.f32 %v1168_v8, %v4864_v49  ;;  %v1170_v10 = vpop.f32.mrb[33].mxu1  ;;  %2068 = vmatprep.subr.bf16.mxu0 %v4058_v4  ;;  %3819 = vmatprep.subr.bf16.mxu1 %v4058_v4 }
 0x264   : > { %v1171_v11 = vadd.f32 %v1170_v10, %v4867_v32  ;;  %v1172_v12 = vpop.f32.mrb[34].mxu1  ;;  %1649 = vmatprep.mubr.bf16.mxu0 %v1326_v7  ;;  %v4056_v7 = vld [vmem:[#allocation7 + $0xe0] ss:$8 sps:$4 sm:$0xff]  }
 0x265   : > { %v1173_v13 = vadd.f32 %v1172_v12, %v4864_v49  ;;  %v1174_v14 = vpop.f32.mrb[35].mxu1  ;;  %1650 = vmatmul.mubr.bf16.gmra.mrb[92].mxu0 %v1325_v6  ;;  %v1279_v16 = vmax.f32 %v1169_v9, 0.0  ;;  %3835 = vmatpush1.bf16.msra.mxu1 %v4056_v7 }
 0x266   : > { %v1175_v15 = vadd.f32 %v1174_v14, %v4867_v32  ;;  %v1280_v18 = vmax.f32 %v1171_v11, 0.0  ;;  %2069 = vmatpush1.bf16.msra.mxu0 %v4056_v7  ;;  %v4061_v14 = vld [vmem:[#allocation7 + $0xf4] ss:$8 sps:$4 sm:$0xff]  }
 0x267   : > { %v1281_v17 = vmax.f32 %v1173_v13, 0.0  ;;  %2070 = vmatprep.subr.bf16.mxu0 %v4061_v14  ;;  %3820 = vmatprep.subr.bf16.mxu1 %v4061_v14 }
 0x268   : > { %v1282_v19 = vmax.f32 %v1175_v15, 0.0 }
 0x269   : > { %v1327_v20 = vpack.c.bf16 %v1281_v17, %v1279_v16  ;;  %v4059_v16 = vld [vmem:[#allocation7 + $0xf0] ss:$8 sps:$4 sm:$0xff]  }
 0x26a   : > { %v1328_v21 = vpack.c.bf16 %v1282_v19, %v1280_v18  ;;  %v1178_v22 = vpop.f32.mrb[36].mxu1  ;;  %2071 = vmatpush1.bf16.msra.mxu0 %v4059_v16  ;;  %3836 = vmatpush1.bf16.msra.mxu1 %v4059_v16 }
 0x26b   : > { %v1179_v23 = vadd.f32 %v1178_v22, %v4864_v49  ;;  %v1180_v25 = vpop.f32.mrb[37].mxu1 }
 0x26c   : > { %v1181_v26 = vadd.f32 %v1180_v25, %v4867_v32  ;;  %v1182_v27 = vpop.f32.mrb[38].mxu1  ;;  %1659 = vmatprep.mubr.bf16.mxu0 %v1328_v21 }
 0x26d   : > { %v1183_v0 = vadd.f32 %v1182_v27, %v4864_v49  ;;  %v1184_v30 = vpop.f32.mrb[39].mxu1  ;;  %1660 = vmatmul.mubr.bf16.gmra.mrb[96].mxu0 %v1327_v20  ;;  %v1283_v34 = vmax.f32 %v1179_v23, 0.0 }
 0x26e   : > { %v1185_v31 = vadd.f32 %v1184_v30, %v4867_v32  ;;  %v1284_v36 = vmax.f32 %v1181_v26, 0.0 }
 0x26f   : > { %v1285_v35 = vmax.f32 %v1183_v0, 0.0 }
 0x270   : > { %v1286_v37 = vmax.f32 %v1185_v31, 0.0 }
 0x271   : > { %v1329_v38 = vpack.c.bf16 %v1285_v35, %v1283_v34 }
 0x272   : > { %v1330_v39 = vpack.c.bf16 %v1286_v37, %v1284_v36  ;;  %v1188_v40 = vpop.f32.mrb[40].mxu1 }
 0x273   : > { %v1189_v41 = vadd.f32 %v1188_v40, %v4864_v49  ;;  %v1190_v42 = vpop.f32.mrb[41].mxu1 }
 0x274   : > { %v1191_v43 = vadd.f32 %v1190_v42, %v4867_v32  ;;  %v1192_v44 = vpop.f32.mrb[42].mxu1  ;;  %1669 = vmatprep.mubr.bf16.mxu0 %v1330_v39 }
 0x275   : > { %v1193_v45 = vadd.f32 %v1192_v44, %v4864_v49  ;;  %v1194_v46 = vpop.f32.mrb[43].mxu1  ;;  %1670 = vmatmul.mubr.bf16.gmra.mrb[100].mxu0 %v1329_v38  ;;  %v1287_v48 = vmax.f32 %v1189_v41, 0.0 }
 0x276   : > { %v1195_v47 = vadd.f32 %v1194_v46, %v4867_v32  ;;  %v1288_v33 = vmax.f32 %v1191_v43, 0.0 }
 0x277   : > { %v1289_v50 = vmax.f32 %v1193_v45, 0.0 }
 0x278   : > { %v1290_v51 = vmax.f32 %v1195_v47, 0.0 }
 0x279   : > { %v1331_v52 = vpack.c.bf16 %v1289_v50, %v1287_v48 }
 0x27a   : > { %v1332_v53 = vpack.c.bf16 %v1290_v51, %v1288_v33  ;;  %v1198_v54 = vpop.f32.mrb[44].mxu1 }
 0x27b   : > { %v1199_v55 = vadd.f32 %v1198_v54, %v4864_v49  ;;  %v1200_v56 = vpop.f32.mrb[45].mxu1 }
 0x27c   : > { %v1201_v57 = vadd.f32 %v1200_v56, %v4867_v32  ;;  %v1202_v58 = vpop.f32.mrb[46].mxu1  ;;  %1679 = vmatprep.mubr.bf16.mxu0 %v1332_v53 }
 0x27d   : > { %v1203_v59 = vadd.f32 %v1202_v58, %v4864_v49  ;;  %v1204_v60 = vpop.f32.mrb[47].mxu1  ;;  %1680 = vmatmul.mubr.bf16.gmra.mrb[104].mxu0 %v1331_v52  ;;  %v1291_v62 = vmax.f32 %v1199_v55, 0.0 }
 0x27e   : > { %v1205_v61 = vadd.f32 %v1204_v60, %v4867_v32  ;;  %v1292_v1 = vmax.f32 %v1201_v57, 0.0 }
 0x27f   : > { %v1293_v63 = vmax.f32 %v1203_v59, 0.0 }
 0x280   : > { %v1294_v2 = vmax.f32 %v1205_v61, 0.0 }
 0x281   : > { %v1333_v3 = vpack.c.bf16 %v1293_v63, %v1291_v62 }
 0x282   : > { %v1334_v5 = vpack.c.bf16 %v1294_v2, %v1292_v1  ;;  %v1208_v6 = vpop.f32.mrb[48].mxu1 }
 0x283   : > { %v1209_v8 = vadd.f32 %v1208_v6, %v4864_v49  ;;  %v1210_v9 = vpop.f32.mrb[49].mxu1  ;;  %v1375_v6 = vld [vmem:[%s6644_s6] sm:$0x3] }
 0x284   : > { %v1211_v10 = vadd.f32 %v1210_v9, %v4867_v32  ;;  %v1212_v11 = vpop.f32.mrb[50].mxu1  ;;  %1689 = vmatprep.mubr.bf16.mxu0 %v1334_v5  ;;  %v4937_v7 = vrot.slane %v1375_v6, %v4783_v28 }
 0x285   : > { %v1213_v12 = vadd.f32 %v1212_v11, %v4864_v49  ;;  %v1214_v13 = vpop.f32.mrb[51].mxu1  ;;  %1690 = vmatmul.mubr.bf16.gmra.mrb[108].mxu0 %v1333_v3  ;;  %v1295_v17 = vmax.f32 %v1209_v8, 0.0 }
 0x286   : > { %v1215_v15 = vadd.f32 %v1214_v13, %v4867_v32  ;;  %v1296_v19 = vmax.f32 %v1211_v10, 0.0 }
 0x287   : > { %v1297_v18 = vmax.f32 %v1213_v12, 0.0 }
 0x288   : > { %v1298_v20 = vmax.f32 %v1215_v15, 0.0 }
 0x289   : > { %v1335_v21 = vpack.c.bf16 %v1297_v18, %v1295_v17 }
 0x28a   : > { %v1336_v22 = vpack.c.bf16 %v1298_v20, %v1296_v19  ;;  %v1218_v23 = vpop.f32.mrb[52].mxu1 }
 0x28b   : > { %v1219_v25 = vadd.f32 %v1218_v23, %v4864_v49  ;;  %v1220_v26 = vpop.f32.mrb[53].mxu1 }
 0x28c   : > { %v1221_v27 = vadd.f32 %v1220_v26, %v4867_v32  ;;  %v1222_v0 = vpop.f32.mrb[54].mxu1  ;;  %1699 = vmatprep.mubr.bf16.mxu0 %v1336_v22 }
 0x28d   : > { %v1223_v30 = vadd.f32 %v1222_v0, %v4864_v49  ;;  %v1224_v31 = vpop.f32.mrb[55].mxu1  ;;  %1700 = vmatmul.mubr.bf16.gmra.mrb[112].mxu0 %v1335_v21  ;;  %v1299_v35 = vmax.f32 %v1219_v25, 0.0 }
 0x28e   : > { %v1225_v34 = vadd.f32 %v1224_v31, %v4867_v32  ;;  %v1300_v37 = vmax.f32 %v1221_v27, 0.0 }
 0x28f   : > { %v1301_v36 = vmax.f32 %v1223_v30, 0.0 }
 0x290   : > { %v1302_v38 = vmax.f32 %v1225_v34, 0.0 }
 0x291   : > { %v1337_v39 = vpack.c.bf16 %v1301_v36, %v1299_v35 }
 0x292   : > { %v1338_v40 = vpack.c.bf16 %v1302_v38, %v1300_v37  ;;  %v1228_v41 = vpop.f32.mrb[56].mxu1 }
 0x293   : > { %v1229_v42 = vadd.f32 %v1228_v41, %v4864_v49  ;;  %v1230_v43 = vpop.f32.mrb[57].mxu1 }
 0x294   : > { %v1231_v44 = vadd.f32 %v1230_v43, %v4867_v32  ;;  %v1232_v45 = vpop.f32.mrb[58].mxu1  ;;  %1709 = vmatprep.mubr.bf16.mxu0 %v1338_v40 }
 0x295   : > { %v1233_v46 = vadd.f32 %v1232_v45, %v4864_v49  ;;  %v1234_v47 = vpop.f32.mrb[59].mxu1  ;;  %1710 = vmatmul.mubr.bf16.gmra.mrb[116].mxu0 %v1337_v39  ;;  %v1303_v50 = vmax.f32 %v1229_v42, 0.0 }
 0x296   : > { %v1235_v48 = vadd.f32 %v1234_v47, %v4867_v32  ;;  %v1304_v51 = vmax.f32 %v1231_v44, 0.0 }
 0x297   : > { %v1305_v33 = vmax.f32 %v1233_v46, 0.0 }
 0x298   : > { %v1306_v52 = vmax.f32 %v1235_v48, 0.0 }
 0x299   : > { %v1339_v53 = vpack.c.bf16 %v1305_v33, %v1303_v50 }
 0x29a   : > { %v1340_v54 = vpack.c.bf16 %v1306_v52, %v1304_v51  ;;  %v1238_v55 = vpop.f32.mrb[60].mxu1 }
 0x29b   : > { %v1239_v56 = vadd.f32 %v1238_v55, %v4864_v49  ;;  %v1240_v57 = vpop.f32.mrb[61].mxu1 }
 0x29c   : > { %v1241_v58 = vadd.f32 %v1240_v57, %v4867_v32  ;;  %v1242_v59 = vpop.f32.mrb[62].mxu1  ;;  %1719 = vmatprep.mubr.bf16.mxu0 %v1340_v54 }
 0x29d   : > { %v1243_v60 = vadd.f32 %v1242_v59, %v4864_v49  ;;  %v1244_v61 = vpop.f32.mrb[63].mxu1  ;;  %1720 = vmatmul.mubr.bf16.gmra.mrb[120].mxu0 %v1339_v53  ;;  %v1307_v63 = vmax.f32 %v1239_v56, 0.0  ;;  %v4940_v49 = vrot.slane %v1375_v6, %v4788_v29 }
 0x29e   : > { %v1245_v62 = vadd.f32 %v1244_v61, %v4867_v32  ;;  %v1308_v2 = vmax.f32 %v1241_v58, 0.0 }
 0x29f   : > { %v1309_v1 = vmax.f32 %v1243_v60, 0.0 }
 0x2a0   : > { %v1310_v3 = vmax.f32 %v1245_v62, 0.0 }
 0x2a1   : > { %v1341_v4 = vpack.c.bf16 %v1309_v1, %v1307_v63 }
 0x2a2   : > { %v1342_v5 = vpack.c.bf16 %v1310_v3, %v1308_v2 }
 0x2a4   : > { %1729 = vmatprep.mubr.bf16.mxu0 %v1342_v5 }
 0x2a5   : > { %1730 = vmatmul.mubr.bf16.gmra.mrb[124].mxu0 %v1341_v4 }
 0x300   : > { %v1581_v8 = vpop.f32.mrb[64].mxu0 }
 0x301   : > { %v1582_v32 = vadd.f32 %v1581_v8, %v4937_v7  ;;  %v1583_v9 = vpop.f32.mrb[65].mxu0 }
 0x302   : > { %v1584_v10 = vadd.f32 %v1583_v9, %v4940_v49  ;;  %v1585_v11 = vpop.f32.mrb[66].mxu0 }
 0x303   : > { %v1586_v12 = vadd.f32 %v1585_v11, %v4937_v7  ;;  %v1587_v13 = vpop.f32.mrb[67].mxu0  ;;  %v1740_v15 = vmax.f32 %v1582_v32, 0.0 }
 0x304   : > { %v1588_v14 = vadd.f32 %v1587_v13, %v4940_v49  ;;  %v1741_v17 = vmax.f32 %v1584_v10, 0.0 }
 0x305   : > { %v1742_v16 = vmax.f32 %v1586_v12, 0.0 }
 0x306   : > { %v1743_v18 = vmax.f32 %v1588_v14, 0.0 }
 0x307   : > { %v1804_v19 = vpack.c.bf16 %v1742_v16, %v1740_v15 }
 0x308   : > { %v1805_v20 = vpack.c.bf16 %v1743_v18, %v1741_v17  ;;  %v1591_v21 = vpop.f32.mrb[68].mxu0 }
 0x309   : > { %v1592_v22 = vadd.f32 %v1591_v21, %v4937_v7  ;;  %v1593_v23 = vpop.f32.mrb[69].mxu0 }
 0x30a   : > { %v1594_v25 = vadd.f32 %v1593_v23, %v4940_v49  ;;  %v1595_v26 = vpop.f32.mrb[70].mxu0  ;;  %2072 = vmatprep.mubr.bf16.mxu0 %v1805_v20 }
 0x30b   : > { %v1596_v27 = vadd.f32 %v1595_v26, %v4937_v7  ;;  %v1597_v0 = vpop.f32.mrb[71].mxu0  ;;  %2073 = vmatmul.mubr.bf16.vlgmr.msra.gmra.mrb[128].mxu0 %v1804_v19  ;;  %v1744_v31 = vmax.f32 %v1592_v22, 0.0 }
 0x30c   : > { %v1598_v30 = vadd.f32 %v1597_v0, %v4940_v49  ;;  %v1745_v35 = vmax.f32 %v1594_v25, 0.0 }
 0x30d   : > { %v1746_v34 = vmax.f32 %v1596_v27, 0.0 }
 0x30e   : > { %v1747_v36 = vmax.f32 %v1598_v30, 0.0 }
 0x30f   : > { %v1806_v37 = vpack.c.bf16 %v1746_v34, %v1744_v31 }
 0x310   : > { %v1807_v38 = vpack.c.bf16 %v1747_v36, %v1745_v35  ;;  %v1601_v39 = vpop.f32.mrb[72].mxu0 }
 0x311   : > { %v1602_v40 = vadd.f32 %v1601_v39, %v4937_v7  ;;  %v1603_v41 = vpop.f32.mrb[73].mxu0 }
 0x312   : > { %v1604_v42 = vadd.f32 %v1603_v41, %v4940_v49  ;;  %v1605_v43 = vpop.f32.mrb[74].mxu0  ;;  %2082 = vmatprep.mubr.bf16.mxu0 %v1807_v38 }
 0x313   : > { %v1606_v44 = vadd.f32 %v1605_v43, %v4937_v7  ;;  %v1607_v45 = vpop.f32.mrb[75].mxu0  ;;  %2083 = vmatmul.mubr.bf16.gmra.mrb[132].mxu0 %v1806_v37  ;;  %v1748_v47 = vmax.f32 %v1602_v40, 0.0 }
 0x314   : > { %v1608_v46 = vadd.f32 %v1607_v45, %v4940_v49  ;;  %v1749_v50 = vmax.f32 %v1604_v42, 0.0 }
 0x315   : > { %v1750_v48 = vmax.f32 %v1606_v44, 0.0 }
 0x316   : > { %v1751_v33 = vmax.f32 %v1608_v46, 0.0 }
 0x317   : > { %v1808_v51 = vpack.c.bf16 %v1750_v48, %v1748_v47 }
 0x318   : > { %v1809_v52 = vpack.c.bf16 %v1751_v33, %v1749_v50  ;;  %v1611_v53 = vpop.f32.mrb[76].mxu0 }
 0x319   : > { %v1612_v54 = vadd.f32 %v1611_v53, %v4937_v7  ;;  %v1613_v55 = vpop.f32.mrb[77].mxu0 }
 0x31a   : > { %v1614_v56 = vadd.f32 %v1613_v55, %v4940_v49  ;;  %v1615_v57 = vpop.f32.mrb[78].mxu0  ;;  %2092 = vmatprep.mubr.bf16.mxu0 %v1809_v52 }
 0x31b   : > { %v1616_v58 = vadd.f32 %v1615_v57, %v4937_v7  ;;  %v1617_v59 = vpop.f32.mrb[79].mxu0  ;;  %2093 = vmatmul.mubr.bf16.gmra.mrb[136].mxu0 %v1808_v51  ;;  %v1752_v61 = vmax.f32 %v1612_v54, 0.0 }
 0x31c   : > { %v1618_v60 = vadd.f32 %v1617_v59, %v4940_v49  ;;  %v1753_v63 = vmax.f32 %v1614_v56, 0.0 }
 0x31d   : > { %v1754_v62 = vmax.f32 %v1616_v58, 0.0 }
 0x31e   : > { %v1755_v1 = vmax.f32 %v1618_v60, 0.0 }
 0x31f   : > { %v1810_v2 = vpack.c.bf16 %v1754_v62, %v1752_v61 }
 0x320   : > { %v1811_v3 = vpack.c.bf16 %v1755_v1, %v1753_v63  ;;  %v1621_v4 = vpop.f32.mrb[80].mxu0 }
 0x321   : > { %v1622_v5 = vadd.f32 %v1621_v4, %v4937_v7  ;;  %v1623_v6 = vpop.f32.mrb[81].mxu0 }
 0x322   : > { %v1624_v8 = vadd.f32 %v1623_v6, %v4940_v49  ;;  %v1625_v32 = vpop.f32.mrb[82].mxu0  ;;  %2102 = vmatprep.mubr.bf16.mxu1 %v1811_v3 }
 0x323   : > { %v1626_v9 = vadd.f32 %v1625_v32, %v4937_v7  ;;  %v1627_v10 = vpop.f32.mrb[83].mxu0  ;;  %2103 = vmatmul.mubr.bf16.vlgmr.msra.gmra.mrb[64].mxu1 %v1810_v2  ;;  %v1756_v12 = vmax.f32 %v1622_v5, 0.0 }
 0x324   : > { %v1628_v11 = vadd.f32 %v1627_v10, %v4940_v49  ;;  %v1757_v14 = vmax.f32 %v1624_v8, 0.0 }
 0x325   : > { %v1758_v13 = vmax.f32 %v1626_v9, 0.0 }
 0x326   : > { %v1759_v15 = vmax.f32 %v1628_v11, 0.0 }
 0x327   : > { %v1812_v16 = vpack.c.bf16 %v1758_v13, %v1756_v12 }
 0x328   : > { %v1813_v17 = vpack.c.bf16 %v1759_v15, %v1757_v14  ;;  %v1631_v18 = vpop.f32.mrb[84].mxu0 }
 0x329   : > { %v1632_v19 = vadd.f32 %v1631_v18, %v4937_v7  ;;  %v1633_v20 = vpop.f32.mrb[85].mxu0 }
 0x32a   : > { %v1634_v21 = vadd.f32 %v1633_v20, %v4940_v49  ;;  %v1635_v22 = vpop.f32.mrb[86].mxu0  ;;  %2112 = vmatprep.mubr.bf16.mxu1 %v1813_v17 }
 0x32b   : > { %v1636_v23 = vadd.f32 %v1635_v22, %v4937_v7  ;;  %v1637_v25 = vpop.f32.mrb[87].mxu0  ;;  %2113 = vmatmul.mubr.bf16.gmra.mrb[68].mxu1 %v1812_v16  ;;  %v1760_v27 = vmax.f32 %v1632_v19, 0.0 }
 0x32c   : > { %v1638_v26 = vadd.f32 %v1637_v25, %v4940_v49  ;;  %v1761_v30 = vmax.f32 %v1634_v21, 0.0 }
 0x32d   : > { %v1762_v0 = vmax.f32 %v1636_v23, 0.0 }
 0x32e   : > { %v1763_v31 = vmax.f32 %v1638_v26, 0.0 }
 0x32f   : > { %v1814_v34 = vpack.c.bf16 %v1762_v0, %v1760_v27 }
 0x330   : > { %v1815_v35 = vpack.c.bf16 %v1763_v31, %v1761_v30  ;;  %v1641_v36 = vpop.f32.mrb[88].mxu0 }
 0x331   : > { %v1642_v37 = vadd.f32 %v1641_v36, %v4937_v7  ;;  %v1643_v38 = vpop.f32.mrb[89].mxu0 }
 0x332   : > { %v1644_v39 = vadd.f32 %v1643_v38, %v4940_v49  ;;  %v1645_v40 = vpop.f32.mrb[90].mxu0  ;;  %2122 = vmatprep.mubr.bf16.mxu1 %v1815_v35 }
 0x333   : > { %v1646_v41 = vadd.f32 %v1645_v40, %v4937_v7  ;;  %v1647_v42 = vpop.f32.mrb[91].mxu0  ;;  %2123 = vmatmul.mubr.bf16.gmra.mrb[72].mxu1 %v1814_v34  ;;  %v1764_v44 = vmax.f32 %v1642_v37, 0.0 }
 0x334   : > { %v1648_v43 = vadd.f32 %v1647_v42, %v4940_v49  ;;  %v1765_v46 = vmax.f32 %v1644_v39, 0.0 }
 0x335   : > { %v1766_v45 = vmax.f32 %v1646_v41, 0.0 }
 0x336   : > { %v1767_v47 = vmax.f32 %v1648_v43, 0.0 }
 0x337   : > { %v1816_v48 = vpack.c.bf16 %v1766_v45, %v1764_v44 }
 0x338   : > { %v1817_v50 = vpack.c.bf16 %v1767_v47, %v1765_v46  ;;  %v1651_v33 = vpop.f32.mrb[92].mxu0 }
 0x339   : > { %v1652_v51 = vadd.f32 %v1651_v33, %v4937_v7  ;;  %v1653_v52 = vpop.f32.mrb[93].mxu0 }
 0x33a   : > { %v1654_v53 = vadd.f32 %v1653_v52, %v4940_v49  ;;  %v1655_v54 = vpop.f32.mrb[94].mxu0  ;;  %2132 = vmatprep.mubr.bf16.mxu1 %v1817_v50 }
 0x33b   : > { %v1656_v55 = vadd.f32 %v1655_v54, %v4937_v7  ;;  %v1657_v56 = vpop.f32.mrb[95].mxu0  ;;  %2133 = vmatmul.mubr.bf16.gmra.mrb[76].mxu1 %v1816_v48  ;;  %v1768_v58 = vmax.f32 %v1652_v51, 0.0 }
 0x33c   : > { %v1658_v57 = vadd.f32 %v1657_v56, %v4940_v49  ;;  %v1769_v60 = vmax.f32 %v1654_v53, 0.0 }
 0x33d   : > { %v1770_v59 = vmax.f32 %v1656_v55, 0.0 }
 0x33e   : > { %v1771_v61 = vmax.f32 %v1658_v57, 0.0 }
 0x33f   : > { %v1818_v62 = vpack.c.bf16 %v1770_v59, %v1768_v58 }
 0x340   : > { %v1819_v63 = vpack.c.bf16 %v1771_v61, %v1769_v60  ;;  %v1661_v1 = vpop.f32.mrb[96].mxu0 }
 0x341   : > { %v1662_v2 = vadd.f32 %v1661_v1, %v4937_v7  ;;  %v1663_v3 = vpop.f32.mrb[97].mxu0 }
 0x342   : > { %v1664_v4 = vadd.f32 %v1663_v3, %v4940_v49  ;;  %v1665_v5 = vpop.f32.mrb[98].mxu0  ;;  %2142 = vmatprep.mubr.bf16.mxu1 %v1819_v63 }
 0x343   : > { %v1666_v6 = vadd.f32 %v1665_v5, %v4937_v7  ;;  %v1667_v8 = vpop.f32.mrb[99].mxu0  ;;  %2143 = vmatmul.mubr.bf16.gmra.mrb[80].mxu1 %v1818_v62  ;;  %v1772_v9 = vmax.f32 %v1662_v2, 0.0 }
 0x344   : > { %v1668_v32 = vadd.f32 %v1667_v8, %v4940_v49  ;;  %v1773_v11 = vmax.f32 %v1664_v4, 0.0 }
 0x345   : > { %v1774_v10 = vmax.f32 %v1666_v6, 0.0 }
 0x346   : > { %v1775_v12 = vmax.f32 %v1668_v32, 0.0 }
 0x347   : > { %v1820_v13 = vpack.c.bf16 %v1774_v10, %v1772_v9 }
 0x348   : > { %v1821_v14 = vpack.c.bf16 %v1775_v12, %v1773_v11  ;;  %v1671_v15 = vpop.f32.mrb[100].mxu0 }
 0x349   : > { %v1672_v16 = vadd.f32 %v1671_v15, %v4937_v7  ;;  %v1673_v17 = vpop.f32.mrb[101].mxu0 }
 0x34a   : > { %v1674_v18 = vadd.f32 %v1673_v17, %v4940_v49  ;;  %v1675_v19 = vpop.f32.mrb[102].mxu0  ;;  %2152 = vmatprep.mubr.bf16.mxu1 %v1821_v14 }
 0x34b   : > { %v1676_v20 = vadd.f32 %v1675_v19, %v4937_v7  ;;  %v1677_v21 = vpop.f32.mrb[103].mxu0  ;;  %2153 = vmatmul.mubr.bf16.gmra.mrb[84].mxu1 %v1820_v13  ;;  %v1776_v23 = vmax.f32 %v1672_v16, 0.0 }
 0x34c   : > { %v1678_v22 = vadd.f32 %v1677_v21, %v4940_v49  ;;  %v1777_v26 = vmax.f32 %v1674_v18, 0.0 }
 0x34d   : > { %v1778_v25 = vmax.f32 %v1676_v20, 0.0 }
 0x34e   : > { %v1779_v27 = vmax.f32 %v1678_v22, 0.0 }
 0x34f   : > { %v1822_v0 = vpack.c.bf16 %v1778_v25, %v1776_v23 }
 0x350   : > { %v1823_v30 = vpack.c.bf16 %v1779_v27, %v1777_v26  ;;  %v1681_v31 = vpop.f32.mrb[104].mxu0 }
 0x351   : > { %v1682_v34 = vadd.f32 %v1681_v31, %v4937_v7  ;;  %v1683_v35 = vpop.f32.mrb[105].mxu0 }
 0x352   : > { %v1684_v36 = vadd.f32 %v1683_v35, %v4940_v49  ;;  %v1685_v37 = vpop.f32.mrb[106].mxu0  ;;  %2162 = vmatprep.mubr.bf16.mxu1 %v1823_v30 }
 0x353   : > { %v1686_v38 = vadd.f32 %v1685_v37, %v4937_v7  ;;  %v1687_v39 = vpop.f32.mrb[107].mxu0  ;;  %2163 = vmatmul.mubr.bf16.gmra.mrb[88].mxu1 %v1822_v0  ;;  %v1780_v41 = vmax.f32 %v1682_v34, 0.0 }
 0x354   : > { %v1688_v40 = vadd.f32 %v1687_v39, %v4940_v49  ;;  %v1781_v43 = vmax.f32 %v1684_v36, 0.0 }
 0x355   : > { %v1782_v42 = vmax.f32 %v1686_v38, 0.0 }
 0x356   : > { %v1783_v44 = vmax.f32 %v1688_v40, 0.0 }
 0x357   : > { %v1824_v45 = vpack.c.bf16 %v1782_v42, %v1780_v41 }
 0x358   : > { %v1825_v46 = vpack.c.bf16 %v1783_v44, %v1781_v43  ;;  %v1691_v47 = vpop.f32.mrb[108].mxu0 }
 0x359   : > { %v1692_v48 = vadd.f32 %v1691_v47, %v4937_v7  ;;  %v1693_v50 = vpop.f32.mrb[109].mxu0 }
 0x35a   : > { %v1694_v33 = vadd.f32 %v1693_v50, %v4940_v49  ;;  %v1695_v51 = vpop.f32.mrb[110].mxu0  ;;  %2172 = vmatprep.mubr.bf16.mxu1 %v1825_v46 }
 0x35b   : > { %v1696_v52 = vadd.f32 %v1695_v51, %v4937_v7  ;;  %v1697_v53 = vpop.f32.mrb[111].mxu0  ;;  %2173 = vmatmul.mubr.bf16.gmra.mrb[92].mxu1 %v1824_v45  ;;  %v1784_v55 = vmax.f32 %v1692_v48, 0.0 }
 0x35c   : > { %v1698_v54 = vadd.f32 %v1697_v53, %v4940_v49  ;;  %v1785_v57 = vmax.f32 %v1694_v33, 0.0 }
 0x35d   : > { %v1786_v56 = vmax.f32 %v1696_v52, 0.0 }
 0x35e   : > { %v1787_v58 = vmax.f32 %v1698_v54, 0.0 }
 0x35f   : > { %v1826_v59 = vpack.c.bf16 %v1786_v56, %v1784_v55 }
 0x360   : > { %v1827_v60 = vpack.c.bf16 %v1787_v58, %v1785_v57  ;;  %v1701_v61 = vpop.f32.mrb[112].mxu0  ;;  %v1868_v58 = vld [vmem:[%s6646_s8] sm:$0x3] }
 0x361   : > { %v1702_v62 = vadd.f32 %v1701_v61, %v4937_v7  ;;  %v1703_v63 = vpop.f32.mrb[113].mxu0  ;;  %v5023_v61 = vld [vmem:[%s5017_s24] sm:$0xff] }
 0x362   : > { %v1704_v1 = vadd.f32 %v1703_v63, %v4940_v49  ;;  %v1705_v2 = vpop.f32.mrb[114].mxu0  ;;  %2182 = vmatprep.mubr.bf16.mxu1 %v1827_v60  ;;  %v5028_v63 = vld [vmem:[%s5017_s24 + $0x8] sm:$0xff] }
 0x363   : > { %v1706_v3 = vadd.f32 %v1705_v2, %v4937_v7  ;;  %v1707_v4 = vpop.f32.mrb[115].mxu0  ;;  %2183 = vmatmul.mubr.bf16.gmra.mrb[96].mxu1 %v1826_v59  ;;  %v1788_v6 = vmax.f32 %v1702_v62, 0.0  ;;  %v5010_v59 = vrot.slane %v1868_v58, %v4788_v29 }
 0x364   : > { %v1708_v5 = vadd.f32 %v1707_v4, %v4940_v49  ;;  %v1789_v32 = vmax.f32 %v1704_v1, 0.0  ;;  %v2489_v4 = vmul.f32 %v5023_v61, %v5023_v61 }
 0x365   : > { %v1790_v8 = vmax.f32 %v1706_v3, 0.0  ;;  %v5032_v3 = vld [vmem:[%s5017_s24 + $0x10] sm:$0xff] }
 0x366   : > { %v1791_v9 = vmax.f32 %v1708_v5, 0.0 }
 0x367   : > { %v1828_v10 = vpack.c.bf16 %v1790_v8, %v1788_v6  ;;  %v2490_v8 = vmul.f32 %v5028_v63, %v5028_v63 }
 0x368   : > { %v1829_v11 = vpack.c.bf16 %v1791_v9, %v1789_v32  ;;  %v1711_v12 = vpop.f32.mrb[116].mxu0  ;;  %v5039_v32 = vld [vmem:[%s5017_s24 + $0x18] sm:$0xff]  ;;  %v5042_v9 = vld [vmem:[%s5017_s24 + $0x20] sm:$0xff] }
 0x369   : > { %v1712_v13 = vadd.f32 %v1711_v12, %v4937_v7  ;;  %v1713_v14 = vpop.f32.mrb[117].mxu0  ;;  %v2491_v12 = vmul.f32 %v5032_v3, %v5032_v3 }
 0x36a   : > { %v1714_v15 = vadd.f32 %v1713_v14, %v4940_v49  ;;  %v1715_v16 = vpop.f32.mrb[118].mxu0  ;;  %2192 = vmatprep.mubr.bf16.mxu1 %v1829_v11  ;;  %v5048_v11 = vand.u32 127, %v482_v24 }
 0x36b   : > { %v1716_v17 = vadd.f32 %v1715_v16, %v4937_v7  ;;  %v1717_v18 = vpop.f32.mrb[119].mxu0  ;;  %2193 = vmatmul.mubr.bf16.gmra.mrb[100].mxu1 %v1828_v10  ;;  %v1792_v20 = vmax.f32 %v1712_v13, 0.0  ;;  %v5045_v10 = vld [vmem:[%s5017_s24 + $0x28] sm:$0xff]  ;;  %v5053_v13 = vrot.slane %v1868_v58, %v4783_v28  ;;  %v2492_v28 = vmul.f32 %v5039_v32, %v5039_v32 }
 0x36c   : > { %v1718_v19 = vadd.f32 %v1717_v18, %v4940_v49  ;;  %v1793_v22 = vmax.f32 %v1714_v15, 0.0  ;;  %v5063_v18 = vld [vmem:[%s5017_s24 + $0x38] sm:$0xff]  ;;  %vm3291_vm2 = vcmp.lt.s32.totalorder %v5048_v11, 8 }
 0x36d   : > { %v1794_v21 = vmax.f32 %v1716_v17, 0.0  ;;  %v5060_v17 = vld [vmem:[%s5017_s24 + $0x30] sm:$0xff] }
 0x36e   : > { %v1795_v23 = vmax.f32 %v1718_v19, 0.0  ;;  %v5066_v19 = vld [vmem:[%s5017_s24 + $0x40] sm:$0xff] }
 0x36f   : > { %v1830_v25 = vpack.c.bf16 %v1794_v21, %v1792_v20  ;;  %v5068_v20 = vmul.f32 -0.5, %v2489_v4  ;;  %v2493_v21 = vmul.f32 %v5042_v9, %v5042_v9  ;;  %v5147_v4 = vld [vmem:[%s5017_s24 + $0x88] sm:$0xff] }
 0x370   : > { %v1831_v26 = vpack.c.bf16 %v1795_v23, %v1793_v22  ;;  %v1721_v27 = vpop.f32.mrb[120].mxu0  ;;  %v2494_v22 = vmul.f32 %v5045_v10, %v5045_v10  ;;  %v5077_v23 = vld [vmem:[%s5017_s24 + $0x48] sm:$0xff] }
 0x371   : > { %v1722_v0 = vadd.f32 %v1721_v27, %v4937_v7  ;;  %v1723_v30 = vpop.f32.mrb[121].mxu0  ;;  %v5082_v27 = vmul.f32 -0.5, %v2490_v8 }
 0x372   : > { %v1724_v31 = vadd.f32 %v1723_v30, %v4940_v49  ;;  %v1725_v34 = vpop.f32.mrb[122].mxu0  ;;  %2202 = vmatprep.mubr.bf16.mxu1 %v1831_v26 }
 0x373   : > { %v1726_v35 = vadd.f32 %v1725_v34, %v4937_v7  ;;  %v1727_v36 = vpop.f32.mrb[123].mxu0  ;;  %2203 = vmatmul.mubr.bf16.gmra.mrb[104].mxu1 %v1830_v25  ;;  %v1796_v38 = vmax.f32 %v1722_v0, 0.0 }
 0x374   : > { %v1728_v37 = vadd.f32 %v1727_v36, %v4940_v49  ;;  %v1797_v40 = vmax.f32 %v1724_v31, 0.0  ;;  %v5087_v31 = vmul.f32 -0.5, %v2491_v12  ;;  %v2496_v36 = vmul.f32 %v5063_v18, %v5063_v18 }
 0x375   : > { %v1798_v39 = vmax.f32 %v1726_v35, 0.0  ;;  %v2495_v35 = vmul.f32 %v5060_v17, %v5060_v17 }
 0x376   : > { %v1799_v41 = vmax.f32 %v1728_v37, 0.0  ;;  %v2497_v37 = vmul.f32 %v5066_v19, %v5066_v19 }
 0x377   : > { %v1832_v42 = vpack.c.bf16 %v1798_v39, %v1796_v38  ;;  %v5096_v38 = vld [vmem:[%s5017_s24 + $0x50] sm:$0xff]  ;;  %v5099_v39 = vld [vmem:[%s5017_s24 + $0x58] sm:$0xff] }
 0x378   : > { %v1833_v43 = vpack.c.bf16 %v1799_v41, %v1797_v40  ;;  %v1731_v44 = vpop.f32.mrb[124].mxu0 }
 0x379   : > { %v1732_v45 = vadd.f32 %v1731_v44, %v4937_v7  ;;  %v1733_v46 = vpop.f32.mrb[125].mxu0  ;;  %v5108_v44 = vld [vmem:[%s5017_s24 + $0x68] sm:$0xff] }
 0x37a   : > { %v1734_v47 = vadd.f32 %v1733_v46, %v4940_v49  ;;  %v1735_v48 = vpop.f32.mrb[126].mxu0  ;;  %2212 = vmatprep.mubr.bf16.mxu1 %v1833_v43  ;;  %v5105_v43 = vld [vmem:[%s5017_s24 + $0x60] sm:$0xff]  ;;  %v5111_v46 = vmul.f32 -0.5, %v2492_v28  ;;  %v2502_v58 = vmul.f32 %v5108_v44, %v5108_v44 }
 0x37b   : > { %v1736_v50 = vadd.f32 %v1735_v48, %v4937_v7  ;;  %v1737_v33 = vpop.f32.mrb[127].mxu0  ;;  %2213 = vmatmul.mubr.bf16.gmra.mrb[108].mxu1 %v1832_v42  ;;  %v1800_v52 = vmax.f32 %v1732_v45, 0.0  ;;  %v2498_v42 = vmul.f32 %v5077_v23, %v5077_v23  ;;  %v5115_v48 = vmul.f32 -0.5, %v2494_v22 }
 0x37c   : > { %v1738_v51 = vadd.f32 %v1737_v33, %v4940_v49  ;;  %v1801_v54 = vmax.f32 %v1734_v47, 0.0  ;;  %v5113_v47 = vmul.f32 -0.5, %v2493_v21  ;;  %v2499_v33 = vmul.f32 %v5096_v38, %v5096_v38 }
 0x37d   : > { %v1802_v53 = vmax.f32 %v1736_v50, 0.0 }
 0x37e   : > { %v1803_v55 = vmax.f32 %v1738_v51, 0.0  ;;  %v2500_v51 = vmul.f32 %v5099_v39, %v5099_v39 }
 0x37f   : > { %v1834_v56 = vpack.c.bf16 %v1802_v53, %v1800_v52  ;;  %v5122_v52 = vld [vmem:[%s5017_s24 + $0x70] sm:$0xff]  ;;  %v5125_v53 = vld [vmem:[%s5017_s24 + $0x78] sm:$0xff] }
 0x380   : > { %v1835_v57 = vpack.c.bf16 %v1803_v55, %v1801_v54  ;;  %v5128_v54 = vld [vmem:[%s5017_s24 + $0x80] sm:$0xff]  ;;  %v2503_v8 = vmul.f32 %v5122_v52, %v5122_v52  ;;  %v2504_v12 = vmul.f32 %v5125_v53, %v5125_v53 }
 0x382   : > { %2222 = vmatprep.mubr.bf16.mxu1 %v1835_v57  ;;  %v2501_v57 = vmul.f32 %v5105_v43, %v5105_v43 }
 0x383   : > { %2223 = vmatmul.mubr.bf16.gmra.mrb[112].mxu1 %v1834_v56  ;;  %v5130_v56 = vmul.f32 -0.5, %v2495_v35 }
 0x3de   : > { %v5019_v7 = vpop.f32.mrb[128].mxu0 }
 0x3df   : > { %v2076_v49 = vpop.f32.mrb[129].mxu0 }
 0x3e0   : > { %v2077_v60 = vadd.f32 %v2076_v49, %v5010_v59  ;;  %v5025_v29 = vpop.f32.mrb[130].mxu0 }
 0x3e1   : > { %v2080_v62 = vpop.f32.mrb[131].mxu0 }
 0x3e2   : > { %v2233_v1 = vadd.f32 -1.0, %v2077_v60  ;;  %v2081_v2 = vadd.f32 %v2080_v62, %v5010_v59  ;;  %v5140_v62 = vmul.f32 -0.5, %v2496_v36  ;;  %v5168_v36 = vmul.f32 -0.5, %v2501_v57 }
 0x3e3   : > { %v5187_v57 = vmul.f32 -0.5, %v2503_v8  ;;  %v2075_v8 = vadd.f32 %v5019_v7, %v5053_v13  ;;  %v2079_v7 = vadd.f32 %v5025_v29, %v5053_v13 }
 0x3e4   : > { %v2265_v5 = vmax.f32 %v2233_v1, -20.0  ;;  %v2234_v6 = vadd.f32 -1.0, %v2081_v2  ;;  %v5142_v1 = vmul.f32 -0.5, %v2497_v37  ;;  %v5144_v2 = vmul.f32 -0.5, %v2498_v42  ;;  %6755 = vst [vmem:[#allocation21_spill] sm:$0xff] %v5168_v36  ;;  %v5178_v42 = vld [vmem:[%s5017_s24 + $0xa0] sm:$0xff] }
 0x3e5   : > { %v5170_v37 = vmul.f32 -0.5, %v2502_v58  ;;  %6758 = vst [vmem:[#allocation24_spill] sm:$0xff] %v5178_v42  ;;  %6760 = vst [vmem:[#allocation26_spill] sm:$0xff] %v5187_v57  ;;  %v5189_v58 = vmul.f32 -0.5, %v2504_v12 }
 0x3e6   : > { %v5055_v14 = vmin.f32 %v2265_v5, 2.0  ;;  %v2266_v15 = vmax.f32 %v2234_v6, -20.0  ;;  %v5057_v16 = vpop.f32.mrb[132].mxu0 }
 0x3e7   : > { %v2086_v24 = vpop.f32.mrb[133].mxu0  ;;  %6756 = vst [vmem:[#allocation22_spill] sm:$0xff] %v5170_v37  ;;  %6761 = vst [vmem:[#allocation27_spill] sm:$0xff] %v5189_v58 }
 0x3e8   : > { %v2329_v25 = vmul.f32 1.442695, %v5055_v14  ;;  %v5080_v26 = vmin.f32 %v2266_v15, 2.0  ;;  %v2087_v0 = vadd.f32 %v2086_v24, %v5010_v59  ;;  %v5085_v30 = vpop.f32.mrb[134].mxu0  ;;  %v2505_v15 = vmul.f32 %v5128_v54, %v5128_v54  ;;  %v5156_v24 = vld [vmem:[%s5017_s24 + $0x90] sm:$0xff] }
 0x3e9   : > { %v2090_v34 = vpop.f32.mrb[135].mxu0  ;;  %6752 = vst [vmem:[#allocation18_spill] sm:$0xff] %v5156_v24 }
 0x3ea   : > { %4062 = vpow2.f32 %v2329_v25  ;;  %v2331_v40 = vmul.f32 1.442695, %v5080_v26  ;;  %v2235_v41 = vadd.f32 -1.0, %v2087_v0  ;;  %v2091_v45 = vadd.f32 %v2090_v34, %v5010_v59 }
 0x3eb   : > { %v5162_v25 = vmul.f32 -0.5, %v2499_v33  ;;  %v5164_v0 = vmul.f32 -0.5, %v2500_v51  ;;  %v2507_v33 = vmul.f32 %v5156_v24, %v5156_v24  ;;  %v5184_v51 = vld [vmem:[%s5017_s24 + $0xa8] sm:$0xff] }
 0x3ec   : > { %4064 = vpow2.f32 %v2331_v40  ;;  %v2267_v50 = vmax.f32 %v2235_v41, -20.0  ;;  %v2236_v55 = vadd.f32 -1.0, %v2091_v45  ;;  %v2506_v40 = vmul.f32 %v5147_v4, %v5147_v4  ;;  %v5175_v41 = vld [vmem:[%s5017_s24 + $0x98] sm:$0xff]  ;;  %6759 = vst [vmem:[#allocation25_spill] sm:$0xff] %v5184_v51 }
 0x3ed   : > { %6753 = vst [vmem:[#allocation19_spill] sm:$0xff] %v5162_v25  ;;  %6754 = vst [vmem:[#allocation20_spill] sm:$0xff] %v5164_v0 }
 0x3ee   : > { %v5136_v49 = vmin.f32 %v2267_v50, 2.0  ;;  %v5138_v60 = vpop.f32.mrb[136].mxu0  ;;  %v2268_v5 = vmax.f32 %v2236_v55, -20.0  ;;  %6757 = vst [vmem:[#allocation23_spill] sm:$0xff] %v5175_v41  ;;  %v5209_v57 = vmul.f32 -0.5, %v2506_v40 }
 0x3ef   : > { %v2096_v6 = vpop.f32.mrb[137].mxu0 }
 0x3f0   : > { %v2333_v28 = vmul.f32 1.442695, %v5136_v49  ;;  %v2097_v21 = vadd.f32 %v2096_v6, %v5010_v59  ;;  %v5160_v22 = vpop.f32.mrb[138].mxu0  ;;  %v5166_v34 = vmin.f32 %v2268_v5, 2.0  ;;  %v5191_v5 = vmul.f32 -0.5, %v2505_v15  ;;  %6764 = vst [vmem:[#allocation30_spill] sm:$0xff] %v5209_v57 }
 0x3f1   : > { %v2100_v35 = vpop.f32.mrb[139].mxu0  ;;  %v2510_v15 = vmul.f32 %v5184_v51, %v5184_v51 }
 0x3f2   : > { %4066 = vpow2.f32 %v2333_v28  ;;  %v2237_v45 = vadd.f32 -1.0, %v2097_v21  ;;  %v2101_v50 = vadd.f32 %v2100_v35, %v5010_v59  ;;  %v2335_v55 = vmul.f32 1.442695, %v5166_v34  ;;  %6762 = vst [vmem:[#allocation28_spill] sm:$0xff] %v5191_v5  ;;  %v5198_v35 = vld [vmem:[%s5017_s24 + $0xb0] sm:$0xff] }
 0x3f3   : > { %v2508_v28 = vmul.f32 %v5175_v41, %v5175_v41  ;;  %v2509_v21 = vmul.f32 %v5178_v42, %v5178_v42  ;;  %6763 = vst [vmem:[#allocation29_spill] sm:$0xff] %v5198_v35  ;;  %v5211_v42 = vmul.f32 -0.5, %v2507_v33 }
 0x3f4   : > { %v4063_v6 = vpop.eup %4062  ;;  %v2269_v37 = vmax.f32 %v2237_v45, -20.0  ;;  %v2238_v36 = vadd.f32 -1.0, %v2101_v50  ;;  %4068 = vpow2.f32 %v2335_v55 }
 0x3f5   : > { %v2425_v12 = vmul.f32 %v4063_v6, %v5023_v61  ;;  %6765 = vst [vmem:[#allocation31_spill] sm:$0xff] %v5211_v42  ;;  %v2511_v6 = vmul.f32 %v5198_v35, %v5198_v35  ;;  %v5238_v35 = vmul.f32 -0.5, %v2510_v15  ;;  %v2585_v15 = vsub.f32 %v5068_v20, %v5055_v14 }
 0x3f6   : > { %v4065_v45 = vpop.eup %4064  ;;  %v5205_v50 = vmin.f32 %v2269_v37, 2.0  ;;  %v2270_v5 = vmax.f32 %v2238_v36, -20.0  ;;  %v5207_v58 = vpop.f32.mrb[64].mxu1  ;;  %v5221_v37 = vld [vmem:[%s5017_s24 + $0xb8] sm:$0xff] }
 0x3f7   : > { %v5213_v41 = vadd.f32 %v2425_v12, %v2075_v8  ;;  %v2426_v61 = vmul.f32 %v4065_v45, %v5028_v63  ;;  %v2106_v55 = vpop.f32.mrb[65].mxu1  ;;  %6767 = vst [vmem:[#allocation33_spill] sm:$0xff] %v5221_v37  ;;  %v5229_v8 = vmul.f32 -0.5, %v2508_v28  ;;  %v5236_v45 = vmul.f32 -0.5, %v2509_v21  ;;  %6771 = vst [vmem:[#allocation37_spill] sm:$0xff] %v5238_v35  ;;  %v5255_v35 = vld [vmem:[%s5017_s24 + $0xc0] sm:$0xff] }
 0x3f8   : > { %v2337_v36 = vmul.f32 1.442695, %v5205_v50  ;;  %v5224_v51 = vmin.f32 %v2270_v5, 2.0  ;;  %v2107_v40 = vadd.f32 %v2106_v55, %v5010_v59  ;;  %v5227_v33 = vpop.f32.mrb[66].mxu1  ;;  %v2512_v55 = vmul.f32 %v5221_v37, %v5221_v37  ;;  %6773 = vst [vmem:[#allocation39_spill] sm:$0xff] %v5255_v35 }
 0x3f9   : > { %6766 = vst [vmem:[#allocation32_spill] sm:$0xff] %v5213_v41  ;;  %6768 = vst [vmem:[#allocation34_spill] sm:$0xff] %v5229_v8  ;;  %v5231_v12 = vadd.f32 %v2426_v61, %v2079_v7  ;;  %v2110_v29 = vpop.f32.mrb[67].mxu1  ;;  %v5234_v63 = vmul.f32 -2.0, %v5213_v41  ;;  %v2085_v28 = vadd.f32 %v5057_v16, %v5053_v13  ;;  %v5247_v8 = vmul.f32 -0.5, %v2511_v6 }
 0x3fa   : > { %6770 = vst [vmem:[#allocation36_spill] sm:$0xff] %v5236_v45  ;;  %4070 = vpow2.f32 %v2337_v36  ;;  %v2339_v5 = vmul.f32 1.442695, %v5224_v51  ;;  %v2239_v42 = vadd.f32 -1.0, %v2107_v40  ;;  %v2111_v7 = vadd.f32 %v2110_v29, %v5010_v59 }
 0x3fb   : > { %6769 = vst [vmem:[#allocation35_spill] sm:$0xff] %v5231_v12  ;;  %v2745_v61 = vand.u32 2147483647, %v5234_v63  ;;  %6772 = vst [vmem:[#allocation38_spill] sm:$0xff] %v5247_v8  ;;  %v5252_v40 = vmul.f32 -2.0, %v5231_v12  ;;  %v2586_v16 = vsub.f32 %v5082_v27, %v5080_v26  ;;  %v2089_v6 = vadd.f32 %v5085_v30, %v5053_v13 }
 0x3fc   : > { %v4067_v21 = vpop.eup %4066  ;;  %4072 = vpow2.f32 %v2339_v5  ;;  %v2271_v36 = vmax.f32 %v2239_v42, -20.0  ;;  %v2240_v37 = vadd.f32 -1.0, %v2111_v7  ;;  %v5267_v42 = vmul.f32 -0.5, %v2512_v55 }
 0x3fd   : > { %v2427_v29 = vmul.f32 %v4067_v21, %v5032_v3  ;;  %v2777_v45 = vsub.f32 0.0, %v2745_v61  ;;  %v2746_v20 = vand.u32 2147483647, %v5252_v40  ;;  %v2513_v3 = vmul.f32 %v5255_v35, %v5255_v35 }
 0x3fe   : > { %v5262_v8 = vmin.f32 %v2271_v36, 2.0  ;;  %v5264_v14 = vpop.f32.mrb[68].mxu1  ;;  %6774 = vst [vmem:[#allocation40_spill] sm:$0xff] %v5267_v42  ;;  %v4069_v5 = vpop.eup %4068  ;;  %v2272_v0 = vmax.f32 %v2240_v37, -20.0  ;;  %v5278_v55 = vadd.f32 -0.9189385, %v2585_v15 }
 0x3ff   : > { %v5269_v57 = vadd.f32 %v2427_v29, %v2085_v28  ;;  %v2116_v26 = vpop.f32.mrb[69].mxu1  ;;  %v2809_v27 = vmul.f32 1.442695, %v2777_v45  ;;  %v2428_v30 = vmul.f32 %v4069_v5, %v5039_v32  ;;  %v5282_v37 = vadd.f32 -0.9189385, %v2586_v16  ;;  %v5288_v5 = vld [vmem:[%s5017_s24 + $0xc8] sm:$0xff] }
 0x400   : > { %v2341_v7 = vmul.f32 1.442695, %v5262_v8  ;;  %v2117_v61 = vadd.f32 %v2116_v26, %v5010_v59  ;;  %v5276_v21 = vpop.f32.mrb[70].mxu1  ;;  %v5280_v36 = vmin.f32 %v2272_v0, 2.0  ;;  %v2778_v45 = vsub.f32 0.0, %v2746_v20  ;;  %6777 = vst [vmem:[#allocation43_spill] sm:$0xff] %v5288_v5 }
 0x401   : > { %6775 = vst [vmem:[#allocation41_spill] sm:$0xff] %v5269_v57  ;;  %v2120_v28 = vpop.f32.mrb[71].mxu1  ;;  %4074 = vpow2.f32 %v2809_v27  ;;  %v5284_v29 = vadd.f32 %v2428_v30, %v2089_v6  ;;  %v2587_v26 = vsub.f32 %v5087_v31, %v5136_v49  ;;  %v5293_v35 = vmul.f32 -0.5, %v2513_v3 }
 0x402   : > { %4076 = vpow2.f32 %v2341_v7  ;;  %v2241_v42 = vadd.f32 -1.0, %v2117_v61  ;;  %v2121_v32 = vadd.f32 %v2120_v28, %v5010_v59  ;;  %v2343_v15 = vmul.f32 1.442695, %v5280_v36 }
 0x403   : > { %6776 = vst [vmem:[#allocation42_spill] sm:$0xff] %v5284_v29  ;;  %v2811_v0 = vmul.f32 1.442695, %v2778_v45  ;;  %6778 = vst [vmem:[#allocation44_spill] sm:$0xff] %v5293_v35  ;;  %v2095_v16 = vadd.f32 %v5138_v60, %v5053_v13  ;;  %v5298_v30 = vmul.f32 -2.0, %v5269_v57  ;;  %v2588_v7 = vsub.f32 %v5111_v46, %v5166_v34 }
 0x404   : > { %v4071_v27 = vpop.eup %4070  ;;  %v2273_v6 = vmax.f32 %v2241_v42, -20.0  ;;  %v2242_v20 = vadd.f32 -1.0, %v2121_v32  ;;  %4078 = vpow2.f32 %v2343_v15  ;;  %v2514_v31 = vmul.f32 %v5288_v5, %v5288_v5 }
 0x405   : > { %v2429_v61 = vmul.f32 %v4071_v27, %v5042_v9  ;;  %v2099_v3 = vadd.f32 %v5160_v22, %v5053_v13  ;;  %4080 = vpow2.f32 %v2811_v0  ;;  %v5314_v9 = vadd.f32 -0.9189385, %v2587_v26 }
 0x406   : > { %v4073_v49 = vpop.eup %4072  ;;  %v5307_v28 = vmin.f32 %v2273_v6, 2.0  ;;  %v2274_v60 = vmax.f32 %v2242_v20, -20.0  ;;  %v5309_v42 = vpop.f32.mrb[72].mxu1  ;;  %v2747_v32 = vand.u32 2147483647, %v5298_v30  ;;  %v5324_v20 = vmul.f32 -2.0, %v5284_v29 }
 0x407   : > { %v5311_v45 = vadd.f32 %v2429_v61, %v2095_v16  ;;  %v2430_v46 = vmul.f32 %v4073_v49, %v5045_v10  ;;  %v2126_v34 = vpop.f32.mrb[73].mxu1  ;;  %v5328_v61 = vadd.f32 -0.9189385, %v2588_v7  ;;  %v5330_v26 = vmul.f32 -0.5, %v2514_v31 }
 0x408   : > { %v2345_v15 = vmul.f32 1.442695, %v5307_v28  ;;  %v5318_v27 = vmin.f32 %v2274_v60, 2.0  ;;  %v2127_v22 = vadd.f32 %v2126_v34, %v5010_v59  ;;  %v5321_v6 = vpop.f32.mrb[74].mxu1  ;;  %v2779_v10 = vsub.f32 0.0, %v2747_v32 }
 0x409   : > { %6779 = vst [vmem:[#allocation45_spill] sm:$0xff] %v5311_v45  ;;  %v5326_v0 = vadd.f32 %v2430_v46, %v2099_v3  ;;  %v2130_v16 = vpop.f32.mrb[75].mxu1  ;;  %6781 = vst [vmem:[#allocation47_spill] sm:$0xff] %v5330_v26  ;;  %v2105_v49 = vadd.f32 %v5207_v58, %v5053_v13  ;;  %v2589_v5 = vsub.f32 %v5113_v47, %v5205_v50 }
 0x40a   : > { %4082 = vpow2.f32 %v2345_v15  ;;  %v2347_v60 = vmul.f32 1.442695, %v5318_v27  ;;  %v2243_v34 = vadd.f32 -1.0, %v2127_v22  ;;  %v2109_v3 = vadd.f32 %v5227_v33, %v5053_v13  ;;  %v5366_v33 = vld [vmem:[%s5017_s24 + $0xd0] sm:$0xff] }
 0x40b   : > { %6780 = vst [vmem:[#allocation46_spill] sm:$0xff] %v5326_v0  ;;  %v5335_v35 = vpop.eup %4074  ;;  %v2131_v7 = vadd.f32 %v2130_v16, %v5010_v59  ;;  %v2813_v46 = vmul.f32 1.442695, %v2779_v10  ;;  %v2748_v15 = vand.u32 2147483647, %v5324_v20  ;;  %v2590_v22 = vsub.f32 %v5115_v48, %v5224_v51  ;;  %6785 = vst [vmem:[#allocation51_spill] sm:$0xff] %v5366_v33 }
 0x40c   : > { %v4077_v31 = vpop.eup %4076  ;;  %4084 = vpow2.f32 %v2347_v60  ;;  %v2275_v32 = vmax.f32 %v2243_v34, -20.0  ;;  %v2873_v58 = vadd.f32 1.0, %v5335_v35 }
 0x40d   : > { %v2431_v26 = vmul.f32 %v4077_v31, %v5060_v17  ;;  %v2244_v25 = vadd.f32 -1.0, %v2131_v7  ;;  %4086 = vpow2.f32 %v2813_v46  ;;  %v5356_v17 = vadd.f32 -0.9189385, %v2589_v5 }
 0x40e   : > { %v5347_v47 = vmin.f32 %v2275_v32, 2.0  ;;  %v5349_v50 = vpop.f32.mrb[76].mxu1  ;;  %4088 = vlog2.f32 %v2873_v58  ;;  %v4079_v10 = vpop.eup %4078  ;;  %v2780_v58 = vsub.f32 0.0, %v2748_v15  ;;  %v5372_v48 = vadd.f32 -0.9189385, %v2590_v22 }
 0x40f   : > { %v5353_v60 = vadd.f32 %v2431_v26, %v2105_v49  ;;  %v2276_v34 = vmax.f32 %v2244_v25, -20.0  ;;  %v2136_v24 = vpop.f32.mrb[77].mxu1  ;;  %6784 = vst [vmem:[#allocation50_spill] sm:$0xff] %v5356_v17  ;;  %v5358_v51 = vpop.eup %4080  ;;  %v2432_v7 = vmul.f32 %v4079_v10, %v5063_v18  ;;  %v2876_v49 = vmul.f32 -0.5, %v5335_v35 }
 0x410   : > { %6782 = vst [vmem:[#allocation48_spill] sm:$0xff] %v5347_v47  ;;  %v2349_v46 = vmul.f32 1.442695, %v5347_v47  ;;  %v2137_v31 = vadd.f32 %v2136_v24, %v5010_v59  ;;  %v5363_v32 = vpop.f32.mrb[78].mxu1  ;;  %v2882_v5 = vadd.f32 1.0, %v5358_v51  ;;  %6787 = vst [vmem:[#allocation53_spill] sm:$0xff] %v5372_v48  ;;  %v2125_v15 = vadd.f32 %v5309_v42, %v5053_v13 }
 0x411   : > { %6783 = vst [vmem:[#allocation49_spill] sm:$0xff] %v5353_v60  ;;  %v5368_v26 = vmin.f32 %v2276_v34, 2.0  ;;  %v2140_v25 = vpop.f32.mrb[79].mxu1  ;;  %v5374_v16 = vadd.f32 %v2432_v7, %v2109_v3  ;;  %v5381_v34 = vmul.f32 %v5366_v33, %v5366_v33  ;;  %v2879_v22 = vand.u32 2147483647, %v5335_v35 }
 0x412   : > { %4090 = vpow2.f32 %v2349_v46  ;;  %v2245_v18 = vadd.f32 -1.0, %v2137_v31  ;;  %v2141_v24 = vadd.f32 %v2140_v25, %v5010_v59  ;;  %v2815_v3 = vmul.f32 1.442695, %v2780_v58 }
 0x413   : > { %6786 = vst [vmem:[#allocation52_spill] sm:$0xff] %v5368_v26  ;;  %6788 = vst [vmem:[#allocation54_spill] sm:$0xff] %v5374_v16  ;;  %v2351_v10 = vmul.f32 1.442695, %v5368_v26  ;;  %4092 = vlog2.f32 %v2882_v5  ;;  %v2115_v7 = vadd.f32 %v5264_v14, %v5053_v13  ;;  %v2877_v31 = vadd.f32 1.0, %v2876_v49 }
 0x414   : > { %6789 = vst [vmem:[#allocation55_spill] sm:$0xff] %v5381_v34  ;;  %v4083_v17 = vpop.eup %4082  ;;  %v2277_v47 = vmax.f32 %v2245_v18, -20.0  ;;  %v2246_v60 = vadd.f32 -1.0, %v2141_v24  ;;  %v2119_v5 = vadd.f32 %v5276_v21, %v5053_v13  ;;  %vm5407_vm1 = vcmp.lt.f32.partialorder %v2879_v22, 0.0004427343 }
 0x415   : > { %v2433_v46 = vmul.f32 %v4083_v17, %v5066_v19  ;;  %4094 = vpow2.f32 %v2351_v10  ;;  %v2885_v17 = vmul.f32 -0.5, %v5358_v51  ;;  %v2888_v48 = vand.u32 2147483647, %v5358_v51 }
 0x416   : > { %v4085_v25 = vpop.eup %4084  ;;  %v5391_v34 = vmin.f32 %v2277_v47, 2.0  ;;  %v2278_v18 = vmax.f32 %v2246_v60, -20.0  ;;  %v5393_v24 = vpop.f32.mrb[80].mxu1  ;;  %4096 = vpow2.f32 %v2815_v3  ;;  %v2129_v16 = vadd.f32 %v5321_v6, %v5053_v13 }
 0x417   : > { %v5395_v58 = vpop.eup %4086  ;;  %v5397_v33 = vadd.f32 %v2433_v46, %v2115_v7  ;;  %v2434_v19 = vmul.f32 %v4085_v25, %v5077_v23  ;;  %v2146_v14 = vpop.f32.mrb[81].mxu1  ;;  %v2878_v25 = vmul.f32 %v5335_v35, %v2877_v31  ;;  %v6796_v31 = vmax.f32 %v5234_v63, 0.0 }
 0x418   : > { %6790 = vst [vmem:[#allocation56_spill] sm:$0xff] %v5391_v34  ;;  %v4089_v49 = vpop.eup %4088  ;;  %v2353_v21 = vmul.f32 1.442695, %v5391_v34  ;;  %v5402_v10 = vmin.f32 %v2278_v18, 2.0  ;;  %v2147_v42 = vadd.f32 %v2146_v14, %v5010_v59  ;;  %v5405_v47 = vpop.f32.mrb[82].mxu1  ;;  %v2891_v3 = vadd.f32 1.0, %v5395_v58 }
 0x419   : > { %6791 = vst [vmem:[#allocation57_spill] sm:$0xff] %v5397_v33  ;;  %v5411_v7 = vadd.f32 %v2434_v19, %v2119_v5  ;;  %v2150_v23 = vpop.f32.mrb[83].mxu1  ;;  %v2875_v46 = vmul.f32 0.6931472, %v4089_v49  ;;  %v2886_v19 = vadd.f32 1.0, %v2885_v17  ;;  %v2135_v60 = vadd.f32 %v5349_v50, %v5053_v13 }
 0x41a   : > { %6792 = vst [vmem:[#allocation58_spill] sm:$0xff] %v5402_v10  ;;  %4098 = vpow2.f32 %v2353_v21  ;;  %v2355_v18 = vmul.f32 1.442695, %v5402_v10  ;;  %v2247_v14 = vadd.f32 -1.0, %v2147_v42  ;;  %v2151_v22 = vadd.f32 %v2150_v23, %v5010_v59 }
 0x41b   : > { %6795 = vst [vmem:[#allocation59_spill] sm:$0xff] %v5411_v7  ;;  %v2881_v5 = vsel %vm5407_vm1, %v2878_v25, %v2875_v46  ;;  %4100 = vlog2.f32 %v2891_v3  ;;  %v2894_v21 = vmul.f32 -0.5, %v5395_v58  ;;  %v2139_v17 = vadd.f32 %v5363_v32, %v5053_v13 }
 0x41c   : > { %v4091_v49 = vpop.eup %4090  ;;  %4102 = vpow2.f32 %v2355_v18  ;;  %v2279_v35 = vmax.f32 %v2247_v14, -20.0  ;;  %v3161_v7 = vadd.f32 %v2881_v5, %v6796_v31  ;;  %v2248_v23 = vadd.f32 -1.0, %v2151_v22 }
 0x41d   : > { %v4093_v33 = vpop.eup %4092  ;;  %v2435_v42 = vmul.f32 %v4091_v49, %v5096_v38  ;;  %v6798_v63 = vsub.f32 0.6931472, %v5213_v41  ;;  %v2887_v49 = vmul.f32 %v5358_v51, %v2886_v19  ;;  %vm5440_vm3 = vcmp.lt.f32.partialorder %v2888_v48, 0.0004427343 }
 0x41e   : > { %v5431_v46 = vmin.f32 %v2279_v35, 2.0  ;;  %v5433_v25 = vpop.f32.mrb[84].mxu1  ;;  %v2884_v18 = vmul.f32 0.6931472, %v4093_v33  ;;  %v2280_v5 = vmax.f32 %v2248_v23, -20.0  ;;  %v2895_v33 = vadd.f32 1.0, %v2894_v21 }
 0x41f   : > { %v3193_v3 = vsub.f32 %v6798_v63, %v3161_v7  ;;  %v4095_v14 = vpop.eup %4094  ;;  %v5437_v38 = vadd.f32 %v2435_v42, %v2125_v15  ;;  %v2156_v6 = vpop.f32.mrb[85].mxu1  ;;  %v5456_v51 = vmul.f32 -2.0, %v5311_v45 }
 0x420   : > { %6797 = vst [vmem:[#allocation60_spill] sm:$0xff] %v5431_v46  ;;  %v2436_v32 = vmul.f32 %v4095_v14, %v5099_v39  ;;  %v2357_v22 = vmul.f32 1.442695, %v5431_v46  ;;  %v2157_v35 = vadd.f32 %v2156_v6, %v5010_v59  ;;  %v5447_v31 = vpop.f32.mrb[86].mxu1  ;;  %v5449_v7 = vpop.eup %4096  ;;  %v5451_v15 = vmin.f32 %v2280_v5, 2.0 }
 0x421   : > { %6799 = vst [vmem:[#allocation61_spill] sm:$0xff] %v5437_v38  ;;  %v2160_v42 = vpop.f32.mrb[87].mxu1  ;;  %v3225_v23 = vmul.f32 2.0, %v3193_v3  ;;  %v2890_v48 = vsel %vm5440_vm3, %v2887_v49, %v2884_v18  ;;  %v6804_v5 = vmax.f32 %v5252_v40, 0.0  ;;  %v2897_v3 = vand.u32 2147483647, %v5395_v58 }
 0x422   : > { %6802 = vst [vmem:[#allocation62_spill] sm:$0xff] %v5451_v15  ;;  %v5458_v39 = vadd.f32 %v2436_v32, %v2129_v16  ;;  %4104 = vpow2.f32 %v2357_v22  ;;  %v2249_v19 = vadd.f32 -1.0, %v2157_v35  ;;  %v2161_v63 = vadd.f32 %v2160_v42, %v5010_v59 }
 0x423   : > { %v2359_v21 = vmul.f32 1.442695, %v5451_v15  ;;  %v3257_v14 = vsub.f32 %v5278_v55, %v3225_v23  ;;  %v3162_v6 = vadd.f32 %v2890_v48, %v6804_v5  ;;  %v2896_v41 = vmul.f32 %v5395_v58, %v2895_v33 }
 0x424   : > { %6803 = vst [vmem:[#allocation63_spill] sm:$0xff] %v5458_v39  ;;  %v4099_v50 = vpop.eup %4098  ;;  %v2281_v18 = vmax.f32 %v2249_v19, -20.0  ;;  %v2250_v49 = vadd.f32 -1.0, %v2161_v63  ;;  %v2900_v16 = vadd.f32 1.0, %v5449_v7  ;;  %v6805_v55 = vsub.f32 0.6931472, %v5231_v12 }
 0x425   : > { %v4101_v32 = vpop.eup %4100  ;;  %v2437_v22 = vmul.f32 %v4099_v50, %v5105_v43  ;;  %4106 = vpow2.f32 %v2359_v21  ;;  %v3292_v35 = vsel %vm3291_vm2, %v3257_v14, 0.0  ;;  %v2903_v14 = vmul.f32 -0.5, %v5449_v7 }
 0x426   : > { %v3194_v40 = vsub.f32 %v6805_v55, %v3162_v6  ;;  %v4103_v42 = vpop.eup %4102  ;;  %v5473_v23 = vmin.f32 %v2281_v18, 2.0  ;;  %v2282_v48 = vmax.f32 %v2250_v49, -20.0  ;;  %3324 = vadd.xlane.f32.xlu0 %v3292_v35  ;;  %v5475_v19 = vpop.f32.mrb[88].mxu1  ;;  %v2893_v58 = vmul.f32 0.6931472, %v4101_v32 }
 0x427   : > { %4108 = vlog2.f32 %v2900_v16  ;;  %v5477_v33 = vadd.f32 %v2437_v22, %v2135_v60  ;;  %v2438_v43 = vmul.f32 %v4103_v42, %v5108_v44  ;;  %v2166_v63 = vpop.f32.mrb[89].mxu1  ;;  %vm2898_vm4 = vcmp.lt.f32.partialorder %v2897_v3, 0.0004427343 }
 0x428   : > { %6806 = vst [vmem:[#allocation64_spill] sm:$0xff] %v5473_v23  ;;  %v3226_v21 = vmul.f32 2.0, %v3194_v40  ;;  %v2361_v5 = vmul.f32 1.442695, %v5473_v23  ;;  %v5482_v6 = vmin.f32 %v2282_v48, 2.0  ;;  %v2167_v50 = vadd.f32 %v2166_v63, %v5010_v59  ;;  %v5485_v18 = vpop.f32.mrb[90].mxu1 }
 0x429   : > { %6807 = vst [vmem:[#allocation65_spill] sm:$0xff] %v5477_v33  ;;  %v5487_v49 = vadd.f32 %v2438_v43, %v2139_v17  ;;  %v2170_v16 = vpop.f32.mrb[91].mxu1  ;;  %v2715_v44 = vmax.f32 %v5298_v30, 0.0  ;;  %v2899_v32 = vsel %vm2898_vm4, %v2896_v41, %v2893_v58  ;;  %v2651_v55 = vsub.f32 0.6931472, %v5269_v57 }
 0x42a   : > { %6808 = vst [vmem:[#allocation66_spill] sm:$0xff] %v5482_v6  ;;  %v3258_v60 = vsub.f32 %v5282_v37, %v3226_v21  ;;  %4110 = vpow2.f32 %v2361_v5  ;;  %v2363_v22 = vmul.f32 1.442695, %v5482_v6  ;;  %v2251_v35 = vadd.f32 -1.0, %v2167_v50 }
 0x42b   : > { %6809 = vst [vmem:[#allocation67_spill] sm:$0xff] %v5487_v49  ;;  %v2171_v40 = vadd.f32 %v2170_v16, %v5010_v59  ;;  %v3163_v3 = vadd.f32 %v2899_v32, %v2715_v44  ;;  %v2904_v17 = vadd.f32 1.0, %v2903_v14  ;;  %v2145_v37 = vadd.f32 %v5393_v24, %v5053_v13 }
 0x42c   : > { %v3293_v42 = vsel %vm3291_vm2, %v3258_v60, 0.0  ;;  %v4105_v48 = vpop.eup %4104  ;;  %4112 = vpow2.f32 %v2363_v22  ;;  %v2283_v30 = vmax.f32 %v2251_v35, -20.0  ;;  %v2749_v41 = vand.u32 2147483647, %v5456_v51 }
 0x42d   : > { %3326 = vadd.xlane.f32.xlu0 %v3293_v42  ;;  %v2439_v58 = vmul.f32 %v4105_v48, %v5122_v52  ;;  %v2252_v43 = vadd.f32 -1.0, %v2171_v40  ;;  %v3195_v63 = vsub.f32 %v2651_v55, %v3163_v3  ;;  %v2906_v21 = vand.u32 2147483647, %v5449_v7 }
 0x42e   : > { %v2149_v5 = vadd.f32 %v5405_v47, %v5053_v13  ;;  %v5503_v50 = vmin.f32 %v2283_v30, 2.0  ;;  %v5505_v14 = vpop.f32.mrb[92].mxu1  ;;  %v2652_v24 = vsub.f32 0.6931472, %v5284_v29  ;;  %v2716_v16 = vmax.f32 %v5324_v20, 0.0 }
 0x42f   : > { %v4107_v60 = vpop.eup %4106  ;;  %v5509_v44 = vadd.f32 %v2439_v58, %v2145_v37  ;;  %v2284_v32 = vmax.f32 %v2252_v43, -20.0  ;;  %v3227_v52 = vmul.f32 2.0, %v3195_v63  ;;  %v2176_v22 = vpop.f32.mrb[93].mxu1  ;;  %v2905_v35 = vmul.f32 %v5449_v7, %v2904_v17 }
 0x430   : > { %6810 = vst [vmem:[#allocation68_spill] sm:$0xff] %v5503_v50  ;;  %v2440_v40 = vmul.f32 %v4107_v60, %v5125_v53  ;;  %v2365_v47 = vmul.f32 1.442695, %v5503_v50  ;;  %v2177_v42 = vadd.f32 %v2176_v22, %v5010_v59  ;;  %v5515_v3 = vpop.f32.mrb[94].mxu1  ;;  %v2781_v48 = vsub.f32 0.0, %v2749_v41 }
 0x431   : > { %6811 = vst [vmem:[#allocation69_spill] sm:$0xff] %v5509_v44  ;;  %v4109_v55 = vpop.eup %4108  ;;  %v5517_v30 = vmin.f32 %v2284_v32, 2.0  ;;  %v3259_v20 = vsub.f32 %v5314_v9, %v3227_v52  ;;  %v2180_v37 = vpop.f32.mrb[95].mxu1  ;;  %vm2907_vm5 = vcmp.lt.f32.partialorder %v2906_v21, 0.0004427343  ;;  %v5527_v41 = vmul.f32 -2.0, %v5326_v0 }
 0x432   : > { %v2902_v58 = vmul.f32 0.6931472, %v4109_v55  ;;  %v5520_v43 = vadd.f32 %v2440_v40, %v2149_v5  ;;  %4114 = vpow2.f32 %v2365_v47  ;;  %v2253_v7 = vadd.f32 -1.0, %v2177_v42 }
 0x433   : > { %6812 = vst [vmem:[#allocation70_spill] sm:$0xff] %v5517_v30  ;;  %v2181_v53 = vadd.f32 %v2180_v37, %v5010_v59  ;;  %v2367_v17 = vmul.f32 1.442695, %v5517_v30  ;;  %v3294_v63 = vsel %vm3291_vm2, %v3259_v20, 0.0  ;;  %v2817_v5 = vmul.f32 1.442695, %v2781_v48 }
 0x434   : > { %6813 = vst [vmem:[#allocation71_spill] sm:$0xff] %v5520_v43  ;;  %v2908_v60 = vsel %vm2907_vm5, %v2905_v35, %v2902_v58  ;;  %v4111_v32 = vpop.eup %4110  ;;  %3328 = vadd.xlane.f32.xlu1 %v3294_v63  ;;  %v2285_v9 = vmax.f32 %v2253_v7, -20.0  ;;  %v2591_v22 = vsub.f32 %v5130_v56, %v5262_v8  ;;  %v2155_v55 = vadd.f32 %v5433_v25, %v5053_v13  ;;  %v6834_v43 = vld [vmem:[#allocation24_spill] sm:$0xff]  ;;  %v6840_v30 = vld [vmem:[#allocation57_spill] sm:$0xff] }
 0x435   : > { %v2254_v52 = vadd.f32 -1.0, %v2181_v53  ;;  %v3164_v21 = vadd.f32 %v2908_v60, %v2716_v16  ;;  %v2441_v40 = vmul.f32 %v4111_v32, %v5128_v54  ;;  %4116 = vpow2.f32 %v2367_v17  ;;  %v6843_v32 = vld [vmem:[#allocation59_spill] sm:$0xff] }
 0x436   : > { %v4113_v47 = vpop.eup %4112  ;;  %v5534_v35 = vmin.f32 %v2285_v9, 2.0  ;;  %4118 = vpow2.f32 %v2817_v5  ;;  %v5536_v37 = vpop.f32.mrb[96].mxu1  ;;  %v2159_v16 = vadd.f32 %v5447_v31, %v5053_v13  ;;  %v2750_v25 = vand.u32 2147483647, %v5527_v41 }
 0x437   : > { %v2286_v42 = vmax.f32 %v2254_v52, -20.0  ;;  %v3196_v20 = vsub.f32 %v2652_v24, %v3164_v21  ;;  %v5538_v58 = vadd.f32 %v2441_v40, %v2155_v55  ;;  %v2442_v56 = vmul.f32 %v4113_v47, %v5147_v4  ;;  %v2186_v8 = vpop.f32.mrb[97].mxu1 }
 0x438   : > { %6814 = vst [vmem:[#allocation72_spill] sm:$0xff] %v5534_v35  ;;  %v2369_v48 = vmul.f32 1.442695, %v5534_v35  ;;  %v5549_v53 = vpop.f32.mrb[98].mxu1  ;;  %v2187_v63 = vadd.f32 %v2186_v8, %v5010_v59  ;;  %v2782_v31 = vsub.f32 0.0, %v2750_v25 }
 0x439   : > { %6815 = vst [vmem:[#allocation73_spill] sm:$0xff] %v5538_v58  ;;  %v5547_v7 = vmin.f32 %v2286_v42, 2.0  ;;  %v3228_v24 = vmul.f32 2.0, %v3196_v20  ;;  %v5551_v17 = vadd.f32 %v2442_v56, %v2159_v16  ;;  %v2190_v60 = vpop.f32.mrb[99].mxu1  ;;  %v5554_v4 = vadd.f32 -0.9189385, %v2591_v22 }
 0x43a   : > { %4120 = vpow2.f32 %v2369_v48  ;;  %v2255_v5 = vadd.f32 -1.0, %v2187_v63  ;;  %v2819_v55 = vmul.f32 1.442695, %v2782_v31  ;;  %v2191_v40 = vadd.f32 %v2190_v60, %v5010_v59  ;;  %v6818_v20 = vld [vmem:[#allocation49_spill] sm:$0xff]  ;;  %v6819_v56 = vld [vmem:[#allocation18_spill] sm:$0xff]  ;;  %v6820_v48 = vld [vmem:[#allocation48_spill] sm:$0xff] }
 0x43b   : > { %6816 = vst [vmem:[#allocation74_spill] sm:$0xff] %v5547_v7  ;;  %6817 = vst [vmem:[#allocation75_spill] sm:$0xff] %v5551_v17  ;;  %v2371_v9 = vmul.f32 1.442695, %v5547_v7  ;;  %v3260_v52 = vsub.f32 %v5328_v61, %v3228_v24  ;;  %v2165_v22 = vadd.f32 %v5475_v19, %v5053_v13  ;;  %v5568_v16 = vmul.f32 -2.0, %v6818_v20  ;;  %v6821_v24 = vld [vmem:[#allocation19_spill] sm:$0xff] }
 0x43c   : > { %v4115_v47 = vpop.eup %4114  ;;  %v2287_v8 = vmax.f32 %v2255_v5, -20.0  ;;  %v2256_v25 = vadd.f32 -1.0, %v2191_v40  ;;  %v2169_v60 = vadd.f32 %v5485_v18, %v5053_v13  ;;  %v6826_v63 = vld [vmem:[#allocation23_spill] sm:$0xff]  ;;  %v6847_v31 = vsub.f32 0.6931472, %v5311_v45 }
 0x43d   : > { %4122 = vpow2.f32 %v2371_v9  ;;  %v3295_v42 = vsel %vm3291_vm2, %v3260_v52, 0.0  ;;  %v2443_v61 = vmul.f32 %v4115_v47, %v6819_v56  ;;  %v2751_v9 = vand.u32 2147483647, %v5568_v16 }
 0x43e   : > { %3330 = vadd.xlane.f32.xlu1 %v3295_v42  ;;  %4124 = vpow2.f32 %v2819_v55  ;;  %v5577_v52 = vpop.f32.mrb[100].mxu1  ;;  %v5583_v5 = vmin.f32 %v2287_v8, 2.0  ;;  %v2288_v55 = vmax.f32 %v2256_v25, -20.0 }
 0x43f   : > { %v4117_v21 = vpop.eup %4116  ;;  %v5581_v42 = vadd.f32 %v2443_v61, %v2165_v22  ;;  %v2196_v40 = vpop.f32.mrb[101].mxu1  ;;  %v2783_v19 = vsub.f32 0.0, %v2751_v9 }
 0x440   : > { %6825 = vst [vmem:[#allocation48_spill] sm:$0xff] %v5583_v5  ;;  %v5585_v56 = vpop.eup %4118  ;;  %v2444_v54 = vmul.f32 %v4117_v21, %v6826_v63  ;;  %v2197_v29 = vadd.f32 %v2196_v40, %v5010_v59  ;;  %v5591_v57 = vpop.f32.mrb[102].mxu1  ;;  %v2373_v25 = vmul.f32 1.442695, %v5583_v5  ;;  %v6829_v21 = vld [vmem:[#allocation54_spill] sm:$0xff]  ;;  %v6857_v5 = vld [vmem:[#allocation53_spill] sm:$0xff] }
 0x441   : > { %6824 = vst [vmem:[#allocation18_spill] sm:$0xff] %v5581_v42  ;;  %v2909_v8 = vadd.f32 1.0, %v5585_v56  ;;  %v5600_v42 = vmin.f32 %v2288_v55, 2.0  ;;  %v2821_v18 = vmul.f32 1.442695, %v2783_v19  ;;  %v5603_v63 = vmul.f32 -2.0, %v6829_v21 }
 0x442   : > { %v5598_v12 = vadd.f32 %v2444_v54, %v2169_v60  ;;  %v2200_v9 = vpop.f32.mrb[103].mxu1  ;;  %v2257_v61 = vadd.f32 -1.0, %v2197_v29  ;;  %v2912_v29 = vmul.f32 -0.5, %v5585_v56  ;;  %v2915_v6 = vand.u32 2147483647, %v5585_v56 }
 0x443   : > { %4126 = vlog2.f32 %v2909_v8  ;;  %v2375_v19 = vmul.f32 1.442695, %v5600_v42  ;;  %v2752_v8 = vand.u32 2147483647, %v5603_v63  ;;  %v2201_v54 = vadd.f32 %v2200_v9, %v5010_v59 }
 0x444   : > { %6828 = vst [vmem:[#allocation19_spill] sm:$0xff] %v5598_v12  ;;  %v4121_v47 = vpop.eup %4120  ;;  %4128 = vpow2.f32 %v2373_v25  ;;  %v2175_v12 = vadd.f32 %v5505_v14, %v5053_v13  ;;  %v2289_v46 = vmax.f32 %v2257_v61, -20.0  ;;  %v2179_v14 = vadd.f32 %v5515_v3, %v5053_v13 }
 0x445   : > { %v2445_v17 = vmul.f32 %v4121_v47, %v6834_v43  ;;  %4130 = vpow2.f32 %v2821_v18  ;;  %v6836_v43 = vld [vmem:[#allocation25_spill] sm:$0xff]  ;;  %v2784_v15 = vsub.f32 0.0, %v2752_v8  ;;  %v5647_v60 = vmul.f32 -2.0, %v6840_v30 }
 0x446   : > { %4132 = vpow2.f32 %v2375_v19  ;;  %v5620_v23 = vpop.f32.mrb[104].mxu1  ;;  %v5629_v61 = vmin.f32 %v2289_v46, 2.0  ;;  %v2258_v46 = vadd.f32 -1.0, %v2201_v54  ;;  %vm2916_vm6 = vcmp.lt.f32.partialorder %v2915_v6, 0.0004427343 }
 0x447   : > { %v4123_v10 = vpop.eup %4122  ;;  %v5624_v55 = vadd.f32 %v2445_v17, %v2175_v12  ;;  %v2206_v18 = vpop.f32.mrb[105].mxu1  ;;  %v2823_v50 = vmul.f32 1.442695, %v2784_v15  ;;  %v2189_v15 = vadd.f32 %v5549_v53, %v5053_v13 }
 0x448   : > { %v5622_v25 = vpop.eup %4124  ;;  %v2446_v47 = vmul.f32 %v4123_v10, %v6836_v43  ;;  %v5636_v22 = vpop.f32.mrb[106].mxu1  ;;  %v2377_v10 = vmul.f32 1.442695, %v5629_v61  ;;  %v2913_v43 = vadd.f32 1.0, %v2912_v29  ;;  %v2290_v8 = vmax.f32 %v2258_v46, -20.0 }
 0x449   : > { %6835 = vst [vmem:[#allocation23_spill] sm:$0xff] %v5624_v55  ;;  %v2918_v58 = vadd.f32 1.0, %v5622_v25  ;;  %v5642_v17 = vpop.f32.mrb[107].mxu1  ;;  %v2207_v54 = vadd.f32 %v2206_v18, %v5010_v59  ;;  %v2753_v46 = vand.u32 2147483647, %v5647_v60  ;;  %v6842_v18 = vld [vmem:[#allocation29_spill] sm:$0xff] }
 0x44a   : > { %v5638_v12 = vadd.f32 %v2446_v47, %v2179_v14  ;;  %v2185_v14 = vadd.f32 %v5536_v37, %v5053_v13  ;;  %v2921_v47 = vmul.f32 -0.5, %v5622_v25  ;;  %v2914_v37 = vmul.f32 %v5585_v56, %v2913_v43 }
 0x44b   : > { %4134 = vlog2.f32 %v2918_v58  ;;  %v2785_v35 = vsub.f32 0.0, %v2753_v46  ;;  %v2259_v3 = vadd.f32 -1.0, %v2207_v54  ;;  %v5670_v56 = vmul.f32 -2.0, %v6843_v32 }
 0x44c   : > { %6839 = vst [vmem:[#allocation24_spill] sm:$0xff] %v5638_v12  ;;  %4136 = vpow2.f32 %v2377_v10  ;;  %v5657_v10 = vmin.f32 %v2290_v8, 2.0  ;;  %v2922_v34 = vadd.f32 1.0, %v2921_v47  ;;  %v6844_v43 = vmax.f32 %v5456_v51, 0.0 }
 0x44d   : > { %4138 = vpow2.f32 %v2823_v50  ;;  %v4127_v29 = vpop.eup %4126  ;;  %v2825_v44 = vmul.f32 1.442695, %v2785_v35  ;;  %v2754_v35 = vand.u32 2147483647, %v5670_v56 }
 0x44e   : > { %v4129_v9 = vpop.eup %4128  ;;  %v2911_v12 = vmul.f32 0.6931472, %v4127_v29  ;;  %v2379_v58 = vmul.f32 1.442695, %v5657_v10  ;;  %v5666_v53 = vpop.f32.mrb[108].mxu1 }
 0x44f   : > { %v5662_v19 = vpop.eup %4130  ;;  %v2447_v55 = vmul.f32 %v4129_v9, %v6842_v18  ;;  %v5672_v6 = vpop.f32.mrb[109].mxu1  ;;  %v6845_v18 = vld [vmem:[#allocation33_spill] sm:$0xff] }
 0x450   : > { %v4133_v8 = vpop.eup %4132  ;;  %v2917_v40 = vsel %vm2916_vm6, %v2914_v37, %v2911_v12  ;;  %v2927_v29 = vadd.f32 1.0, %v5662_v19  ;;  %4140 = vpow2.f32 %v2379_v58  ;;  %v5679_v54 = vpop.f32.mrb[110].mxu1  ;;  %v2924_v37 = vand.u32 2147483647, %v5622_v25 }
 0x451   : > { %v3165_v50 = vadd.f32 %v2917_v40, %v6844_v43  ;;  %v5676_v9 = vadd.f32 %v2447_v55, %v2185_v14  ;;  %v2448_v46 = vmul.f32 %v4133_v8, %v6845_v18  ;;  %v5684_v26 = vpop.f32.mrb[111].mxu1  ;;  %v6849_v55 = vsub.f32 %v5140_v62, %v5280_v36 }
 0x452   : > { %4142 = vlog2.f32 %v2927_v29  ;;  %v2291_v58 = vmax.f32 %v2259_v3, -20.0  ;;  %v2923_v43 = vmul.f32 %v5622_v25, %v2922_v34  ;;  %v2719_v29 = vmax.f32 %v5568_v16, 0.0  ;;  %v6850_v3 = vld [vmem:[#allocation39_spill] sm:$0xff]  ;;  %v5707_v16 = vld [vmem:[%s5017_s24 + $0xd8] sm:$0xff] }
 0x453   : > { %v3197_v51 = vsub.f32 %v6847_v31, %v3165_v50  ;;  %v5688_v40 = vadd.f32 %v2448_v46, %v2189_v15  ;;  %v5693_v14 = vadd.f32 -0.9189385, %v6849_v55  ;;  %4144 = vpow2.f32 %v2825_v44  ;;  %v6851_v46 = vld [vmem:[#allocation50_spill] sm:$0xff] }
 0x454   : > { %v2930_v15 = vmul.f32 -0.5, %v5662_v19  ;;  %v5699_v50 = vmin.f32 %v2291_v58, 2.0  ;;  %vm2925_vm7 = vcmp.lt.f32.partialorder %v2924_v37, 0.0004427343  ;;  %v2195_v36 = vadd.f32 %v5577_v52, %v5053_v13 }
 0x455   : > { %6848 = vst [vmem:[#allocation25_spill] sm:$0xff] %v5688_v40  ;;  %v4135_v8 = vpop.eup %4134  ;;  %v3229_v47 = vmul.f32 2.0, %v3197_v51  ;;  %v2786_v25 = vsub.f32 0.0, %v2754_v35  ;;  %v2211_v58 = vadd.f32 %v5642_v17, %v5010_v59  ;;  %v6852_v37 = vmax.f32 %v5527_v41, 0.0 }
 0x456   : > { %v4137_v18 = vpop.eup %4136  ;;  %v2920_v31 = vmul.f32 0.6931472, %v4135_v8  ;;  %v5709_v44 = vpop.f32.mrb[112].mxu1  ;;  %v5729_v17 = vmul.f32 %v5707_v16, %v5707_v16  ;;  %v6854_v41 = vsub.f32 0.6931472, %v5326_v0 }
 0x457   : > { %v5701_v62 = vpop.eup %4138  ;;  %v2449_v34 = vmul.f32 %v4137_v18, %v6850_v3  ;;  %v3261_v51 = vsub.f32 %v6851_v46, %v3229_v47  ;;  %v5715_v45 = vpop.f32.mrb[113].mxu1  ;;  %v2381_v18 = vmul.f32 1.442695, %v5699_v50  ;;  %v2827_v46 = vmul.f32 1.442695, %v2786_v25 }
 0x458   : > { %v2926_v55 = vsel %vm2925_vm7, %v2923_v43, %v2920_v31  ;;  %v2936_v8 = vadd.f32 1.0, %v5701_v62  ;;  %v5723_v3 = vpop.f32.mrb[114].mxu1  ;;  %v2931_v43 = vadd.f32 1.0, %v2930_v15  ;;  %v2939_v15 = vmul.f32 -0.5, %v5701_v62 }
 0x459   : > { %v3166_v52 = vadd.f32 %v2926_v55, %v6852_v37  ;;  %v5719_v7 = vadd.f32 %v2449_v34, %v2195_v36  ;;  %v3296_v47 = vsel %vm3291_vm2, %v3261_v51, 0.0  ;;  %v5731_v31 = vpop.f32.mrb[115].mxu1  ;;  %v2933_v34 = vand.u32 2147483647, %v5662_v19 }
 0x45a   : > { %4146 = vlog2.f32 %v2936_v8  ;;  %3332 = vadd.xlane.f32.xlu0 %v3296_v47  ;;  %v4141_v55 = vpop.eup %4140  ;;  %v2199_v8 = vadd.f32 %v5591_v57, %v5053_v13  ;;  %v2260_v35 = vadd.f32 -1.0, %v2211_v58  ;;  %v6856_v47 = vld [vmem:[#allocation43_spill] sm:$0xff]  ;;  %v2932_v25 = vmul.f32 %v5662_v19, %v2931_v43 }
 0x45b   : > { %6853 = vst [vmem:[#allocation29_spill] sm:$0xff] %v5719_v7  ;;  %v3198_v36 = vsub.f32 %v6854_v41, %v3166_v52  ;;  %4148 = vpow2.f32 %v2381_v18  ;;  %v2450_v40 = vmul.f32 %v4141_v55, %v6856_v47  ;;  %v5743_v52 = vmul.f32 -2.0, %v5437_v38 }
 0x45c   : > { %v4143_v12 = vpop.eup %4142  ;;  %4150 = vpow2.f32 %v2827_v46  ;;  %v2292_v41 = vmax.f32 %v2260_v35, -20.0  ;;  %v2217_v51 = vadd.f32 %v5672_v6, %v5010_v59  ;;  %vm2934_vm8 = vcmp.lt.f32.partialorder %v2933_v34, 0.0004427343  ;;  %v6858_v46 = vld [vmem:[#allocation40_spill] sm:$0xff] }
 0x45d   : > { %v3230_v7 = vmul.f32 2.0, %v3198_v36  ;;  %v2929_v18 = vmul.f32 0.6931472, %v4143_v12  ;;  %v5748_v0 = vpop.eup %4144  ;;  %v5751_v58 = vadd.f32 %v2450_v40, %v2199_v8  ;;  %v2755_v36 = vand.u32 2147483647, %v5743_v52 }
 0x45e   : > { %v2940_v12 = vadd.f32 1.0, %v2939_v15  ;;  %v2945_v19 = vadd.f32 1.0, %v5748_v0  ;;  %v5759_v43 = vmin.f32 %v2292_v41, 2.0  ;;  %v2261_v40 = vadd.f32 -1.0, %v2217_v51 }
 0x45f   : > { %v3262_v57 = vsub.f32 %v6857_v5, %v3230_v7  ;;  %v2935_v47 = vsel %vm2934_vm8, %v2932_v25, %v2929_v18  ;;  %v2787_v37 = vsub.f32 0.0, %v2755_v36  ;;  %v2720_v7 = vmax.f32 %v5603_v63, 0.0 }
 0x460   : > { %v3167_v6 = vadd.f32 %v2935_v47, %v2719_v29  ;;  %6859 = vst [vmem:[#allocation33_spill] sm:$0xff] %v5759_v43  ;;  %v2942_v5 = vand.u32 2147483647, %v5701_v62  ;;  %4152 = vlog2.f32 %v2945_v19  ;;  %v6860_v34 = vsub.f32 0.6931472, %v6818_v20 }
 0x461   : > { %v3297_v35 = vsel %vm3291_vm2, %v3262_v57, 0.0  ;;  %v6861_v15 = vsub.f32 %v5142_v1, %v5307_v28  ;;  %v2383_v29 = vmul.f32 1.442695, %v5759_v43  ;;  %v2829_v25 = vmul.f32 1.442695, %v2787_v37  ;;  %v6862_v57 = vld [vmem:[#allocation44_spill] sm:$0xff] }
 0x462   : > { %3334 = vadd.xlane.f32.xlu1 %v3297_v35  ;;  %v3199_v8 = vsub.f32 %v6860_v34, %v3167_v6  ;;  %v2948_v63 = vmul.f32 -0.5, %v5748_v0  ;;  %v2205_v51 = vadd.f32 %v5620_v23, %v5053_v13  ;;  %v2293_v47 = vmax.f32 %v2261_v40, -20.0  ;;  %v6863_v28 = vld [vmem:[#allocation51_spill] sm:$0xff] }
 0x463   : > { %v5768_v18 = vadd.f32 -0.9189385, %v6861_v15  ;;  %v2941_v1 = vmul.f32 %v5701_v62, %v2940_v12  ;;  %4154 = vpow2.f32 %v2383_v29  ;;  %vm2943_vm9 = vcmp.lt.f32.partialorder %v2942_v5, 0.0004427343 }
 0x464   : > { %v4147_v41 = vpop.eup %4146  ;;  %v3231_v35 = vmul.f32 2.0, %v3199_v8  ;;  %4156 = vpow2.f32 %v2829_v25  ;;  %v5778_v37 = vmin.f32 %v2293_v47, 2.0  ;;  %v2657_v23 = vsub.f32 0.6931472, %v6840_v30  ;;  %v6865_v25 = vld [vmem:[#allocation55_spill] sm:$0xff] }
 0x465   : > { %v4149_v19 = vpop.eup %4148  ;;  %v2938_v6 = vmul.f32 0.6931472, %v4147_v41  ;;  %v5785_v40 = vmul.f32 -2.0, %v5458_v39  ;;  %v2949_v41 = vadd.f32 1.0, %v2948_v63  ;;  %v2721_v29 = vmax.f32 %v5647_v60, 0.0 }
 0x466   : > { %v2451_v34 = vmul.f32 %v4149_v19, %v6863_v28  ;;  %6864 = vst [vmem:[#allocation39_spill] sm:$0xff] %v5778_v37  ;;  %v5780_v15 = vpop.eup %4150  ;;  %v3263_v36 = vsub.f32 %v5554_v4, %v3231_v35  ;;  %v5794_v47 = vmul.f32 -0.5, %v6865_v25  ;;  %v2385_v4 = vmul.f32 1.442695, %v5778_v37 }
 0x467   : > { %v2944_v55 = vsel %vm2943_vm9, %v2941_v1, %v2938_v6  ;;  %v2954_v12 = vadd.f32 1.0, %v5780_v15  ;;  %v6866_v19 = vsub.f32 0.6931472, %v6829_v21  ;;  %v2221_v6 = vadd.f32 %v5684_v26, %v5010_v59 }
 0x468   : > { %v3168_v8 = vadd.f32 %v2944_v55, %v2720_v7  ;;  %v5787_v62 = vadd.f32 %v2451_v34, %v2205_v51  ;;  %v3298_v5 = vsel %vm3291_vm2, %v3263_v36, 0.0  ;;  %v2951_v55 = vand.u32 2147483647, %v5748_v0  ;;  %v6868_v36 = vld [vmem:[#allocation47_spill] sm:$0xff] }
 0x469   : > { %3336 = vadd.xlane.f32.xlu0 %v3298_v5  ;;  %v6867_v7 = vsub.f32 %v5144_v2, %v5318_v27  ;;  %4158 = vlog2.f32 %v2954_v12  ;;  %v2756_v51 = vand.u32 2147483647, %v5785_v40  ;;  %v2950_v34 = vmul.f32 %v5748_v0, %v2949_v41 }
 0x46a   : > { %v3200_v35 = vsub.f32 %v6866_v19, %v3168_v8  ;;  %4160 = vpow2.f32 %v2385_v4  ;;  %v4153_v1 = vpop.eup %4152  ;;  %v2658_v8 = vsub.f32 0.6931472, %v6843_v32  ;;  %v2722_v2 = vmax.f32 %v5670_v56, 0.0 }
 0x46b   : > { %v5803_v63 = vadd.f32 -0.9189385, %v6867_v7  ;;  %v2947_v27 = vmul.f32 0.6931472, %v4153_v1  ;;  %v2957_v12 = vmul.f32 -0.5, %v5780_v15  ;;  %v2788_v5 = vsub.f32 0.0, %v2756_v51 }
 0x46c   : > { %v3232_v28 = vmul.f32 2.0, %v3200_v35  ;;  %v2262_v25 = vadd.f32 -1.0, %v2221_v6  ;;  %vm2952_vm10 = vcmp.lt.f32.partialorder %v2951_v55, 0.0004427343  ;;  %v2209_v26 = vadd.f32 %v5636_v22, %v5053_v13  ;;  %v2421_v6 = vld [vmem:[%s5017_s24 + $0xe0] sm:$0xff] }
 0x46d   : > { %v5818_v19 = vmul.f32 -2.0, %v5477_v33  ;;  %v4155_v0 = vpop.eup %4154  ;;  %v2953_v41 = vsel %vm2952_vm10, %v2950_v34, %v2947_v27  ;;  %v2831_v35 = vmul.f32 1.442695, %v2788_v5  ;;  %v2227_v56 = vadd.f32 %v5715_v45, %v5010_v59 }
 0x46e   : > { %v3264_v4 = vsub.f32 %v5693_v14, %v3232_v28  ;;  %v2294_v7 = vmax.f32 %v2262_v25, -20.0  ;;  %v5822_v1 = vpop.eup %4156  ;;  %v3169_v14 = vadd.f32 %v2953_v41, %v2721_v29  ;;  %v2960_v55 = vand.u32 2147483647, %v5780_v15 }
 0x46f   : > { %v2452_v22 = vmul.f32 %v4155_v0, %v5707_v16  ;;  %v2958_v28 = vadd.f32 1.0, %v2957_v12  ;;  %v5830_v34 = vmul.f32 -0.5, %v5729_v17  ;;  %v2963_v27 = vadd.f32 1.0, %v5822_v1 }
 0x470   : > { %v3299_v51 = vsel %vm3291_vm2, %v3264_v4, 0.0  ;;  %4162 = vpow2.f32 %v2831_v35  ;;  %v3201_v45 = vsub.f32 %v2657_v23, %v3169_v14  ;;  %v5835_v25 = vmin.f32 %v2294_v7, 2.0 }
 0x471   : > { %3338 = vadd.xlane.f32.xlu1 %v3299_v51  ;;  %6869 = vst [vmem:[#allocation50_spill] sm:$0xff] %v5830_v34  ;;  %v5833_v5 = vadd.f32 %v2452_v22, %v2209_v26  ;;  %v2757_v29 = vand.u32 2147483647, %v5818_v19  ;;  %4164 = vlog2.f32 %v2963_v27  ;;  %v2215_v16 = vadd.f32 %v5666_v53, %v5053_v13 }
 0x472   : > { %6870 = vst [vmem:[#allocation43_spill] sm:$0xff] %v5835_v25  ;;  %v2517_v4 = vmul.f32 %v2421_v6, %v2421_v6  ;;  %v2263_v0 = vadd.f32 -1.0, %v2227_v56  ;;  %v3233_v41 = vmul.f32 2.0, %v3201_v45  ;;  %vm5840_vm11 = vcmp.lt.f32.partialorder %v2960_v55, 0.0004427343 }
 0x473   : > { %v4159_v12 = vpop.eup %4158  ;;  %v2387_v23 = vmul.f32 1.442695, %v5835_v25  ;;  %v2789_v26 = vsub.f32 0.0, %v2757_v29  ;;  %v2959_v51 = vmul.f32 %v5780_v15, %v2958_v28  ;;  %v2966_v14 = vmul.f32 -0.5, %v5822_v1 }
 0x474   : > { %v4161_v35 = vpop.eup %4160  ;;  %v2956_v7 = vmul.f32 0.6931472, %v4159_v12  ;;  %v2295_v22 = vmax.f32 %v2263_v0, -20.0  ;;  %v3265_v53 = vsub.f32 %v5768_v18, %v3233_v41  ;;  %v6873_v29 = vsub.f32 %v6821_v24, %v6820_v48 }
 0x475   : > { %v2453_v27 = vmul.f32 %v4161_v35, %v2421_v6  ;;  %4166 = vpow2.f32 %v2387_v23  ;;  %v2833_v56 = vmul.f32 1.442695, %v2789_v26  ;;  %v2659_v0 = vsub.f32 0.6931472, %v5437_v38  ;;  %v6879_v35 = vld [vmem:[#allocation69_spill] sm:$0xff] }
 0x476   : > { %v2962_v45 = vsel %vm5840_vm11, %v2959_v51, %v2956_v7  ;;  %v5855_v12 = vadd.f32 -0.9189385, %v6873_v29  ;;  %v5857_v15 = vmin.f32 %v2295_v22, 2.0  ;;  %v3300_v28 = vsel %vm3291_vm2, %v3265_v53, 0.0  ;;  %v6877_v22 = vld [vmem:[#allocation52_spill] sm:$0xff] }
 0x477   : > { %v3170_v18 = vadd.f32 %v2962_v45, %v2722_v2  ;;  %v5861_v6 = vadd.f32 %v2453_v27, %v2215_v16  ;;  %4168 = vpow2.f32 %v2833_v56  ;;  %3340 = vadd.xlane.f32.xlu0 %v3300_v28  ;;  %v5864_v41 = vmul.f32 -0.5, %v2517_v4  ;;  %v2422_v45 = vld [vmem:[%s5017_s24 + $0xe8] sm:$0xff] }
 0x478   : > { %6874 = vst [vmem:[#allocation53_spill] sm:$0xff] %v5857_v15  ;;  %v2389_v17 = vmul.f32 1.442695, %v5857_v15  ;;  %v5868_v48 = vmul.f32 -2.0, %v5487_v49  ;;  %v2723_v23 = vmax.f32 %v5743_v52, 0.0  ;;  %v2967_v26 = vadd.f32 1.0, %v2966_v14 }
 0x479   : > { %6875 = vst [vmem:[#allocation40_spill] sm:$0xff] %v5864_v41  ;;  %v3202_v24 = vsub.f32 %v2658_v8, %v3170_v18  ;;  %v2231_v2 = vadd.f32 %v5731_v31, %v5010_v59  ;;  %v2969_v4 = vand.u32 2147483647, %v5822_v1  ;;  %v6876_v8 = vld [vmem:[#allocation20_spill] sm:$0xff]  ;;  %v2219_v56 = vadd.f32 %v5679_v54, %v5053_v13 }
 0x47a   : > { %v5873_v16 = vpop.eup %4162  ;;  %4170 = vpow2.f32 %v2389_v17  ;;  %v2758_v7 = vand.u32 2147483647, %v5868_v48  ;;  %v6878_v53 = vsub.f32 %v6876_v8, %v6877_v22  ;;  %v2423_v8 = vld [vmem:[%s5017_s24 + $0xf0] sm:$0xff]  ;;  %v5895_v55 = vmul.f32 -2.0, %v6879_v35 }
 0x47b   : > { %v3234_v51 = vmul.f32 2.0, %v3202_v24  ;;  %v2972_v59 = vadd.f32 1.0, %v5873_v16  ;;  %v4165_v31 = vpop.eup %4164  ;;  %v2264_v28 = vadd.f32 -1.0, %v2231_v2  ;;  %v2968_v24 = vmul.f32 %v5822_v1, %v2967_v26 }
 0x47c   : > { %v5882_v52 = vadd.f32 -0.9189385, %v6878_v53  ;;  %v2790_v29 = vsub.f32 0.0, %v2758_v7  ;;  %v2965_v17 = vmul.f32 0.6931472, %v4165_v31  ;;  %v2975_v2 = vmul.f32 -0.5, %v5873_v16 }
 0x47d   : > { %v3266_v18 = vsub.f32 %v5803_v63, %v3234_v51  ;;  %4172 = vlog2.f32 %v2972_v59  ;;  %vm2970_vm12 = vcmp.lt.f32.partialorder %v2969_v4, 0.0004427343  ;;  %v2296_v53 = vmax.f32 %v2264_v28, -20.0  ;;  %v6881_v59 = vld [vmem:[#allocation21_spill] sm:$0xff]  ;;  %v6882_v31 = vld [vmem:[#allocation56_spill] sm:$0xff] }
 0x47e   : > { %v2835_v22 = vmul.f32 1.442695, %v2790_v29  ;;  %v2971_v60 = vsel %vm2970_vm12, %v2968_v24, %v2965_v17  ;;  %v2518_v7 = vmul.f32 %v2422_v45, %v2422_v45  ;;  %v2724_v4 = vmax.f32 %v5785_v40, 0.0 }
 0x47f   : > { %v4167_v27 = vpop.eup %4166  ;;  %v3301_v54 = vsel %vm3291_vm2, %v3266_v18, 0.0  ;;  %v3171_v63 = vadd.f32 %v2971_v60, %v2723_v23  ;;  %v5900_v1 = vmin.f32 %v2296_v53, 2.0  ;;  %v6883_v29 = vsub.f32 %v6881_v59, %v6882_v31  ;;  %v6884_v23 = vld [vmem:[#allocation71_spill] sm:$0xff] }
 0x480   : > { %3342 = vadd.xlane.f32.xlu1 %v3301_v54  ;;  %v2454_v51 = vmul.f32 %v4167_v27, %v2422_v45  ;;  %4174 = vpow2.f32 %v2835_v22  ;;  %v2519_v18 = vmul.f32 %v2423_v8, %v2423_v8  ;;  %v2759_v17 = vand.u32 2147483647, %v5895_v55 }
 0x481   : > { %6880 = vst [vmem:[#allocation44_spill] sm:$0xff] %v5900_v1  ;;  %v5902_v26 = vpop.eup %4168  ;;  %v5908_v28 = vadd.f32 -0.9189385, %v6883_v29  ;;  %v3203_v24 = vsub.f32 %v2659_v0, %v3171_v63  ;;  %v5915_v27 = vmul.f32 -2.0, %v6884_v23  ;;  %v5917_v45 = vmul.f32 -0.5, %v2518_v7 }
 0x482   : > { %v5911_v14 = vadd.f32 %v2454_v51, %v2219_v56  ;;  %v2981_v60 = vadd.f32 1.0, %v5902_v26  ;;  %v2391_v22 = vmul.f32 1.442695, %v5900_v1  ;;  %v2791_v53 = vsub.f32 0.0, %v2759_v17 }
 0x483   : > { %6885 = vst [vmem:[#allocation51_spill] sm:$0xff] %v5917_v45  ;;  %v3235_v59 = vmul.f32 2.0, %v3203_v24  ;;  %v2976_v31 = vadd.f32 1.0, %v2975_v2  ;;  %v2225_v0 = vadd.f32 %v5709_v44, %v5053_v13  ;;  %v2978_v56 = vand.u32 2147483647, %v5873_v16  ;;  %v6888_v44 = vld [vmem:[#allocation73_spill] sm:$0xff] }
 0x484   : > { %v4171_v54 = vpop.eup %4170  ;;  %4176 = vlog2.f32 %v2981_v60  ;;  %v2837_v51 = vmul.f32 1.442695, %v2791_v53  ;;  %v2725_v29 = vmax.f32 %v5818_v19, 0.0  ;;  %v5926_v40 = vmul.f32 -0.5, %v2519_v18  ;;  %v6897_v18 = vld [vmem:[#allocation18_spill] sm:$0xff] }
 0x485   : > { %v2455_v63 = vmul.f32 %v4171_v54, %v2423_v8  ;;  %4178 = vpow2.f32 %v2391_v22  ;;  %v3267_v7 = vsub.f32 %v5855_v12, %v3235_v59  ;;  %v2760_v17 = vand.u32 2147483647, %v5915_v27  ;;  %v6889_v54 = vld [vmem:[#allocation75_spill] sm:$0xff] }
 0x486   : > { %6886 = vst [vmem:[#allocation55_spill] sm:$0xff] %v5926_v40  ;;  %v2984_v2 = vmul.f32 -0.5, %v5902_v26  ;;  %4180 = vpow2.f32 %v2837_v51  ;;  %v5933_v60 = vmul.f32 -2.0, %v6888_v44  ;;  %v2977_v12 = vmul.f32 %v5873_v16, %v2976_v31 }
 0x487   : > { %v4173_v38 = vpop.eup %4172  ;;  %v5930_v24 = vadd.f32 %v2455_v63, %v2225_v0  ;;  %v3302_v8 = vsel %vm3291_vm2, %v3267_v7, 0.0  ;;  %v2792_v19 = vsub.f32 0.0, %v2760_v17  ;;  %vm2979_vm13 = vcmp.lt.f32.partialorder %v2978_v56, 0.0004427343  ;;  %v6891_v7 = vld [vmem:[#allocation58_spill] sm:$0xff] }
 0x488   : > { %v2974_v22 = vmul.f32 0.6931472, %v4173_v38  ;;  %3344 = vadd.xlane.f32.xlu0 %v3302_v8  ;;  %v2761_v53 = vand.u32 2147483647, %v5933_v60  ;;  %v5942_v59 = vmul.f32 -2.0, %v6889_v54  ;;  %v6890_v38 = vld [vmem:[#allocation22_spill] sm:$0xff] }
 0x489   : > { %6887 = vst [vmem:[#allocation47_spill] sm:$0xff] %v5930_v24  ;;  %v6892_v16 = vsub.f32 %v6890_v38, %v6891_v7  ;;  %v2839_v56 = vmul.f32 1.442695, %v2792_v19  ;;  %v2985_v8 = vadd.f32 1.0, %v2984_v2  ;;  %v2987_v1 = vand.u32 2147483647, %v5902_v26 }
 0x48a   : > { %v5944_v0 = vpop.eup %4174  ;;  %v2980_v63 = vsel %vm2979_vm13, %v2977_v12, %v2974_v22  ;;  %v2793_v30 = vsub.f32 0.0, %v2761_v53  ;;  %v2762_v22 = vand.u32 2147483647, %v5942_v59  ;;  %v6893_v12 = vsub.f32 0.6931472, %v5458_v39  ;;  %v6894_v19 = vld [vmem:[#allocation26_spill] sm:$0xff] }
 0x48b   : > { %v5951_v31 = vadd.f32 -0.9189385, %v6892_v16  ;;  %v3172_v17 = vadd.f32 %v2980_v63, %v2724_v4  ;;  %v2990_v32 = vadd.f32 1.0, %v5944_v0  ;;  %4182 = vpow2.f32 %v2839_v56  ;;  %v6895_v63 = vld [vmem:[#allocation60_spill] sm:$0xff]  ;;  %v2424_v38 = vld [vmem:[%s5017_s24 + $0xf8] sm:$0xff] }
 0x48c   : > { %v2229_v4 = vadd.f32 %v5723_v3, %v5053_v13  ;;  %v6896_v7 = vsub.f32 %v6894_v19, %v6895_v63  ;;  %v2841_v56 = vmul.f32 1.442695, %v2793_v30  ;;  %v2794_v53 = vsub.f32 0.0, %v2762_v22 }
 0x48d   : > { %v3204_v51 = vsub.f32 %v6893_v12, %v3172_v17  ;;  %4184 = vlog2.f32 %v2990_v32  ;;  %v5968_v15 = vmul.f32 -2.0, %v6897_v18  ;;  %v2986_v12 = vmul.f32 %v5902_v26, %v2985_v8 }
 0x48e   : > { %v4177_v2 = vpop.eup %4176  ;;  %v5965_v16 = vadd.f32 -0.9189385, %v6896_v7  ;;  %v2993_v32 = vmul.f32 -0.5, %v5944_v0  ;;  %vm2988_vm14 = vcmp.lt.f32.partialorder %v2987_v1, 0.0004427343  ;;  %4186 = vpow2.f32 %v2841_v56  ;;  %v6898_v7 = vld [vmem:[#allocation19_spill] sm:$0xff] }
 0x48f   : > { %v4179_v40 = vpop.eup %4178  ;;  %v3236_v39 = vmul.f32 2.0, %v3204_v51  ;;  %v2983_v17 = vmul.f32 0.6931472, %v4177_v2  ;;  %v2843_v3 = vmul.f32 1.442695, %v2794_v53  ;;  %v5978_v21 = vmul.f32 -2.0, %v6898_v7 }
 0x490   : > { %v2456_v13 = vmul.f32 %v4179_v40, %v2424_v38  ;;  %v5973_v19 = vpop.eup %4180  ;;  %v2763_v63 = vand.u32 2147483647, %v5968_v15  ;;  %v2994_v8 = vadd.f32 1.0, %v2993_v32  ;;  %v2727_v53 = vmax.f32 %v5895_v55, 0.0 }
 0x491   : > { %v3268_v30 = vsub.f32 %v5882_v52, %v3236_v39  ;;  %v2989_v22 = vsel %vm2988_vm14, %v2986_v12, %v2983_v17  ;;  %v2999_v1 = vadd.f32 1.0, %v5973_v19  ;;  %4188 = vpow2.f32 %v2843_v3 }
 0x492   : > { %v3173_v51 = vadd.f32 %v2989_v22, %v2725_v29  ;;  %v5980_v2 = vadd.f32 %v2456_v13, %v2229_v4  ;;  %v2795_v56 = vsub.f32 0.0, %v2763_v63  ;;  %v6900_v39 = vsub.f32 0.6931472, %v5477_v33  ;;  %v6901_v29 = vld [vmem:[#allocation27_spill] sm:$0xff]  ;;  %v6902_v4 = vld [vmem:[#allocation62_spill] sm:$0xff] }
 0x493   : > { %v3303_v40 = vsel %vm3291_vm2, %v3268_v30, 0.0  ;;  %4190 = vlog2.f32 %v2999_v1  ;;  %v6903_v17 = vsub.f32 %v6901_v29, %v6902_v4  ;;  %v2996_v13 = vand.u32 2147483647, %v5944_v0  ;;  %v6905_v1 = vld [vmem:[#allocation28_spill] sm:$0xff] }
 0x494   : > { %6899 = vst [vmem:[#allocation20_spill] sm:$0xff] %v5980_v2  ;;  %3346 = vadd.xlane.f32.xlu1 %v3303_v40  ;;  %v3205_v52 = vsub.f32 %v6900_v39, %v3173_v51  ;;  %v5995_v22 = vmul.f32 %v2424_v38, %v2424_v38  ;;  %v2845_v30 = vmul.f32 1.442695, %v2795_v56  ;;  %v2764_v32 = vand.u32 2147483647, %v5978_v21  ;;  %v6906_v40 = vld [vmem:[#allocation64_spill] sm:$0xff] }
 0x495   : > { %v5992_v12 = vadd.f32 -0.9189385, %v6903_v17  ;;  %v5998_v3 = vpop.eup %4182  ;;  %v6907_v39 = vsub.f32 %v6905_v1, %v6906_v40  ;;  %v2995_v17 = vmul.f32 %v5944_v0, %v2994_v8  ;;  %v3002_v38 = vmul.f32 -0.5, %v5973_v19  ;;  %v6908_v51 = vld [vmem:[#allocation23_spill] sm:$0xff]  ;;  %v6909_v40 = vld [vmem:[#allocation30_spill] sm:$0xff] }
 0x496   : > { %6904 = vst [vmem:[#allocation52_spill] sm:$0xff] %v5995_v22  ;;  %v3237_v63 = vmul.f32 2.0, %v3205_v52  ;;  %v3008_v56 = vadd.f32 1.0, %v5998_v3  ;;  %4192 = vpow2.f32 %v2845_v30  ;;  %v2796_v33 = vsub.f32 0.0, %v2764_v32 }
 0x497   : > { %v6005_v29 = vadd.f32 -0.9189385, %v6907_v39  ;;  %v4185_v4 = vpop.eup %4184  ;;  %v6012_v22 = vmul.f32 -2.0, %v6908_v51  ;;  %vm2997_vm15 = vcmp.lt.f32.partialorder %v2996_v13, 0.0004427343  ;;  %v6910_v39 = vld [vmem:[#allocation66_spill] sm:$0xff] }
 0x498   : > { %v3269_v26 = vsub.f32 %v5908_v28, %v3237_v63  ;;  %v2992_v52 = vmul.f32 0.6931472, %v4185_v4  ;;  %4194 = vlog2.f32 %v3008_v56  ;;  %v6911_v55 = vsub.f32 %v6909_v40, %v6910_v39  ;;  %v6020_v8 = vpop.eup %4186 }
 0x499   : > { %v2847_v63 = vmul.f32 1.442695, %v2796_v33  ;;  %v6912_v13 = vmax.f32 %v5868_v48, 0.0  ;;  %v3003_v56 = vadd.f32 1.0, %v3002_v38  ;;  %v3017_v1 = vadd.f32 1.0, %v6020_v8  ;;  %v6914_v48 = vld [vmem:[#allocation31_spill] sm:$0xff] }
 0x49a   : > { %v6018_v0 = vadd.f32 -0.9189385, %v6911_v55  ;;  %v3304_v30 = vsel %vm3291_vm2, %v3269_v26, 0.0  ;;  %v2998_v28 = vsel %vm2997_vm15, %v2995_v17, %v2992_v52  ;;  %v3005_v55 = vand.u32 2147483647, %v5973_v19 }
 0x49b   : > { %3348 = vadd.xlane.f32.xlu0 %v3304_v30  ;;  %v3174_v4 = vadd.f32 %v2998_v28, %v6912_v13  ;;  %v3011_v39 = vmul.f32 -0.5, %v5998_v3  ;;  %4196 = vpow2.f32 %v2847_v63  ;;  %v2765_v26 = vand.u32 2147483647, %v6012_v22  ;;  %v6032_v17 = vpop.eup %4188  ;;  %v6915_v30 = vld [vmem:[#allocation68_spill] sm:$0xff] }
 0x49c   : > { %v6913_v33 = vsub.f32 0.6931472, %v5487_v49  ;;  %4198 = vlog2.f32 %v3017_v1  ;;  %v6916_v38 = vsub.f32 %v6914_v48, %v6915_v30  ;;  %v6917_v13 = vld [vmem:[#allocation24_spill] sm:$0xff]  ;;  %v3014_v25 = vand.u32 2147483647, %v5998_v3  ;;  %v6918_v30 = vld [vmem:[#allocation34_spill] sm:$0xff] }
 0x49d   : > { %v6042_v40 = vmul.f32 -2.0, %v6917_v13  ;;  %v4191_v32 = vpop.eup %4190  ;;  %v3020_v63 = vmul.f32 -0.5, %v6020_v8  ;;  %v3026_v45 = vadd.f32 1.0, %v6032_v17  ;;  %v2667_v20 = vsub.f32 0.6931472, %v6897_v18 }
 0x49e   : > { %v3206_v52 = vsub.f32 %v6913_v33, %v3174_v4  ;;  %v6039_v28 = vadd.f32 -0.9189385, %v6916_v38  ;;  %v3001_v4 = vmul.f32 0.6931472, %v4191_v32  ;;  %v3004_v1 = vmul.f32 %v5973_v19, %v3003_v56  ;;  %v6919_v38 = vld [vmem:[#allocation70_spill] sm:$0xff] }
 0x49f   : > { %v2797_v33 = vsub.f32 0.0, %v2765_v26  ;;  %vm3006_vm0 = vcmp.lt.f32.partialorder %v3005_v55, 0.0004427343  ;;  %v3012_v48 = vadd.f32 1.0, %v3011_v39  ;;  %4200 = vlog2.f32 %v3026_v45 }
 0x4a0   : > { %v3238_v49 = vmul.f32 2.0, %v3206_v52  ;;  %v6920_v37 = vsub.f32 %v6918_v30, %v6919_v38  ;;  %v6054_v43 = vpop.eup %4192  ;;  %v3007_v2 = vsel %vm3006_vm0, %v3004_v1, %v3001_v4  ;;  %v2766_v52 = vand.u32 2147483647, %v6042_v40 }
 0x4a1   : > { %v2849_v24 = vmul.f32 1.442695, %v2797_v33  ;;  %v3175_v32 = vadd.f32 %v3007_v2, %v2727_v53  ;;  %vm6058_vm1 = vcmp.lt.f32.partialorder %v3014_v25, 0.0004427343  ;;  %v3021_v56 = vadd.f32 1.0, %v3020_v63 }
 0x4a2   : > { %v6052_v41 = vadd.f32 -0.9189385, %v6920_v37  ;;  %v3270_v34 = vsub.f32 %v5951_v31, %v3238_v49  ;;  %v3035_v45 = vadd.f32 1.0, %v6054_v43  ;;  %v4195_v55 = vpop.eup %4194  ;;  %v3029_v39 = vmul.f32 -0.5, %v6032_v17 }
 0x4a3   : > { %4202 = vpow2.f32 %v2849_v24  ;;  %v2798_v49 = vsub.f32 0.0, %v2766_v52  ;;  %v6923_v31 = vsub.f32 0.6931472, %v6879_v35  ;;  %v3010_v2 = vmul.f32 0.6931472, %v4195_v55 }
 0x4a4   : > { %v3305_v37 = vsel %vm3291_vm2, %v3270_v34, 0.0  ;;  %v3013_v25 = vmul.f32 %v5998_v3, %v3012_v48  ;;  %4204 = vlog2.f32 %v3035_v45  ;;  %v3023_v53 = vand.u32 2147483647, %v6020_v8 }
 0x4a5   : > { %3350 = vadd.xlane.f32.xlu1 %v3305_v37  ;;  %v3207_v26 = vsub.f32 %v6923_v31, %v3175_v32  ;;  %v2730_v63 = vmax.f32 %v5942_v59, 0.0  ;;  %v3038_v4 = vmul.f32 -0.5, %v6054_v43  ;;  %v2851_v1 = vmul.f32 1.442695, %v2798_v49  ;;  %v6072_v34 = vpop.eup %4196 }
 0x4a6   : > { %v3016_v24 = vsel %vm6058_vm1, %v3013_v25, %v3010_v2  ;;  %v3032_v30 = vand.u32 2147483647, %v6032_v17  ;;  %v2668_v38 = vsub.f32 0.6931472, %v6898_v7  ;;  %v4199_v52 = vpop.eup %4198  ;;  %v6924_v3 = vmax.f32 %v5915_v27, 0.0 }
 0x4a7   : > { %v3239_v33 = vmul.f32 2.0, %v3207_v26  ;;  %v3022_v32 = vmul.f32 %v6020_v8, %v3021_v56  ;;  %v3030_v59 = vadd.f32 1.0, %v3029_v39  ;;  %v3044_v45 = vadd.f32 1.0, %v6072_v34 }
 0x4a8   : > { %v3176_v48 = vadd.f32 %v3016_v24, %v6924_v3  ;;  %v3019_v37 = vmul.f32 0.6931472, %v4199_v52  ;;  %4206 = vpow2.f32 %v2851_v1  ;;  %v6084_v19 = vmul.f32 -2.0, %v5676_v9 }
 0x4a9   : > { %v3271_v55 = vsub.f32 %v5965_v16, %v3239_v33  ;;  %v6925_v49 = vsub.f32 0.6931472, %v6884_v23  ;;  %vm3024_vm3 = vcmp.lt.f32.partialorder %v3023_v53, 0.0004427343  ;;  %v3039_v26 = vadd.f32 1.0, %v3038_v4  ;;  %v4201_v27 = vpop.eup %4200 }
 0x4aa   : > { %4208 = vlog2.f32 %v3044_v45  ;;  %v3025_v56 = vsel %vm3024_vm3, %v3022_v32, %v3019_v37  ;;  %v3047_v39 = vmul.f32 -0.5, %v6072_v34  ;;  %v2767_v16 = vand.u32 2147483647, %v6084_v19 }
 0x4ab   : > { %v3208_v31 = vsub.f32 %v6925_v49, %v3176_v48  ;;  %v3306_v8 = vsel %vm3291_vm2, %v3271_v55, 0.0  ;;  %v6926_v25 = vmax.f32 %v5933_v60, 0.0  ;;  %v3028_v33 = vmul.f32 0.6931472, %v4201_v27 }
 0x4ac   : > { %3352 = vadd.xlane.f32.xlu0 %v3306_v8  ;;  %v3031_v24 = vmul.f32 %v6032_v17, %v3030_v59  ;;  %vm3033_vm4 = vcmp.lt.f32.partialorder %v3032_v30, 0.0004427343  ;;  %v2731_v53 = vmax.f32 %v5968_v15, 0.0  ;;  %v3041_v4 = vand.u32 2147483647, %v6054_v43  ;;  %v6928_v17 = vld [vmem:[#allocation25_spill] sm:$0xff] }
 0x4ad   : > { %v3240_v2 = vmul.f32 2.0, %v3208_v31  ;;  %v3177_v1 = vadd.f32 %v3025_v56, %v6926_v25  ;;  %v2799_v52 = vsub.f32 0.0, %v2767_v16  ;;  %v4203_v3 = vpop.eup %4202  ;;  %v6927_v32 = vsub.f32 0.6931472, %v6888_v44 }
 0x4ae   : > { %v3034_v55 = vsel %vm3033_vm4, %v3031_v24, %v3028_v33  ;;  %v3040_v37 = vmul.f32 %v6054_v43, %v3039_v26  ;;  %v4205_v60 = vpop.eup %4204  ;;  %v3048_v31 = vadd.f32 1.0, %v3047_v39  ;;  %v3053_v27 = vadd.f32 1.0, %v4203_v3 }
 0x4af   : > { %v3272_v48 = vsub.f32 %v5992_v12, %v3240_v2  ;;  %v3209_v45 = vsub.f32 %v6927_v32, %v3177_v1  ;;  %v3178_v49 = vadd.f32 %v3034_v55, %v2730_v63  ;;  %v6102_v30 = vmul.f32 -2.0, %v6928_v17 }
 0x4b0   : > { %v3037_v8 = vmul.f32 0.6931472, %v4205_v60  ;;  %v2853_v56 = vmul.f32 1.442695, %v2799_v52  ;;  %v6929_v12 = vsub.f32 0.6931472, %v6889_v54  ;;  %4210 = vlog2.f32 %v3053_v27 }
 0x4b1   : > { %v3307_v15 = vsel %vm3291_vm2, %v3272_v48, 0.0  ;;  %v3241_v59 = vmul.f32 2.0, %v3209_v45  ;;  %vm3042_vm5 = vcmp.lt.f32.partialorder %v3041_v4, 0.0004427343  ;;  %v3050_v43 = vand.u32 2147483647, %v6072_v34 }
 0x4b2   : > { %3354 = vadd.xlane.f32.xlu1 %v3307_v15  ;;  %v3210_v16 = vsub.f32 %v6929_v12, %v3178_v49  ;;  %v3043_v26 = vsel %vm3042_vm5, %v3040_v37, %v3037_v8  ;;  %v3056_v39 = vmul.f32 -0.5, %v4203_v3  ;;  %4212 = vpow2.f32 %v2853_v56  ;;  %v6110_v2 = vpop.eup %4206  ;;  %v6932_v8 = vld [vmem:[#allocation72_spill] sm:$0xff]  ;;  %v6934_v12 = vld [vmem:[#allocation29_spill] sm:$0xff] }
 0x4b3   : > { %v3273_v63 = vsub.f32 %v6005_v29, %v3241_v59  ;;  %v3179_v1 = vadd.f32 %v3043_v26, %v2731_v53  ;;  %v2732_v33 = vmax.f32 %v5978_v21, 0.0  ;;  %v2768_v24 = vand.u32 2147483647, %v6102_v30  ;;  %v6930_v29 = vld [vmem:[#allocation32_spill] sm:$0xff] }
 0x4b4   : > { %v3242_v25 = vmul.f32 2.0, %v3210_v16  ;;  %v4209_v52 = vpop.eup %4208  ;;  %v3049_v48 = vmul.f32 %v6072_v34, %v3048_v31  ;;  %v3062_v32 = vadd.f32 1.0, %v6110_v2  ;;  %4214 = vtanh.f32 %v6930_v29  ;;  %v6931_v59 = vld [vmem:[#allocation36_spill] sm:$0xff] }
 0x4b5   : > { %v3308_v4 = vsel %vm3291_vm2, %v3273_v63, 0.0  ;;  %v3211_v53 = vsub.f32 %v2667_v20, %v3179_v1  ;;  %v3046_v55 = vmul.f32 0.6931472, %v4209_v52  ;;  %v2800_v21 = vsub.f32 0.0, %v2768_v24  ;;  %v6935_v1 = vld [vmem:[#allocation37_spill] sm:$0xff] }
 0x4b6   : > { %3356 = vadd.xlane.f32.xlu0 %v3308_v4  ;;  %v3274_v45 = vsub.f32 %v6018_v0, %v3242_v25  ;;  %vm3051_vm6 = vcmp.lt.f32.partialorder %v3050_v43, 0.0004427343  ;;  %v3057_v37 = vadd.f32 1.0, %v3056_v39  ;;  %v3059_v60 = vand.u32 2147483647, %v4203_v3 }
 0x4b7   : > { %4216 = vlog2.f32 %v3062_v32  ;;  %v3243_v34 = vmul.f32 2.0, %v3211_v53  ;;  %v3052_v31 = vsel %vm3051_vm6, %v3049_v48, %v3046_v55  ;;  %v2855_v27 = vmul.f32 1.442695, %v2800_v21 }
 0x4b8   : > { %v3309_v49 = vsel %vm3291_vm2, %v3274_v45, 0.0  ;;  %v3180_v15 = vadd.f32 %v3052_v31, %v2732_v33  ;;  %v6933_v0 = vsub.f32 %v6931_v59, %v6932_v8  ;;  %v2669_v20 = vsub.f32 0.6931472, %v6908_v51  ;;  %v6936_v33 = vld [vmem:[#allocation74_spill] sm:$0xff] }
 0x4b9   : > { %3358 = vadd.xlane.f32.xlu1 %v3309_v49  ;;  %v6131_v16 = vmul.f32 -2.0, %v6934_v12  ;;  %v3275_v43 = vsub.f32 %v6039_v28, %v3243_v34  ;;  %v3065_v63 = vmul.f32 -0.5, %v6110_v2  ;;  %4218 = vpow2.f32 %v2855_v27 }
 0x4ba   : > { %v6127_v56 = vadd.f32 -0.9189385, %v6933_v0  ;;  %v6136_v26 = vmul.f32 -2.0, %v5751_v58  ;;  %v3212_v39 = vsub.f32 %v2668_v38, %v3180_v15  ;;  %v2733_v25 = vmax.f32 %v6012_v22, 0.0  ;;  %v4211_v48 = vpop.eup %4210 }
 0x4bb   : > { %v6937_v24 = vsub.f32 %v6935_v1, %v6936_v33  ;;  %v2769_v4 = vand.u32 2147483647, %v6131_v16  ;;  %v3310_v28 = vsel %vm3291_vm2, %v3275_v43, 0.0  ;;  %v3058_v32 = vmul.f32 %v4203_v3, %v3057_v37  ;;  %v6940_v43 = vld [vmem:[#allocation38_spill] sm:$0xff] }
 0x4bc   : > { %vm6149_vm7 = vcmp.lt.f32.partialorder %v3059_v60, 0.0004427343  ;;  %v2770_v38 = vand.u32 2147483647, %v6136_v26  ;;  %v6154_v45 = vpop.eup %4212  ;;  %3360 = vadd.xlane.f32.xlu0 %v3310_v28  ;;  %v3244_v22 = vmul.f32 2.0, %v3212_v39  ;;  %v6157_v21 = vmul.f32 -2.0, %v5787_v62 }
 0x4bd   : > { %v6144_v52 = vadd.f32 -0.9189385, %v6937_v24  ;;  %v3055_v53 = vmul.f32 0.6931472, %v4211_v48  ;;  %v2801_v55 = vsub.f32 0.0, %v2769_v4  ;;  %v3066_v49 = vadd.f32 1.0, %v3065_v63 }
 0x4be   : > { %v3068_v34 = vand.u32 2147483647, %v6110_v2  ;;  %v3071_v3 = vadd.f32 1.0, %v6154_v45  ;;  %v2802_v37 = vsub.f32 0.0, %v2770_v38  ;;  %v6161_v60 = vpop.eup %4214  ;;  %v3276_v31 = vsub.f32 %v6052_v41, %v3244_v22  ;;  %v6941_v63 = vld [vmem:[#allocation48_spill] sm:$0xff] }
 0x4bf   : > { %v3061_v27 = vsel %vm6149_vm7, %v3058_v32, %v3055_v53  ;;  %v2670_v15 = vsub.f32 0.6931472, %v6917_v13  ;;  %v2857_v59 = vmul.f32 1.442695, %v2801_v55  ;;  %v2734_v0 = vmax.f32 %v6042_v40, 0.0 }
 0x4c0   : > { %v3181_v8 = vadd.f32 %v3061_v27, %v2733_v25  ;;  %v6942_v39 = vsub.f32 %v6940_v43, %v6941_v63  ;;  %4220 = vlog2.f32 %v3071_v3  ;;  %v3311_v24 = vsel %vm3291_vm2, %v3276_v31, 0.0 }
 0x4c1   : > { %v4217_v33 = vpop.eup %4216  ;;  %4222 = vpow2.f32 %v2857_v59  ;;  %v2859_v41 = vmul.f32 1.442695, %v2802_v37  ;;  %v2771_v4 = vand.u32 2147483647, %v6157_v21  ;;  %3362 = vadd.xlane.f32.xlu1 %v3311_v24  ;;  %v3067_v25 = vmul.f32 %v6110_v2, %v3066_v49 }
 0x4c2   : > { %v6171_v1 = vadd.f32 -0.9189385, %v6942_v39  ;;  %v3213_v48 = vsub.f32 %v2669_v20, %v3181_v8  ;;  %v3064_v28 = vmul.f32 0.6931472, %v4217_v33  ;;  %vm3069_vm8 = vcmp.lt.f32.partialorder %v3068_v34, 0.0004427343 }
 0x4c3   : > { %v3074_v40 = vmul.f32 -0.5, %v6154_v45  ;;  %4224 = vpow2.f32 %v2859_v41  ;;  %v2803_v32 = vsub.f32 0.0, %v2771_v4  ;;  %v6179_v29 = vmul.f32 -2.0, %v5833_v5  ;;  %v6181_v38 = vpop.eup %4218 }
 0x4c4   : > { %v3245_v22 = vmul.f32 2.0, %v3213_v48  ;;  %v3070_v53 = vsel %vm3069_vm8, %v3067_v25, %v3064_v28  ;;  %v2671_v55 = vsub.f32 0.6931472, %v5676_v9  ;;  %v2735_v3 = vmax.f32 %v6084_v19, 0.0  ;;  %v6946_v28 = vld [vmem:[#allocation35_spill] sm:$0xff] }
 0x4c5   : > { %v3182_v20 = vadd.f32 %v3070_v53, %v2734_v0  ;;  %v6943_v2 = vsub.f32 %v6858_v46, %v5600_v42  ;;  %v2672_v34 = vsub.f32 0.6931472, %v6928_v17  ;;  %v3080_v37 = vadd.f32 1.0, %v6181_v38 }
 0x4c6   : > { %v3277_v31 = vsub.f32 %v6127_v56, %v3245_v22  ;;  %v6944_v27 = vsub.f32 %v6862_v57, %v5629_v61  ;;  %v2861_v8 = vmul.f32 1.442695, %v2803_v32  ;;  %v2772_v19 = vand.u32 2147483647, %v6179_v29 }
 0x4c7   : > { %v6188_v49 = vadd.f32 -0.9189385, %v6943_v2  ;;  %v3214_v0 = vsub.f32 %v2670_v15, %v3182_v20  ;;  %v3075_v43 = vadd.f32 1.0, %v3074_v40  ;;  %v3077_v42 = vand.u32 2147483647, %v6154_v45 }
 0x4c8   : > { %v6196_v59 = vadd.f32 -0.9189385, %v6944_v27  ;;  %4226 = vlog2.f32 %v3080_v37  ;;  %v3312_v46 = vsel %vm3291_vm2, %v3277_v31, 0.0  ;;  %v2804_v63 = vsub.f32 0.0, %v2772_v19 }
 0x4c9   : > { %4228 = vpow2.f32 %v2861_v8  ;;  %v6203_v56 = vmul.f32 -2.0, %v5861_v6  ;;  %3364 = vadd.xlane.f32.xlu0 %v3312_v46  ;;  %v3246_v61 = vmul.f32 2.0, %v3214_v0  ;;  %v2736_v57 = vmax.f32 %v6102_v30, 0.0 }
 0x4ca   : > { %v3083_v39 = vmul.f32 -0.5, %v6181_v38  ;;  %v2673_v15 = vsub.f32 0.6931472, %v6934_v12  ;;  %v4221_v33 = vpop.eup %4220  ;;  %v6945_v24 = vsub.f32 %v6868_v36, %v5657_v10  ;;  %v2863_v4 = vmul.f32 1.442695, %v2804_v63 }
 0x4cb   : > { %v2773_v48 = vand.u32 2147483647, %v6203_v56  ;;  %4230 = vtanh.f32 %v6946_v28  ;;  %v4223_v25 = vpop.eup %4222  ;;  %v3278_v40 = vsub.f32 %v6144_v52, %v3246_v61  ;;  %v3073_v32 = vmul.f32 0.6931472, %v4221_v33 }
 0x4cc   : > { %v6211_v41 = vadd.f32 -0.9189385, %v6945_v24  ;;  %v3076_v30 = vmul.f32 %v6154_v45, %v3075_v43  ;;  %v2674_v22 = vsub.f32 0.6931472, %v5751_v58  ;;  %vm3078_vm9 = vcmp.lt.f32.partialorder %v3077_v42, 0.0004427343 }
 0x4cd   : > { %v3089_v53 = vadd.f32 1.0, %v4223_v25  ;;  %4232 = vpow2.f32 %v2863_v4  ;;  %v6219_v10 = vmul.f32 -2.0, %v5911_v14  ;;  %v6221_v36 = vpop.eup %4224  ;;  %v3313_v20 = vsel %vm3291_vm2, %v3278_v40, 0.0 }
 0x4ce   : > { %v3079_v2 = vsel %vm3078_vm9, %v3076_v30, %v3073_v32  ;;  %v3084_v37 = vadd.f32 1.0, %v3083_v39  ;;  %v2805_v31 = vsub.f32 0.0, %v2773_v48  ;;  %3366 = vadd.xlane.f32.xlu1 %v3313_v20  ;;  %v2737_v45 = vmax.f32 %v6131_v16, 0.0 }
 0x4cf   : > { %v3183_v52 = vadd.f32 %v3079_v2, %v2735_v3  ;;  %4234 = vlog2.f32 %v3089_v53  ;;  %v6947_v27 = vsub.f32 %v5794_v47, %v5699_v50  ;;  %v3086_v19 = vand.u32 2147483647, %v6181_v38  ;;  %v6948_v47 = vld [vmem:[#allocation47_spill] sm:$0xff] }
 0x4d0   : > { %v3092_v0 = vmul.f32 -0.5, %v4223_v25  ;;  %v3098_v43 = vadd.f32 1.0, %v6221_v36  ;;  %v2865_v42 = vmul.f32 1.442695, %v2805_v31  ;;  %v2738_v63 = vmax.f32 %v6136_v26, 0.0 }
 0x4d1   : > { %v6229_v8 = vadd.f32 -0.9189385, %v6947_v27  ;;  %v3215_v46 = vsub.f32 %v2671_v55, %v3183_v52  ;;  %v2675_v61 = vsub.f32 0.6931472, %v5787_v62  ;;  %v2774_v3 = vand.u32 2147483647, %v6219_v10 }
 0x4d2   : > { %v4227_v39 = vpop.eup %4226  ;;  %v3085_v33 = vmul.f32 %v6181_v38, %v3084_v37  ;;  %4236 = vlog2.f32 %v3098_v43  ;;  %v3101_v50 = vmul.f32 -0.5, %v6221_v36  ;;  %v6239_v24 = vmul.f32 -2.0, %v6948_v47 }
 0x4d3   : > { %v6241_v4 = vpop.eup %4228  ;;  %v3247_v48 = vmul.f32 2.0, %v3215_v46  ;;  %v3082_v28 = vmul.f32 0.6931472, %v4227_v39  ;;  %4238 = vpow2.f32 %v2865_v42  ;;  %v2806_v55 = vsub.f32 0.0, %v2774_v3 }
 0x4d4   : > { %vm3087_vm10 = vcmp.lt.f32.partialorder %v3086_v19, 0.0004427343  ;;  %v3093_v40 = vadd.f32 1.0, %v3092_v0  ;;  %v3095_v32 = vand.u32 2147483647, %v4223_v25  ;;  %v3107_v30 = vadd.f32 1.0, %v6241_v4 }
 0x4d5   : > { %v6244_v53 = vpop.eup %4230  ;;  %v3279_v38 = vsub.f32 %v6171_v1, %v3247_v48  ;;  %v3088_v20 = vsel %vm3087_vm10, %v3085_v33, %v3082_v28  ;;  %v3104_v2 = vand.u32 2147483647, %v6221_v36  ;;  %v2867_v37 = vmul.f32 1.442695, %v2806_v55  ;;  %v6953_v28 = vld [vmem:[#allocation20_spill] sm:$0xff] }
 0x4d6   : > { %v3184_v31 = vadd.f32 %v3088_v20, %v2736_v57  ;;  %v3102_v52 = vadd.f32 1.0, %v3101_v50  ;;  %v2739_v27 = vmax.f32 %v6157_v21, 0.0  ;;  %4240 = vlog2.f32 %v3107_v30 }
 0x4d7   : > { %v6249_v43 = vpop.eup %4232  ;;  %v3314_v19 = vsel %vm3291_vm2, %v3279_v38, 0.0  ;;  %v3110_v0 = vmul.f32 -0.5, %v6241_v4  ;;  %4242 = vpow2.f32 %v2867_v37  ;;  %v2775_v1 = vand.u32 2147483647, %v6239_v24 }
 0x4d8   : > { %3368 = vadd.xlane.f32.xlu0 %v3314_v19  ;;  %v3216_v57 = vsub.f32 %v2672_v34, %v3184_v31  ;;  %vm6258_vm11 = vcmp.lt.f32.partialorder %v3095_v32, 0.0004427343  ;;  %v2676_v46 = vsub.f32 0.6931472, %v5833_v5  ;;  %v3116_v3 = vadd.f32 1.0, %v6249_v43  ;;  %v3325_v32 = vpop.xlane.xlu0 %3324 }
 0x4d9   : > { %v4235_v39 = vpop.eup %4234  ;;  %v3094_v33 = vmul.f32 %v4223_v25, %v3093_v40  ;;  %vm6264_vm12 = vcmp.lt.f32.partialorder %v3104_v2, 0.0004427343  ;;  %v2807_v48 = vsub.f32 0.0, %v2775_v1  ;;  %v6269_v55 = vmul.f32 -2.0, %v6953_v28 }
 0x4da   : > { %v3248_v30 = vmul.f32 2.0, %v3216_v57  ;;  %v3091_v34 = vmul.f32 0.6931472, %v4235_v39  ;;  %4244 = vlog2.f32 %v3116_v3  ;;  %vm3420_vm13 = vcmp.eq.s32.totalorder %v5048_v11, 8 }
 0x4db   : > { %v3103_v38 = vmul.f32 %v6221_v36, %v3102_v52  ;;  %v3111_v25 = vadd.f32 1.0, %v3110_v0  ;;  %v3119_v40 = vmul.f32 -0.5, %v6249_v43  ;;  %v2869_v20 = vmul.f32 1.442695, %v2807_v48 }
 0x4dc   : > { %v4237_v2 = vpop.eup %4236  ;;  %v3280_v37 = vsub.f32 %v6188_v49, %v3248_v30  ;;  %v3097_v31 = vsel %vm6258_vm11, %v3094_v33, %v3091_v34  ;;  %v2776_v19 = vand.u32 2147483647, %v6269_v55  ;;  %v3388_v1 = vmul.f32 2.0, %v6161_v60 }
 0x4dd   : > { %v6283_v57 = vpop.eup %4238  ;;  %v3185_v3 = vadd.f32 %v3097_v31, %v2737_v45  ;;  %v3100_v36 = vmul.f32 0.6931472, %v4237_v2  ;;  %4246 = vpow2.f32 %v2869_v20  ;;  %v3421_v52 = vsel %vm3420_vm13, %v3325_v32, 0.0 }
 0x4de   : > { %v3315_v49 = vsel %vm3291_vm2, %v3280_v37, 0.0  ;;  %v3113_v0 = vand.u32 2147483647, %v6241_v4  ;;  %v3122_v42 = vand.u32 2147483647, %v6249_v43  ;;  %v3125_v60 = vadd.f32 1.0, %v6283_v57 }
 0x4df   : > { %3370 = vadd.xlane.f32.xlu1 %v3315_v49  ;;  %v3217_v16 = vsub.f32 %v2673_v15, %v3185_v3  ;;  %v3106_v45 = vsel %vm6264_vm12, %v3103_v38, %v3100_v36  ;;  %v2808_v39 = vsub.f32 0.0, %v2776_v19  ;;  %v3453_v33 = vsel %vm3291_vm2, %v3388_v1, %v3421_v52 }
 0x4e0   : > { %v4241_v48 = vpop.eup %4240  ;;  %v3186_v30 = vadd.f32 %v3106_v45, %v2738_v63  ;;  %v3112_v34 = vmul.f32 %v6241_v4, %v3111_v25  ;;  %v2740_v32 = vmax.f32 %v6179_v29, 0.0  ;;  %4248 = vlog2.f32 %v3125_v60  ;;  %3485 = vst [vmem:[%s6305_s21] sm:$0xff] %v3453_v33  ;;  %v3327_v63 = vpop.xlane.xlu0 %3326 }
 0x4e1   : > { %v6308_v15 = vpop.eup %4242  ;;  %v3249_v50 = vmul.f32 2.0, %v3217_v16  ;;  %v3109_v38 = vmul.f32 0.6931472, %v4241_v48  ;;  %v3120_v20 = vadd.f32 1.0, %v3119_v40  ;;  %v2871_v2 = vmul.f32 1.442695, %v2808_v39  ;;  %v3329_v33 = vpop.xlane.xlu1 %3328 }
 0x4e2   : > { %v3218_v37 = vsub.f32 %v2674_v22, %v3186_v30  ;;  %vm3114_vm14 = vcmp.lt.f32.partialorder %v3113_v0, 0.0004427343  ;;  %vm6312_vm15 = vcmp.lt.f32.partialorder %v3122_v42, 0.0004427343  ;;  %v3134_v29 = vadd.f32 1.0, %v6308_v15  ;;  %v6956_v16 = vld [vmem:[#allocation41_spill] sm:$0xff] }
 0x4e3   : > { %v3281_v4 = vsub.f32 %v6196_v59, %v3249_v50  ;;  %v3115_v25 = vsel %vm3114_vm14, %v3112_v34, %v3109_v38  ;;  %v3128_v31 = vmul.f32 -0.5, %v6283_v57  ;;  %4250 = vpow2.f32 %v2871_v2  ;;  %v6957_v48 = vld [vmem:[#allocation50_spill] sm:$0xff]  ;;  %v6958_v30 = vld [vmem:[#allocation33_spill] sm:$0xff]  ;;  %v6960_v38 = vld [vmem:[#allocation40_spill] sm:$0xff] }
 0x4e4   : > { %v4245_v19 = vpop.eup %4244  ;;  %v3250_v40 = vmul.f32 2.0, %v3218_v37  ;;  %v3187_v1 = vadd.f32 %v3115_v25, %v2739_v27  ;;  %4252 = vlog2.f32 %v3134_v29  ;;  %v3389_v22 = vmul.f32 2.0, %v6244_v53  ;;  %v6963_v29 = vld [vmem:[#allocation42_spill] sm:$0xff] }
 0x4e5   : > { %v3316_v3 = vsel %vm3291_vm2, %v3281_v4, 0.0  ;;  %v3118_v36 = vmul.f32 0.6931472, %v4245_v19  ;;  %v3121_v52 = vmul.f32 %v6249_v43, %v3120_v20  ;;  %v3422_v59 = vsel %vm3420_vm13, %v3327_v63, 0.0  ;;  %v6961_v20 = vld [vmem:[#allocation39_spill] sm:$0xff] }
 0x4e6   : > { %3372 = vadd.xlane.f32.xlu0 %v3316_v3  ;;  %v3282_v49 = vsub.f32 %v6211_v41, %v3250_v40  ;;  %v3219_v21 = vsub.f32 %v2675_v61, %v3187_v1  ;;  %v3131_v27 = vand.u32 2147483647, %v6283_v57  ;;  %v3454_v53 = vsel %vm3291_vm2, %v3389_v22, %v3422_v59  ;;  %v6966_v1 = vld [vmem:[#allocation45_spill] sm:$0xff]  ;;  %v6967_v3 = vld [vmem:[#allocation46_spill] sm:$0xff] }
 0x4e7   : > { %v6333_v0 = vpop.eup %4246  ;;  %v3124_v42 = vsel %vm6312_vm15, %v3121_v52, %v3118_v36  ;;  %v3129_v43 = vadd.f32 1.0, %v3128_v31  ;;  %v3137_v60 = vmul.f32 -0.5, %v6308_v15  ;;  %3486 = vst [vmem:[%s6305_s21 + $0x8] sm:$0xff] %v3454_v53  ;;  %4254 = vtanh.f32 %v6956_v16  ;;  %v6968_v59 = vld [vmem:[#allocation49_spill] sm:$0xff]  ;;  %v6969_v53 = vld [vmem:[#allocation51_spill] sm:$0xff] }
 0x4e8   : > { %v3317_v41 = vsel %vm3291_vm2, %v3282_v49, 0.0  ;;  %v3251_v61 = vmul.f32 2.0, %v3219_v21  ;;  %v3188_v45 = vadd.f32 %v3124_v42, %v2740_v32  ;;  %v3143_v39 = vadd.f32 1.0, %v6333_v0  ;;  %v6970_v42 = vld [vmem:[#allocation43_spill] sm:$0xff] }
 0x4e9   : > { %3374 = vadd.xlane.f32.xlu1 %v3317_v41  ;;  %v6959_v34 = vsub.f32 %v6957_v48, %v6958_v30  ;;  %v6962_v2 = vsub.f32 %v6960_v38, %v6961_v20  ;;  %v2741_v26 = vmax.f32 %v6203_v56, 0.0  ;;  %4256 = vtanh.f32 %v6963_v29  ;;  %v3331_v41 = vpop.xlane.xlu1 %3330 }
 0x4ea   : > { %v4249_v63 = vpop.eup %4248  ;;  %v3283_v32 = vsub.f32 %v6229_v8, %v3251_v61  ;;  %v3220_v4 = vsub.f32 %v2676_v46, %v3188_v45  ;;  %vm6356_vm0 = vcmp.lt.f32.partialorder %v3131_v27, 0.0004427343  ;;  %4258 = vlog2.f32 %v3143_v39 }
 0x4eb   : > { %v3794_v50 = vadd.f32 -0.9189385, %v6959_v34  ;;  %v6349_v37 = vadd.f32 -0.9189385, %v6962_v2  ;;  %v3127_v31 = vmul.f32 0.6931472, %v4249_v63  ;;  %v3130_v19 = vmul.f32 %v6283_v57, %v3129_v43 }
 0x4ec   : > { %v3138_v40 = vadd.f32 1.0, %v3137_v60  ;;  %4260 = vtanh.f32 %v6966_v1  ;;  %v3318_v56 = vsel %vm3291_vm2, %v3283_v32, 0.0  ;;  %v3252_v22 = vmul.f32 2.0, %v3220_v4  ;;  %v3333_v32 = vpop.xlane.xlu0 %3332  ;;  %v6974_v1 = vld [vmem:[#allocation54_spill] sm:$0xff] }
 0x4ed   : > { %v3140_v8 = vand.u32 2147483647, %v6308_v15  ;;  %4262 = vtanh.f32 %v6967_v3  ;;  %v6366_v46 = vpop.eup %4250  ;;  %3376 = vadd.xlane.f32.xlu0 %v3318_v56  ;;  %v2677_v36 = vsub.f32 0.6931472, %v5861_v6  ;;  %v3133_v52 = vsel %vm6356_vm0, %v3130_v19, %v3127_v31 }
 0x4ee   : > { %v3146_v57 = vmul.f32 -0.5, %v6333_v0  ;;  %4264 = vtanh.f32 %v6968_v59  ;;  %v4253_v49 = vpop.eup %4252  ;;  %v3284_v21 = vsub.f32 %v3794_v50, %v3252_v22  ;;  %v3189_v27 = vadd.f32 %v3133_v52, %v2741_v26 }
 0x4ef   : > { %v6971_v43 = vsub.f32 %v6969_v53, %v6970_v42  ;;  %v3152_v16 = vadd.f32 1.0, %v6366_v46  ;;  %v2742_v61 = vmax.f32 %v6219_v10, 0.0  ;;  %v3136_v45 = vmul.f32 0.6931472, %v4253_v49  ;;  %v3335_v4 = vpop.xlane.xlu1 %3334 }
 0x4f0   : > { %v3139_v39 = vmul.f32 %v6308_v15, %v3138_v40  ;;  %v3149_v48 = vand.u32 2147483647, %v6333_v0  ;;  %v3319_v30 = vsel %vm3291_vm2, %v3284_v21, 0.0  ;;  %v3221_v34 = vsub.f32 %v2677_v36, %v3189_v27 }
 0x4f1   : > { %v3796_v60 = vadd.f32 -0.9189385, %v6971_v43  ;;  %vm3141_vm1 = vcmp.lt.f32.partialorder %v3140_v8, 0.0004427343  ;;  %4266 = vlog2.f32 %v3152_v16  ;;  %v4255_v50 = vpop.eup %4254  ;;  %3378 = vadd.xlane.f32.xlu1 %v3319_v30  ;;  %v2678_v38 = vsub.f32 0.6931472, %v5911_v14 }
 0x4f2   : > { %v3142_v20 = vsel %vm3141_vm1, %v3139_v39, %v3136_v45  ;;  %v3147_v2 = vadd.f32 1.0, %v3146_v57  ;;  %v3423_v10 = vsel %vm3420_vm13, %v3329_v33, 0.0  ;;  %v3253_v26 = vmul.f32 2.0, %v3221_v34 }
 0x4f3   : > { %v3190_v29 = vadd.f32 %v3142_v20, %v2742_v61  ;;  %v2743_v15 = vmax.f32 %v6239_v24, 0.0  ;;  %v3390_v63 = vmul.f32 2.0, %v4255_v50  ;;  %v4257_v25 = vpop.eup %4256  ;;  %vm6386_vm3 = vcmp.lt.f32.partialorder %v3149_v48, 0.0004427343  ;;  %v6975_v20 = vld [vmem:[#allocation52_spill] sm:$0xff] }
 0x4f4   : > { %v3155_v19 = vmul.f32 -0.5, %v6366_v46  ;;  %v3424_v40 = vsel %vm3420_vm13, %v3331_v41, 0.0  ;;  %4268 = vtanh.f32 %v6974_v1  ;;  %v4259_v33 = vpop.eup %4258  ;;  %v3285_v56 = vsub.f32 %v6349_v37, %v3253_v26 }
 0x4f5   : > { %v3222_v24 = vsub.f32 %v2678_v38, %v3190_v29  ;;  %v3455_v22 = vsel %vm3291_vm2, %v3390_v63, %v3423_v10  ;;  %v3391_v8 = vmul.f32 2.0, %v4257_v25  ;;  %v3145_v36 = vmul.f32 0.6931472, %v4259_v33  ;;  %v6978_v25 = vld [vmem:[#allocation53_spill] sm:$0xff] }
 0x4f6   : > { %v4261_v3 = vpop.eup %4260  ;;  %v3148_v52 = vmul.f32 %v6333_v0, %v3147_v2  ;;  %3487 = vst [vmem:[%s6305_s21 + $0x10] sm:$0xff] %v3455_v22  ;;  %v3425_v57 = vsel %vm3420_vm13, %v3333_v32, 0.0  ;;  %v3426_v59 = vsel %vm3420_vm13, %v3335_v4, 0.0  ;;  %v3320_v37 = vsel %vm3291_vm2, %v3285_v56, 0.0  ;;  %v3337_v50 = vpop.xlane.xlu0 %3336  ;;  %v6976_v32 = vld [vmem:[#allocation57_spill] sm:$0xff]  ;;  %v6977_v4 = vld [vmem:[#allocation55_spill] sm:$0xff] }
 0x4f7   : > { %v4263_v49 = vpop.eup %4262  ;;  %v3254_v21 = vmul.f32 2.0, %v3222_v24  ;;  %v3456_v27 = vsel %vm3291_vm2, %v3391_v8, %v3424_v40  ;;  %v3392_v53 = vmul.f32 2.0, %v4261_v3  ;;  %3380 = vadd.xlane.f32.xlu0 %v3320_v37  ;;  %v2679_v0 = vsub.f32 0.6931472, %v6948_v47  ;;  %v6980_v24 = vld [vmem:[#allocation44_spill] sm:$0xff] }
 0x4f8   : > { %v4265_v42 = vpop.eup %4264  ;;  %v3151_v43 = vsel %vm6386_vm3, %v3148_v52, %v3145_v36  ;;  %v3156_v16 = vadd.f32 1.0, %v3155_v19  ;;  %3488 = vst [vmem:[%s6305_s21 + $0x18] sm:$0xff] %v3456_v27  ;;  %v3393_v41 = vmul.f32 2.0, %v4263_v49  ;;  %v3158_v39 = vand.u32 2147483647, %v6366_v46  ;;  %v6981_v27 = vld [vmem:[#allocation59_spill] sm:$0xff] }
 0x4f9   : > { %v3286_v61 = vsub.f32 %v3796_v60, %v3254_v21  ;;  %v3191_v45 = vadd.f32 %v3151_v43, %v2743_v15  ;;  %v3457_v48 = vsel %vm3291_vm2, %v3392_v53, %v3425_v57  ;;  %v3394_v34 = vmul.f32 2.0, %v4265_v42 }
 0x4fa   : > { %3489 = vst [vmem:[%s6305_s21 + $0x20] sm:$0xff] %v3457_v48  ;;  %v3458_v30 = vsel %vm3291_vm2, %v3393_v41, %v3426_v59  ;;  %v2584_v2 = vmul.f32 -0.5, %v6975_v20  ;;  %v3427_v26 = vsel %vm3420_vm13, %v3337_v50, 0.0  ;;  %v3157_v15 = vmul.f32 %v6366_v46, %v3156_v16  ;;  %v6983_v20 = vld [vmem:[#allocation63_spill] sm:$0xff] }
 0x4fb   : > { %v4267_v38 = vpop.eup %4266  ;;  %v3321_v10 = vsel %vm3291_vm2, %v3286_v61, 0.0  ;;  %v3223_v60 = vsub.f32 %v2679_v0, %v3191_v45  ;;  %3490 = vst [vmem:[%s6305_s21 + $0x28] sm:$0xff] %v3458_v30  ;;  %v3459_v63 = vsel %vm3291_vm2, %v3394_v34, %v3427_v26  ;;  %4270 = vtanh.f32 %v6976_v32  ;;  %v6982_v45 = vld [vmem:[#allocation61_spill] sm:$0xff] }
 0x4fc   : > { %3382 = vadd.xlane.f32.xlu1 %v3321_v10  ;;  %v3154_v29 = vmul.f32 0.6931472, %v4267_v38  ;;  %v6979_v31 = vsub.f32 %v6977_v4, %v6978_v25  ;;  %v2744_v1 = vmax.f32 %v6269_v55, 0.0  ;;  %vm3159_vm4 = vcmp.lt.f32.partialorder %v3158_v39, 0.0004427343  ;;  %3491 = vst [vmem:[%s6305_s21 + $0x30] sm:$0xff] %v3459_v63 }
 0x4fd   : > { %v3255_v40 = vmul.f32 2.0, %v3223_v60  ;;  %v2616_v22 = vsub.f32 %v2584_v2, %v6980_v24  ;;  %v2680_v8 = vsub.f32 0.6931472, %v6953_v28  ;;  %4272 = vtanh.f32 %v6981_v27 }
 0x4fe   : > { %v3797_v19 = vadd.f32 -0.9189385, %v6979_v31  ;;  %v4269_v33 = vpop.eup %4268  ;;  %v3160_v56 = vsel %vm3159_vm4, %v3157_v15, %v3154_v29  ;;  %v3339_v59 = vpop.xlane.xlu1 %3338  ;;  %4274 = vtanh.f32 %v6982_v45  ;;  %v6984_v29 = vld [vmem:[#allocation65_spill] sm:$0xff]  ;;  %v6985_v31 = vld [vmem:[#allocation67_spill] sm:$0xff] }
 0x4ff   : > { %v3192_v3 = vadd.f32 %v3160_v56, %v2744_v1  ;;  %v3395_v57 = vmul.f32 2.0, %v4269_v33  ;;  %v3428_v55 = vsel %vm3420_vm13, %v3339_v59, 0.0  ;;  %v3798_v49 = vadd.f32 -0.9189385, %v2616_v22 }
 0x500   : > { %v3287_v46 = vsub.f32 %v3797_v19, %v3255_v40  ;;  %4276 = vtanh.f32 %v6983_v20 }
 0x501   : > { %v3224_v52 = vsub.f32 %v2680_v8, %v3192_v3  ;;  %v3460_v21 = vsel %vm3291_vm2, %v3395_v57, %v3428_v55  ;;  %4278 = vtanh.f32 %v6984_v29 }
 0x502   : > { %v3322_v36 = vsel %vm3291_vm2, %v3287_v46, 0.0  ;;  %3492 = vst [vmem:[%s6305_s21 + $0x38] sm:$0xff] %v3460_v21  ;;  %4280 = vtanh.f32 %v6985_v31 }
 0x503   : > { %3384 = vadd.xlane.f32.xlu0 %v3322_v36  ;;  %v3256_v37 = vmul.f32 2.0, %v3224_v52  ;;  %4282 = vtanh.f32 %v6879_v35 }
 0x504   : > { %v3341_v16 = vpop.xlane.xlu0 %3340  ;;  %4284 = vtanh.f32 %v6884_v23 }
 0x505   : > { %v3288_v53 = vsub.f32 %v3798_v49, %v3256_v37  ;;  %v4271_v42 = vpop.eup %4270  ;;  %v3429_v41 = vsel %vm3420_vm13, %v3341_v16, 0.0  ;;  %4286 = vtanh.f32 %v6888_v44 }
 0x506   : > { %v3396_v43 = vmul.f32 2.0, %v4271_v42  ;;  %4288 = vtanh.f32 %v6889_v54 }
 0x507   : > { %v3323_v0 = vsel %vm3291_vm2, %v3288_v53, 0.0  ;;  %v4273_v39 = vpop.eup %4272  ;;  %4290 = vtanh.f32 %v6897_v18 }
 0x508   : > { %3386 = vadd.xlane.f32.xlu1 %v3323_v0  ;;  %v3461_v61 = vsel %vm3291_vm2, %v3396_v43, %v3429_v41  ;;  %v3397_v48 = vmul.f32 2.0, %v4273_v39  ;;  %v4275_v38 = vpop.eup %4274  ;;  %4292 = vtanh.f32 %v6898_v7 }
 0x509   : > { %3493 = vst [vmem:[%s6305_s21 + $0x40] sm:$0xff] %v3461_v61  ;;  %v3398_v2 = vmul.f32 2.0, %v4275_v38  ;;  %4294 = vtanh.f32 %v6908_v51 }
 0x50a   : > { %v4277_v15 = vpop.eup %4276  ;;  %4296 = vtanh.f32 %v6917_v13 }
 0x50b   : > { %v3399_v63 = vmul.f32 2.0, %v4277_v15  ;;  %v4279_v19 = vpop.eup %4278  ;;  %4298 = vtanh.f32 %v5676_v9 }
 0x50c   : > { %v3400_v40 = vmul.f32 2.0, %v4279_v19  ;;  %v4281_v24 = vpop.eup %4280  ;;  %4300 = vtanh.f32 %v6928_v17 }
 0x50d   : > { %v3343_v30 = vpop.xlane.xlu1 %3342  ;;  %v3401_v22 = vmul.f32 2.0, %v4281_v24  ;;  %v4283_v36 = vpop.eup %4282  ;;  %4302 = vtanh.f32 %v6934_v12 }
 0x50e   : > { %v3430_v34 = vsel %vm3420_vm13, %v3343_v30, 0.0  ;;  %v3402_v35 = vmul.f32 2.0, %v4283_v36  ;;  %v4285_v57 = vpop.eup %4284  ;;  %4304 = vtanh.f32 %v5751_v58 }
 0x50f   : > { %v3462_v50 = vsel %vm3291_vm2, %v3397_v48, %v3430_v34  ;;  %v3403_v55 = vmul.f32 2.0, %v4285_v57  ;;  %v4287_v37 = vpop.eup %4286  ;;  %4306 = vtanh.f32 %v5787_v62 }
 0x510   : > { %3494 = vst [vmem:[%s6305_s21 + $0x48] sm:$0xff] %v3462_v50  ;;  %v4289_v21 = vpop.eup %4288  ;;  %v3404_v27 = vmul.f32 2.0, %v4287_v37  ;;  %4308 = vtanh.f32 %v5833_v5 }
 0x511   : > { %v3405_v0 = vmul.f32 2.0, %v4289_v21  ;;  %v4291_v16 = vpop.eup %4290  ;;  %4310 = vtanh.f32 %v5861_v6 }
 0x512   : > { %v3406_v61 = vmul.f32 2.0, %v4291_v16  ;;  %v4293_v48 = vpop.eup %4292  ;;  %4312 = vtanh.f32 %v5911_v14 }
 0x513   : > { %v3407_v34 = vmul.f32 2.0, %v4293_v48  ;;  %v4295_v20 = vpop.eup %4294  ;;  %4314 = vtanh.f32 %v6948_v47 }
 0x514   : > { %v4297_v13 = vpop.eup %4296  ;;  %4316 = vtanh.f32 %v6953_v28 }
 0x515   : > { %v3345_v10 = vpop.xlane.xlu0 %3344  ;;  %v3409_v29 = vmul.f32 2.0, %v4297_v13 }
 0x516   : > { %v3431_v60 = vsel %vm3420_vm13, %v3345_v10, 0.0 }
 0x517   : > { %v3463_v26 = vsel %vm3291_vm2, %v3398_v2, %v3431_v60  ;;  %v3408_v2 = vmul.f32 2.0, %v4295_v20 }
 0x518   : > { %3495 = vst [vmem:[%s6305_s21 + $0x50] sm:$0xff] %v3463_v26 }
 0x521   : > { %v3347_v32 = vpop.xlane.xlu1 %3346 }
 0x522   : > { %v3432_v4 = vsel %vm3420_vm13, %v3347_v32, 0.0 }
 0x523   : > { %v3464_v25 = vsel %vm3291_vm2, %v3399_v63, %v3432_v4  ;;  %v4299_v4 = vpop.eup %4298 }
 0x524   : > { %3496 = vst [vmem:[%s6305_s21 + $0x58] sm:$0xff] %v3464_v25  ;;  %v3410_v9 = vmul.f32 2.0, %v4299_v4 }
 0x528   : > { %v3349_v1 = vpop.xlane.xlu0 %3348 }
 0x529   : > { %v3433_v33 = vsel %vm3420_vm13, %v3349_v1, 0.0 }
 0x52a   : > { %v3465_v56 = vsel %vm3291_vm2, %v3400_v40, %v3433_v33  ;;  %v4301_v40 = vpop.eup %4300 }
 0x52b   : > { %3497 = vst [vmem:[%s6305_s21 + $0x60] sm:$0xff] %v3465_v56  ;;  %v3411_v1 = vmul.f32 2.0, %v4301_v40  ;;  %v4303_v12 = vpop.eup %4302 }
 0x52c   : > { %v4305_v24 = vpop.eup %4304 }
 0x52d   : > { %v3413_v62 = vmul.f32 2.0, %v4305_v24  ;;  %v4307_v36 = vpop.eup %4306 }
 0x52e   : > { %v4309_v57 = vpop.eup %4308 }
 0x532   : > { %v3351_v46 = vpop.xlane.xlu1 %3350 }
 0x533   : > { %v3434_v8 = vsel %vm3420_vm13, %v3351_v46, 0.0 }
 0x534   : > { %v3466_v3 = vsel %vm3291_vm2, %v3401_v22, %v3434_v8  ;;  %v3412_v22 = vmul.f32 2.0, %v4303_v12 }
 0x535   : > { %3498 = vst [vmem:[%s6305_s21 + $0x68] sm:$0xff] %v3466_v3 }
 0x539   : > { %v3353_v52 = vpop.xlane.xlu0 %3352 }
 0x53a   : > { %v3435_v23 = vsel %vm3420_vm13, %v3353_v52, 0.0  ;;  %v3414_v52 = vmul.f32 2.0, %v4307_v36 }
 0x53b   : > { %v3467_v59 = vsel %vm3291_vm2, %v3402_v35, %v3435_v23 }
 0x53c   : > { %3499 = vst [vmem:[%s6305_s21 + $0x70] sm:$0xff] %v3467_v59 }
 0x53f   : > { %v3355_v49 = vpop.xlane.xlu1 %3354 }
 0x540   : > { %v3436_v44 = vsel %vm3420_vm13, %v3355_v49, 0.0  ;;  %v3415_v49 = vmul.f32 2.0, %v4309_v57 }
 0x541   : > { %v3468_v54 = vsel %vm3291_vm2, %v3403_v55, %v3436_v44 }
 0x542   : > { %3500 = vst [vmem:[%s6305_s21 + $0x78] sm:$0xff] %v3468_v54  ;;  %v4311_v54 = vpop.eup %4310 }
 0x543   : > { %v3357_v53 = vpop.xlane.xlu0 %3356  ;;  %v3416_v21 = vmul.f32 2.0, %v4311_v54  ;;  %v4313_v14 = vpop.eup %4312 }
 0x544   : > { %v3437_v18 = vsel %vm3420_vm13, %v3357_v53, 0.0  ;;  %v4315_v16 = vpop.eup %4314 }
 0x545   : > { %v3469_v42 = vsel %vm3291_vm2, %v3404_v27, %v3437_v18 }
 0x546   : > { %3501 = vst [vmem:[%s6305_s21 + $0x80] sm:$0xff] %v3469_v42  ;;  %v3359_v43 = vpop.xlane.xlu1 %3358  ;;  %v3417_v42 = vmul.f32 2.0, %v4313_v14 }
 0x547   : > { %v3438_v41 = vsel %vm3420_vm13, %v3359_v43, 0.0 }
 0x548   : > { %v3470_v7 = vsel %vm3291_vm2, %v3405_v0, %v3438_v41  ;;  %v3418_v41 = vmul.f32 2.0, %v4315_v16 }
 0x549   : > { %3502 = vst [vmem:[%s6305_s21 + $0x88] sm:$0xff] %v3470_v7  ;;  %v3361_v45 = vpop.xlane.xlu0 %3360 }
 0x54a   : > { %v3439_v39 = vsel %vm3420_vm13, %v3361_v45, 0.0  ;;  %v4317_v45 = vpop.eup %4316 }
 0x54b   : > { %v3471_v30 = vsel %vm3291_vm2, %v3406_v61, %v3439_v39  ;;  %v3419_v39 = vmul.f32 2.0, %v4317_v45 }
 0x54c   : > { %3503 = vst [vmem:[%s6305_s21 + $0x90] sm:$0xff] %v3471_v30 }
 0x54e   : > { %v3363_v50 = vpop.xlane.xlu1 %3362 }
 0x54f   : > { %v3440_v38 = vsel %vm3420_vm13, %v3363_v50, 0.0 }
 0x550   : > { %v3472_v51 = vsel %vm3291_vm2, %v3407_v34, %v3440_v38 }
 0x551   : > { %3504 = vst [vmem:[%s6305_s21 + $0x98] sm:$0xff] %v3472_v51 }
 0x556   : > { %v3365_v10 = vpop.xlane.xlu0 %3364 }
 0x557   : > { %v3441_v60 = vsel %vm3420_vm13, %v3365_v10, 0.0 }
 0x558   : > { %v3473_v26 = vsel %vm3291_vm2, %v3408_v2, %v3441_v60 }
 0x559   : > { %3505 = vst [vmem:[%s6305_s21 + $0xa0] sm:$0xff] %v3473_v26 }
 0x55b   : > { %v3367_v15 = vpop.xlane.xlu1 %3366 }
 0x55c   : > { %v3442_v63 = vsel %vm3420_vm13, %v3367_v15, 0.0 }
 0x55d   : > { %v3474_v32 = vsel %vm3291_vm2, %v3409_v29, %v3442_v63 }
 0x55e   : > { %3506 = vst [vmem:[%s6305_s21 + $0xa8] sm:$0xff] %v3474_v32 }
 0x565   : > { %v3369_v25 = vpop.xlane.xlu0 %3368 }
 0x566   : > { %v3443_v31 = vsel %vm3420_vm13, %v3369_v25, 0.0 }
 0x567   : > { %v3475_v19 = vsel %vm3291_vm2, %v3410_v9, %v3443_v31 }
 0x568   : > { %3507 = vst [vmem:[%s6305_s21 + $0xb0] sm:$0xff] %v3475_v19 }
 0x56c   : > { %v3371_v33 = vpop.xlane.xlu1 %3370 }
 0x56d   : > { %v3444_v17 = vsel %vm3420_vm13, %v3371_v33, 0.0 }
 0x56e   : > { %v3476_v56 = vsel %vm3291_vm2, %v3411_v1, %v3444_v17 }
 0x56f   : > { %3508 = vst [vmem:[%s6305_s21 + $0xb8] sm:$0xff] %v3476_v56 }
 0x573   : > { %v3373_v46 = vpop.xlane.xlu0 %3372 }
 0x574   : > { %v3445_v58 = vsel %vm3420_vm13, %v3373_v46, 0.0 }
 0x575   : > { %v3477_v8 = vsel %vm3291_vm2, %v3412_v22, %v3445_v58 }
 0x576   : > { %3509 = vst [vmem:[%s6305_s21 + $0xc0] sm:$0xff] %v3477_v8  ;;  %v3375_v3 = vpop.xlane.xlu1 %3374 }
 0x577   : > { %v3446_v35 = vsel %vm3420_vm13, %v3375_v3, 0.0 }
 0x578   : > { %v3478_v5 = vsel %vm3291_vm2, %v3413_v62, %v3446_v35 }
 0x579   : > { %3510 = vst [vmem:[%s6305_s21 + $0xc8] sm:$0xff] %v3478_v5 }
 0x57a   : > { %v3377_v23 = vpop.xlane.xlu0 %3376 }
 0x57b   : > { %v3447_v59 = vsel %vm3420_vm13, %v3377_v23, 0.0 }
 0x57c   : > { %v3479_v55 = vsel %vm3291_vm2, %v3414_v52, %v3447_v59 }
 0x57d   : > { %3511 = vst [vmem:[%s6305_s21 + $0xd0] sm:$0xff] %v3479_v55 }
 0x57e   : > { %v3379_v37 = vpop.xlane.xlu1 %3378 }
 0x57f   : > { %v3448_v6 = vsel %vm3420_vm13, %v3379_v37, 0.0 }
 0x580   : > { %v3480_v44 = vsel %vm3291_vm2, %v3415_v49, %v3448_v6 }
 0x581   : > { %3512 = vst [vmem:[%s6305_s21 + $0xd8] sm:$0xff] %v3480_v44 }
 0x584   : > { %v3381_v27 = vpop.xlane.xlu0 %3380 }
 0x585   : > { %v3449_v53 = vsel %vm3420_vm13, %v3381_v27, 0.0 }
 0x586   : > { %v3481_v18 = vsel %vm3291_vm2, %v3416_v21, %v3449_v53 }
 0x587   : > { %3513 = vst [vmem:[%s6305_s21 + $0xe0] sm:$0xff] %v3481_v18 }
 0x589   : > { %v3383_v0 = vpop.xlane.xlu1 %3382 }
 0x58a   : > { %v3450_v47 = vsel %vm3420_vm13, %v3383_v0, 0.0 }
 0x58b   : > { %v3482_v43 = vsel %vm3291_vm2, %v3417_v42, %v3450_v47 }
 0x58c   : > { %3514 = vst [vmem:[%s6305_s21 + $0xe8] sm:$0xff] %v3482_v43 }
 0x590   : > { %v3385_v7 = vpop.xlane.xlu0 %3384 }
 0x591   : > { %v3451_v61 = vsel %vm3420_vm13, %v3385_v7, 0.0 }
 0x592   : > { %v3483_v28 = vsel %vm3291_vm2, %v3418_v41, %v3451_v61 }
 0x593   : > { %3515 = vst [vmem:[%s6305_s21 + $0xf0] sm:$0xff] %v3483_v28 }
 0x595   : > { %v3387_v48 = vpop.xlane.xlu1 %3386 }
 0x596   : > { %v3452_v30 = vsel %vm3420_vm13, %v3387_v48, 0.0 }
 0x597   : > { %v3484_v34 = vsel %vm3291_vm2, %v3419_v39, %v3452_v30 }
 0x598   : > { %3516 = vst [vmem:[%s6305_s21 + $0xf8] sm:$0xff] %v3484_v34 }
 0x599   : > { %4415 = shalt.err (!%p4412_p9)
}
 0x59a   : > { %s4416_s18 = scalar_lea.hbm %s6586_s27, 4096  ;;  %s4420_s19 = scalar_lea.hbm %s6648_s10, 8192 }
 0x59b   : > { %p4417_p2 = scmp.ne.s32.totalorder %s6586_s27, %s4416_s18  ;;  %p4421_p5 = scmp.lt.u32.totalorder %s6586_s27, %s6648_s10 }
 0x59c   : > { %p4422_p10 = scmp.lt.u32.totalorder %s4420_s19, %s4416_s18  ;;  %p4424_p4 = scmp.lt.u32.totalorder %s4416_s18, %s6586_s27 }
 0x59d   : > { %p4418_p0 = pnand %p4417_p2, %p6986_p7 }
 0x59e   : > { %p4423_p12 = por %p4422_p10, %p4421_p5 }
 0x59f   : > { %p4419_p3 = pneg %p4418_p0 }
 0x5a0   : > { %p4425_p8 = por %p4424_p4, %p4423_p12 }
 0x5a2   : > { %p4426_p11 = pnand %p4425_p8, %p4419_p3 }
 0x5a4   : > { %4429 = shalt.err (!%p4426_p11)
}
 0x5a5   : > { %s4481_s25 = smov 128   ;;  %s4482_s21 = smov 8  }
 0x5a6   : > { %3849 = dma.vmem_to_hbm [thread:$0]  (%p6986_p7), %s6588_s29, 4096, %s6586_s27, %s6597_s17, %s4481_s25, %s4481_s25, %s4482_s21  }
 0x5a7 PF: > { %s6987_s26 = sld [smem:[#allocation14_spill]]  ;;  %s6988_s11 = sld [smem:[#allocation12_spill]] }
 0x5a8   : > { %s6989_s22 = sld [smem:[#allocation17_spill]] }
 0x5ad   : > { %p3871_p13 = scmp.ge.s32.totalorder %s6987_s26, 2  ;;  %s3546_s30 = sand.u32 1, %s6988_s11  }
 0x5ae   : > { %p6990_p1 = scmp.ne.s32.totalorder %s6989_s22, 0  ;;  %s3547_s13 = scalar_lea.sflag [#allocation4], %s3546_s30 }
 0x5b0   : > { %p3862_p6 = pnand %p3871_p13, %p6990_p1 }
 0x5b2   : > { %4455 = dma.done.wait (!%p3862_p6), %s3547_s13, 4096  }
 0x5b3   : > { %4457 = vsyncadd (!%p3862_p6), %s3547_s13, 4294963200  ;;  %s6991_s16 = sld [smem:[#allocation15_spill]]  ;;  %s6992_s28 = sld [smem:[#allocation13_spill]] }
 0x5b4   : > { %s6993_s15 = sld [smem:[#allocation16_spill]]  ;;  %s6994_s13 = smov %s4464_s14 }
 0x5b9   : > { %p22_p9 = scmp.ge.s32.totalorder %s6991_s16, 4   ;;  %s6995_s14 = smov %s6992_s28 }
 0x5bb   :  { %24 = sbr.rel (!%p22_p9) target bundleno = 5 (0x5), region = 111 }
 0x5c2   :  { %3552 = vsyncpa [#allocation3], 1 }
 0x5c3   :  { %3554 = vsyncpa [#allocation3 + $0x1], 1 }
 0x5c4   :  { %3555 = vsyncpa [#allocation6], 1 }
 0x5c5   :  { %3556 = vsyncpa [#allocation4], 1 }
 0x5c6   :  { %3558 = vsyncpa [#allocation4 + $0x1], 1 }

</bundles_post_ra>
